<compile_context>
chip_gen: v7x
topology: tpu7x:2x2x1
jax: 0.10.0
libtpu: 0.0.40
codegen_flags: <defaults>
</compile_context>

<pallas_src>
import jax
import jax.numpy as jnp
from jax.experimental import pallas as pl
from jax.experimental.pallas import tpu as pltpu


# ---------------------------------------------------------------------------
# Kernel 1: fused linearIn + ReLU + input-side LSTM gate projection.
# ---------------------------------------------------------------------------
def input_proj_kernel(x_ref, w_in_ref, b_in_ref, w_ih_ref, b_g_ref, gx_ref):
    x0 = jnp.dot(x_ref[...], w_in_ref[...], preferred_element_type=jnp.float32)
    x0 = jnp.maximum(x0 + b_in_ref[...], 0.0)                      # ReLU (f32)
    gx = jnp.dot(x0, w_ih_ref[...], preferred_element_type=jnp.float32)
    gx_ref[...] = (gx + b_g_ref[...]).astype(gx_ref.dtype)


# ---------------------------------------------------------------------------
# Kernel 2: time-chunked recurrence + deferred, batched output projection.
# Kernel gate order along the 4H axis is [ i | f | o | g ]  (permuted at pack
# time from PyTorch's [ i | f | g | o ]).
# ---------------------------------------------------------------------------
def lstm_seq_kernel(gx_ref, w_hh_ref, w_out_ref, b_out_ref, out_ref,
                    h_scr, c_scr, hseq_scr):
    @pl.when(pl.program_id(0) == 0)
    def _():
        h_scr[...] = jnp.zeros_like(h_scr)   # nn.LSTM default: h0 = c0 = 0
        c_scr[...] = jnp.zeros_like(c_scr)

    Tt, B, G = gx_ref.shape
    H = G // 4

    def step(t, carry):
        gates = gx_ref[t] + jnp.dot(h_scr[...], w_hh_ref[...],
                                    preferred_element_type=jnp.float32)
        # [i|f|o] share one sigmoid over a contiguous, lane-aligned slice;
        # only the g gate needs tanh.  (Half the EUP work vs full-width.)
        sig = jax.nn.sigmoid(gates[:, :3 * H])
        g_t = jnp.tanh(gates[:, 3 * H:])
        i_t = sig[:, 0 * H:1 * H]
        f_t = sig[:, 1 * H:2 * H]
        o_t = sig[:, 2 * H:3 * H]

        c_new = f_t * c_scr[...] + i_t * g_t
        h_new = o_t * jnp.tanh(c_new)
        c_scr[...] = c_new
        h_scr[...] = h_new
        hseq_scr[t] = h_new                  # stash for the batched linearOut
        return carry

    # Fully unrolled: gives the LLO scheduler visibility across timesteps.
    jax.lax.fori_loop(0, Tt, step, 0, unroll=True)

    # Deferred linearOut: one (Tt*B, H) @ (H, O) matmul + single writeback.
    h_all = hseq_scr[...].reshape(Tt * B, H)
    out = jnp.dot(h_all, w_out_ref[...], preferred_element_type=jnp.float32)
    out_ref[...] = (out + b_out_ref[...]).astype(out_ref.dtype)


# ---------------------------------------------------------------------------
# Parameters.  init_* uses the canonical PyTorch layout (gate order [i|f|g|o]);
# pack_* permutes / folds ONCE — never per forward call.
# ---------------------------------------------------------------------------
def init_simple_lstm_params(key, input_size, output_size, hidden_size,
                            dtype=jnp.float32):
    I, H, O = input_size, hidden_size, output_size
    ks = jax.random.split(key, 8)
    lin_std = 1.0 / (I ** 0.5)
    lstm_std = 1.0 / (H ** 0.5)
    out_std = 1.0 / (H ** 0.5)

    def u(k, shape, s):
        return jax.random.uniform(k, shape, dtype, minval=-s, maxval=s)

    return {
        "w_in":  u(ks[0], (I, H), lin_std),        # linearIn.weight.T
        "b_in":  u(ks[1], (1, H), lin_std),        # linearIn.bias
        "w_ih":  u(ks[2], (H, 4 * H), lstm_std),   # lstm.weight_ih_l0.T  [i|f|g|o]
        "w_hh":  u(ks[3], (H, 4 * H), lstm_std),   # lstm.weight_hh_l0.T  [i|f|g|o]
        "b_ih":  u(ks[4], (4 * H,), lstm_std),
        "b_hh":  u(ks[5], (4 * H,), lstm_std),
        "w_out": u(ks[6], (H, O), out_std),        # linearOut.weight.T
        "b_out": u(ks[7], (1, O), out_std),        # linearOut.bias
    }


def pack_params_for_kernel(params):
    """One-time gate-column permutation [i|f|g|o] -> [i|f|o|g] + bias folding."""
    H = params["w_hh"].shape[0]
    perm = jnp.concatenate([jnp.arange(0, 2 * H),          # i, f
                            jnp.arange(3 * H, 4 * H),      # o
                            jnp.arange(2 * H, 3 * H)])     # g
    b_g = (params["b_ih"] + params["b_hh"])[perm][None, :]
    return {
        "w_in":  params["w_in"],
        "b_in":  params["b_in"],
        "w_ih":  params["w_ih"][:, perm],
        "w_hh":  params["w_hh"][:, perm],
        "b_g":   b_g,
        "w_out": params["w_out"],
        "b_out": params["b_out"],
    }


# ---------------------------------------------------------------------------
# Forward wrapper.
# ---------------------------------------------------------------------------
@jax.jit
def simple_lstm_forward(packed, x):
    """x: (T, B, input_size)  ->  (T, B, output_size)."""
    T, B, I = x.shape
    H = packed["w_hh"].shape[0]
    O = packed["w_out"].shape[1]
    dtype = x.dtype

    # Time-chunk size; whole sequence in one grid step at toy sizes.
    Tt = min(T, 32)
    n_chunks = pl.cdiv(T, Tt)
    T_pad = n_chunks * Tt

    # Pad along T so the Stage-1 -> Stage-2 reshape is a free, contiguous
    # reshape (no extra HBM pass of gx); padded steps are sliced off at the end.
    x_p = x if T_pad == T else jnp.pad(x, ((0, T_pad - T), (0, 0), (0, 0)))
    rows = T_pad * B
    x2 = x_p.reshape(rows, I)

    # Stage-1 row tile: largest "nice" divisor of rows (amortizes grid/DMA
    # overhead; falls back to the whole thing for small problems).
    rt = rows
    for cand in (1024, 512, 256, 128, 64, 32, 16, 8):
        if rows % cand == 0:
            rt = cand
            break

    # ---- Stage 1: gx = relu(x @ W_in + b_in) @ W_ih + b, as one big matmul.
    gx_flat = pl.pallas_call(
        input_proj_kernel,
        out_shape=jax.ShapeDtypeStruct((rows, 4 * H), jnp.float32),
        grid_spec=pltpu.PrefetchScalarGridSpec(
            num_scalar_prefetch=0,
            grid=(rows // rt,),
            in_specs=[
                pl.BlockSpec((rt, I), lambda i: (i, 0)),
                pl.BlockSpec((I, H), lambda i: (0, 0)),
                pl.BlockSpec((1, H), lambda i: (0, 0)),
                pl.BlockSpec((H, 4 * H), lambda i: (0, 0)),
                pl.BlockSpec((1, 4 * H), lambda i: (0, 0)),
            ],
            out_specs=pl.BlockSpec((rt, 4 * H), lambda i: (i, 0)),
        ),
        compiler_params=pltpu.CompilerParams(
            dimension_semantics=("parallel",)),
    )(x2, packed["w_in"], packed["b_in"], packed["w_ih"], packed["b_g"])

    gx = gx_flat.reshape(T_pad, B, 4 * H)   # pure metadata reshape (contiguous)

    # ---- Stage 2: chunked sequential recurrence + deferred linearOut.
    out_flat = pl.pallas_call(
        lstm_seq_kernel,
        out_shape=jax.ShapeDtypeStruct((T_pad * B, O), dtype),
        grid_spec=pltpu.PrefetchScalarGridSpec(
            num_scalar_prefetch=0,
            grid=(n_chunks,),
            in_specs=[
                pl.BlockSpec((Tt, B, 4 * H), lambda t: (t, 0, 0)),
                pl.BlockSpec((H, 4 * H), lambda t: (0, 0)),
                pl.BlockSpec((H, O), lambda t: (0, 0)),
                pl.BlockSpec((1, O), lambda t: (0, 0)),
            ],
            out_specs=pl.BlockSpec((Tt * B, O), lambda t: (t, 0)),
            scratch_shapes=[pltpu.VMEM((B, H), jnp.float32),       # h
                            pltpu.VMEM((B, H), jnp.float32),       # c
                            pltpu.VMEM((Tt, B, H), jnp.float32)],  # h stash
        ),
        compiler_params=pltpu.CompilerParams(
            dimension_semantics=("arbitrary",)),   # h/c carry across chunks
    )(gx, packed["w_hh"], packed["w_out"], packed["b_out"])

    out = out_flat.reshape(T_pad, B, O)
    return out if T_pad == T else out[:T]


# ---------------------------------------------------------------------------
# Pure-JAX reference (PyTorch gate order, same math, no Pallas).
# ---------------------------------------------------------------------------
def ref_forward(params, x):
    T, B, _ = x.shape
    H = params["w_hh"].shape[0]
    x0 = jax.nn.relu(x @ params["w_in"] + params["b_in"][0])
    gx = x0 @ params["w_ih"] + (params["b_ih"] + params["b_hh"])

    def step(carry, g):
        h, c = carry
        gates = g + h @ params["w_hh"]
        i = jax.nn.sigmoid(gates[:, 0 * H:1 * H])
        f = jax.nn.sigmoid(gates[:, 1 * H:2 * H])
        gg = jnp.tanh(gates[:, 2 * H:3 * H])
        o = jax.nn.sigmoid(gates[:, 3 * H:4 * H])
        c = f * c + i * gg
        h = o * jnp.tanh(c)
        return (h, c), h

    init = (jnp.zeros((B, H), jnp.float32), jnp.zeros((B, H), jnp.float32))
    _, hs = jax.lax.scan(step, init, gx)
    return hs @ params["w_out"] + params["b_out"][0]


if __name__ == "__main__":
    T, B = 16, 8            # seq len, batch  (nn.LSTM layout: (T, B, features))
    I, H, O = 16, 128, 8    # input_size, hidden_size (lane-dense), output_size

    key = jax.random.PRNGKey(0)
    kp, kx = jax.random.split(key)
    params = init_simple_lstm_params(kp, I, O, H)
    packed = pack_params_for_kernel(params)
    x = jax.random.normal(kx, (T, B, I), jnp.float32)

    out = simple_lstm_forward(packed, x)
    jax.block_until_ready(out)

    ref = ref_forward(params, x)
    assert out.shape == (T, B, O)
    err = float(jnp.max(jnp.abs(out - ref)))
    assert jnp.allclose(out, ref, atol=2e-4, rtol=2e-4), f"max |err| = {err}"

    print("KERNEL_OK")
</pallas_src>

<mosaic_0001>
module attributes {stable_mosaic.version = 11 : i64} {
  func.func @input_proj_kernel(%arg0: i32, %arg1: memref<128x16xf32, #tpu.memory_space<vmem>>, %arg2: memref<16x128xf32, #tpu.memory_space<vmem>>, %arg3: memref<1x128xf32, #tpu.memory_space<vmem>>, %arg4: memref<128x512xf32, #tpu.memory_space<vmem>>, %arg5: memref<1x512xf32, #tpu.memory_space<vmem>>, %arg6: memref<128x512xf32, #tpu.memory_space<vmem>>) attributes {dimension_semantics = [#tpu.dimension_semantics<parallel>], iteration_bounds = array<i64: 1>, scalar_prefetch = 0 : i64, scratch_operands = 0 : i64, tpu.core_type = #tpu.core_type<tc>, window_params = [{transform_indices = @transform_0, window_bounds = array<i64: 128, 16>}, {pipeline_mode = #tpu.pipeline_mode<synchronous>, transform_indices = @transform_1, window_bounds = array<i64: 16, 128>}, {pipeline_mode = #tpu.pipeline_mode<synchronous>, transform_indices = @transform_2, window_bounds = array<i64: 1, 128>}, {pipeline_mode = #tpu.pipeline_mode<synchronous>, transform_indices = @transform_3, window_bounds = array<i64: 128, 512>}, {pipeline_mode = #tpu.pipeline_mode<synchronous>, transform_indices = @transform_4, window_bounds = array<i64: 1, 512>}, {transform_indices = @transform_5, window_bounds = array<i64: 128, 512>}]} {
    %c0 = arith.constant 0 : index
    %c0_0 = arith.constant 0 : index
    %0 = vector.load %arg1[%c0, %c0_0] : memref<128x16xf32, #tpu.memory_space<vmem>>, vector<128x16xf32>
    %c0_1 = arith.constant 0 : index
    %c0_2 = arith.constant 0 : index
    %1 = vector.load %arg2[%c0_1, %c0_2] : memref<16x128xf32, #tpu.memory_space<vmem>>, vector<16x128xf32>
    %cst = arith.constant dense<0.000000e+00> : vector<128x128xf32>
    %2 = tpu.matmul %0, %1, %cst {dimension_numbers = #tpu.dot_dimension_numbers<[1], [0], [0], [1], [0, 0, 1, 1], [], []>} : vector<128x16xf32>, vector<16x128xf32>, vector<128x128xf32> -> vector<128x128xf32>
    %c0_3 = arith.constant 0 : index
    %c0_4 = arith.constant 0 : index
    %3 = vector.load %arg3[%c0_3, %c0_4] : memref<1x128xf32, #tpu.memory_space<vmem>>, vector<1x128xf32>
    %4 = vector.broadcast %3 : vector<1x128xf32> to vector<128x128xf32>
    %5 = arith.addf %2, %4 : vector<128x128xf32>
    %cst_5 = arith.constant 0.000000e+00 : f32
    %6 = vector.broadcast %cst_5 : f32 to vector<128x128xf32>
    %7 = arith.maximumf %5, %6 : vector<128x128xf32>
    %c0_6 = arith.constant 0 : index
    %c0_7 = arith.constant 0 : index
    %8 = vector.load %arg4[%c0_6, %c0_7] : memref<128x512xf32, #tpu.memory_space<vmem>>, vector<128x512xf32>
    %cst_8 = arith.constant dense<0.000000e+00> : vector<128x512xf32>
    %9 = tpu.matmul %7, %8, %cst_8 {dimension_numbers = #tpu.dot_dimension_numbers<[1], [0], [0], [1], [0, 0, 1, 1], [], []>} : vector<128x128xf32>, vector<128x512xf32>, vector<128x512xf32> -> vector<128x512xf32>
    %c0_9 = arith.constant 0 : index
    %c0_10 = arith.constant 0 : index
    %10 = vector.load %arg5[%c0_9, %c0_10] : memref<1x512xf32, #tpu.memory_space<vmem>>, vector<1x512xf32>
    %11 = vector.broadcast %10 : vector<1x512xf32> to vector<128x512xf32>
    %12 = arith.addf %9, %11 : vector<128x512xf32>
    %c0_11 = arith.constant 0 : index
    %c0_12 = arith.constant 0 : index
    %13 = vector.load %arg6[%c0_11, %c0_12] : memref<128x512xf32, #tpu.memory_space<vmem>>, vector<128x512xf32>
    tpu.vector_store %arg6[%c0_11, %c0_12], %12 {strides = array<i32>} : memref<128x512xf32, #tpu.memory_space<vmem>>, vector<128x512xf32>,
    return
  }
  func.func @transform_0(%arg0: i32) -> (i32, i32) {
    %c0_i32 = arith.constant 0 : i32
    %c0_i32_0 = arith.constant 0 : i32
    return %arg0, %c0_i32 : i32, i32
  }
  func.func @transform_1(%arg0: i32) -> (i32, i32) {
    %c0_i32 = arith.constant 0 : i32
    %c0_i32_0 = arith.constant 0 : i32
    %c0_i32_1 = arith.constant 0 : i32
    return %c0_i32, %c0_i32_0 : i32, i32
  }
  func.func @transform_2(%arg0: i32) -> (i32, i32) {
    %c0_i32 = arith.constant 0 : i32
    %c0_i32_0 = arith.constant 0 : i32
    %c0_i32_1 = arith.constant 0 : i32
    return %c0_i32, %c0_i32_0 : i32, i32
  }
  func.func @transform_3(%arg0: i32) -> (i32, i32) {
    %c0_i32 = arith.constant 0 : i32
    %c0_i32_0 = arith.constant 0 : i32
    %c0_i32_1 = arith.constant 0 : i32
    return %c0_i32, %c0_i32_0 : i32, i32
  }
  func.func @transform_4(%arg0: i32) -> (i32, i32) {
    %c0_i32 = arith.constant 0 : i32
    %c0_i32_0 = arith.constant 0 : i32
    %c0_i32_1 = arith.constant 0 : i32
    return %c0_i32, %c0_i32_0 : i32, i32
  }
  func.func @transform_5(%arg0: i32) -> (i32, i32) {
    %c0_i32 = arith.constant 0 : i32
    %c0_i32_0 = arith.constant 0 : i32
    return %arg0, %c0_i32 : i32, i32
  }
}

module attributes {stable_mosaic.version = 11 : i64} {
  func.func @lstm_seq_kernel(%arg0: i32, %arg1: memref<16x8x512xf32, #tpu.memory_space<vmem>>, %arg2: memref<128x512xf32, #tpu.memory_space<vmem>>, %arg3: memref<128x8xf32, #tpu.memory_space<vmem>>, %arg4: memref<1x8xf32, #tpu.memory_space<vmem>>, %arg5: memref<128x8xf32, #tpu.memory_space<vmem>>, %arg6: memref<8x128xf32, #tpu.memory_space<vmem>>, %arg7: memref<8x128xf32, #tpu.memory_space<vmem>>, %arg8: memref<16x8x128xf32, #tpu.memory_space<vmem>>) attributes {dimension_semantics = [#tpu.dimension_semantics<arbitrary>], iteration_bounds = array<i64: 1>, scalar_prefetch = 0 : i64, scratch_operands = 3 : i64, tpu.core_type = #tpu.core_type<tc>, window_params = [{transform_indices = @transform_0, window_bounds = array<i64: 16, 8, 512>}, {pipeline_mode = #tpu.pipeline_mode<synchronous>, transform_indices = @transform_1, window_bounds = array<i64: 128, 512>}, {pipeline_mode = #tpu.pipeline_mode<synchronous>, transform_indices = @transform_2, window_bounds = array<i64: 128, 8>}, {pipeline_mode = #tpu.pipeline_mode<synchronous>, transform_indices = @transform_3, window_bounds = array<i64: 1, 8>}, {transform_indices = @transform_4, window_bounds = array<i64: 128, 8>}]} {
    %c0_i32 = arith.constant 0 : i32
    %0 = arith.cmpi eq, %arg0, %c0_i32 : i32
    %1 = arith.extui %0 : i1 to i32
    %c0_i32_0 = arith.constant 0 : i32
    %2 = arith.cmpi ne, %1, %c0_i32_0 : i32
    scf.if %2 {
      %cst_266 = arith.constant 0.000000e+00 : f32
      %491 = vector.broadcast %cst_266 : f32 to vector<8x128xf32>
      %c0_267 = arith.constant 0 : index
      %c0_268 = arith.constant 0 : index
      %492 = vector.load %arg6[%c0_267, %c0_268] : memref<8x128xf32, #tpu.memory_space<vmem>>, vector<8x128xf32>
      tpu.vector_store %arg6[%c0_267, %c0_268], %491 {strides = array<i32>} : memref<8x128xf32, #tpu.memory_space<vmem>>, vector<8x128xf32>,
      %cst_269 = arith.constant 0.000000e+00 : f32
      %493 = vector.broadcast %cst_269 : f32 to vector<8x128xf32>
      %c0_270 = arith.constant 0 : index
      %c0_271 = arith.constant 0 : index
      %494 = vector.load %arg7[%c0_270, %c0_271] : memref<8x128xf32, #tpu.memory_space<vmem>>, vector<8x128xf32>
      tpu.vector_store %arg7[%c0_270, %c0_271], %493 {strides = array<i32>} : memref<8x128xf32, #tpu.memory_space<vmem>>, vector<8x128xf32>,
    } else {
    }
    %c0_i32_1 = arith.constant 0 : i32
    %3 = arith.index_cast %c0_i32_1 : i32 to index
    %c0 = arith.constant 0 : index
    %c0_2 = arith.constant 0 : index
    %4 = vector.load %arg1[%3, %c0, %c0_2] : memref<16x8x512xf32, #tpu.memory_space<vmem>>, vector<1x8x512xf32>
    %5 = vector.shape_cast %4 : vector<1x8x512xf32> to vector<8x512xf32>
    %c0_3 = arith.constant 0 : index
    %c0_4 = arith.constant 0 : index
    %6 = vector.load %arg6[%c0_3, %c0_4] : memref<8x128xf32, #tpu.memory_space<vmem>>, vector<8x128xf32>
    %c0_5 = arith.constant 0 : index
    %c0_6 = arith.constant 0 : index
    %7 = vector.load %arg2[%c0_5, %c0_6] : memref<128x512xf32, #tpu.memory_space<vmem>>, vector<128x512xf32>
    %cst = arith.constant dense<0.000000e+00> : vector<8x512xf32>
    %8 = tpu.matmul %6, %7, %cst {dimension_numbers = #tpu.dot_dimension_numbers<[1], [0], [0], [1], [0, 0, 1, 1], [], []>} : vector<8x128xf32>, vector<128x512xf32>, vector<8x512xf32> -> vector<8x512xf32>
    %9 = arith.addf %5, %8 : vector<8x512xf32>
    %10 = vector.extract_strided_slice %9 {offsets = [0, 0], sizes = [8, 384], strides = [1, 1]} : vector<8x512xf32> to vector<8x384xf32>
    %11 = arith.negf %10 : vector<8x384xf32>
    %12 = math.exp %11 : vector<8x384xf32>
    %cst_7 = arith.constant 1.000000e+00 : f32
    %13 = vector.broadcast %cst_7 : f32 to vector<8x384xf32>
    %14 = arith.addf %13, %12 : vector<8x384xf32>
    %15 = arith.divf %13, %14 : vector<8x384xf32>
    %16 = vector.extract_strided_slice %9 {offsets = [0, 384], sizes = [8, 128], strides = [1, 1]} : vector<8x512xf32> to vector<8x128xf32>
    %17 = math.tanh %16 : vector<8x128xf32>
    %18 = vector.extract_strided_slice %15 {offsets = [0, 0], sizes = [8, 128], strides = [1, 1]} : vector<8x384xf32> to vector<8x128xf32>
    %19 = vector.extract_strided_slice %15 {offsets = [0, 128], sizes = [8, 128], strides = [1, 1]} : vector<8x384xf32> to vector<8x128xf32>
    %20 = vector.extract_strided_slice %15 {offsets = [0, 256], sizes = [8, 128], strides = [1, 1]} : vector<8x384xf32> to vector<8x128xf32>
    %c0_8 = arith.constant 0 : index
    %c0_9 = arith.constant 0 : index
    %21 = vector.load %arg7[%c0_8, %c0_9] : memref<8x128xf32, #tpu.memory_space<vmem>>, vector<8x128xf32>
    %22 = arith.mulf %19, %21 : vector<8x128xf32>
    %23 = arith.mulf %18, %17 : vector<8x128xf32>
    %24 = arith.addf %22, %23 : vector<8x128xf32>
    %25 = math.tanh %24 : vector<8x128xf32>
    %26 = arith.mulf %20, %25 : vector<8x128xf32>
    %c0_10 = arith.constant 0 : index
    %c0_11 = arith.constant 0 : index
    %27 = vector.load %arg7[%c0_10, %c0_11] : memref<8x128xf32, #tpu.memory_space<vmem>>, vector<8x128xf32>
    tpu.vector_store %arg7[%c0_10, %c0_11], %24 {strides = array<i32>} : memref<8x128xf32, #tpu.memory_space<vmem>>, vector<8x128xf32>,
    %c0_12 = arith.constant 0 : index
    %c0_13 = arith.constant 0 : index
    %28 = vector.load %arg6[%c0_12, %c0_13] : memref<8x128xf32, #tpu.memory_space<vmem>>, vector<8x128xf32>
    tpu.vector_store %arg6[%c0_12, %c0_13], %26 {strides = array<i32>} : memref<8x128xf32, #tpu.memory_space<vmem>>, vector<8x128xf32>,
    %29 = arith.index_cast %c0_i32_1 : i32 to index
    %c0_14 = arith.constant 0 : index
    %c0_15 = arith.constant 0 : index
    %30 = vector.load %arg8[%29, %c0_14, %c0_15] : memref<16x8x128xf32, #tpu.memory_space<vmem>>, vector<1x8x128xf32>
    %31 = vector.shape_cast %30 : vector<1x8x128xf32> to vector<8x128xf32>
    %32 = vector.shape_cast %26 : vector<8x128xf32> to vector<1x8x128xf32>
    tpu.vector_store %arg8[%29, %c0_14, %c0_15], %32 {strides = array<i32>} : memref<16x8x128xf32, #tpu.memory_space<vmem>>, vector<1x8x128xf32>,
    %c1_i32 = arith.constant 1 : i32
    %33 = arith.index_cast %c1_i32 : i32 to index
    %c0_16 = arith.constant 0 : index
    %c0_17 = arith.constant 0 : index
    %34 = vector.load %arg1[%33, %c0_16, %c0_17] : memref<16x8x512xf32, #tpu.memory_space<vmem>>, vector<1x8x512xf32>
    %35 = vector.shape_cast %34 : vector<1x8x512xf32> to vector<8x512xf32>
    %c0_18 = arith.constant 0 : index
    %c0_19 = arith.constant 0 : index
    %36 = vector.load %arg6[%c0_18, %c0_19] : memref<8x128xf32, #tpu.memory_space<vmem>>, vector<8x128xf32>
    %c0_20 = arith.constant 0 : index
    %c0_21 = arith.constant 0 : index
    %37 = vector.load %arg2[%c0_20, %c0_21] : memref<128x512xf32, #tpu.memory_space<vmem>>, vector<128x512xf32>
    %cst_22 = arith.constant dense<0.000000e+00> : vector<8x512xf32>
    %38 = tpu.matmul %36, %37, %cst_22 {dimension_numbers = #tpu.dot_dimension_numbers<[1], [0], [0], [1], [0, 0, 1, 1], [], []>} : vector<8x128xf32>, vector<128x512xf32>, vector<8x512xf32> -> vector<8x512xf32>
    %39 = arith.addf %35, %38 : vector<8x512xf32>
    %40 = vector.extract_strided_slice %39 {offsets = [0, 0], sizes = [8, 384], strides = [1, 1]} : vector<8x512xf32> to vector<8x384xf32>
    %41 = arith.negf %40 : vector<8x384xf32>
    %42 = math.exp %41 : vector<8x384xf32>
    %cst_23 = arith.constant 1.000000e+00 : f32
    %43 = vector.broadcast %cst_23 : f32 to vector<8x384xf32>
    %44 = arith.addf %43, %42 : vector<8x384xf32>
    %45 = arith.divf %43, %44 : vector<8x384xf32>
    %46 = vector.extract_strided_slice %39 {offsets = [0, 384], sizes = [8, 128], strides = [1, 1]} : vector<8x512xf32> to vector<8x128xf32>
    %47 = math.tanh %46 : vector<8x128xf32>
    %48 = vector.extract_strided_slice %45 {offsets = [0, 0], sizes = [8, 128], strides = [1, 1]} : vector<8x384xf32> to vector<8x128xf32>
    %49 = vector.extract_strided_slice %45 {offsets = [0, 128], sizes = [8, 128], strides = [1, 1]} : vector<8x384xf32> to vector<8x128xf32>
    %50 = vector.extract_strided_slice %45 {offsets = [0, 256], sizes = [8, 128], strides = [1, 1]} : vector<8x384xf32> to vector<8x128xf32>
    %c0_24 = arith.constant 0 : index
    %c0_25 = arith.constant 0 : index
    %51 = vector.load %arg7[%c0_24, %c0_25] : memref<8x128xf32, #tpu.memory_space<vmem>>, vector<8x128xf32>
    %52 = arith.mulf %49, %51 : vector<8x128xf32>
    %53 = arith.mulf %48, %47 : vector<8x128xf32>
    %54 = arith.addf %52, %53 : vector<8x128xf32>
    %55 = math.tanh %54 : vector<8x128xf32>
    %56 = arith.mulf %50, %55 : vector<8x128xf32>
    %c0_26 = arith.constant 0 : index
    %c0_27 = arith.constant 0 : index
    %57 = vector.load %arg7[%c0_26, %c0_27] : memref<8x128xf32, #tpu.memory_space<vmem>>, vector<8x128xf32>
    tpu.vector_store %arg7[%c0_26, %c0_27], %54 {strides = array<i32>} : memref<8x128xf32, #tpu.memory_space<vmem>>, vector<8x128xf32>,
    %c0_28 = arith.constant 0 : index
    %c0_29 = arith.constant 0 : index
    %58 = vector.load %arg6[%c0_28, %c0_29] : memref<8x128xf32, #tpu.memory_space<vmem>>, vector<8x128xf32>
    tpu.vector_store %arg6[%c0_28, %c0_29], %56 {strides = array<i32>} : memref<8x128xf32, #tpu.memory_space<vmem>>, vector<8x128xf32>,
    %59 = arith.index_cast %c1_i32 : i32 to index
    %c0_30 = arith.constant 0 : index
    %c0_31 = arith.constant 0 : index
    %60 = vector.load %arg8[%59, %c0_30, %c0_31] : memref<16x8x128xf32, #tpu.memory_space<vmem>>, vector<1x8x128xf32>
    %61 = vector.shape_cast %60 : vector<1x8x128xf32> to vector<8x128xf32>
    %62 = vector.shape_cast %56 : vector<8x128xf32> to vector<1x8x128xf32>
    tpu.vector_store %arg8[%59, %c0_30, %c0_31], %62 {strides = array<i32>} : memref<16x8x128xf32, #tpu.memory_space<vmem>>, vector<1x8x128xf32>,
    %c2_i32 = arith.constant 2 : i32
    %63 = arith.index_cast %c2_i32 : i32 to index
    %c0_32 = arith.constant 0 : index
    %c0_33 = arith.constant 0 : index
    %64 = vector.load %arg1[%63, %c0_32, %c0_33] : memref<16x8x512xf32, #tpu.memory_space<vmem>>, vector<1x8x512xf32>
    %65 = vector.shape_cast %64 : vector<1x8x512xf32> to vector<8x512xf32>
    %c0_34 = arith.constant 0 : index
    %c0_35 = arith.constant 0 : index
    %66 = vector.load %arg6[%c0_34, %c0_35] : memref<8x128xf32, #tpu.memory_space<vmem>>, vector<8x128xf32>
    %c0_36 = arith.constant 0 : index
    %c0_37 = arith.constant 0 : index
    %67 = vector.load %arg2[%c0_36, %c0_37] : memref<128x512xf32, #tpu.memory_space<vmem>>, vector<128x512xf32>
    %cst_38 = arith.constant dense<0.000000e+00> : vector<8x512xf32>
    %68 = tpu.matmul %66, %67, %cst_38 {dimension_numbers = #tpu.dot_dimension_numbers<[1], [0], [0], [1], [0, 0, 1, 1], [], []>} : vector<8x128xf32>, vector<128x512xf32>, vector<8x512xf32> -> vector<8x512xf32>
    %69 = arith.addf %65, %68 : vector<8x512xf32>
    %70 = vector.extract_strided_slice %69 {offsets = [0, 0], sizes = [8, 384], strides = [1, 1]} : vector<8x512xf32> to vector<8x384xf32>
    %71 = arith.negf %70 : vector<8x384xf32>
    %72 = math.exp %71 : vector<8x384xf32>
    %cst_39 = arith.constant 1.000000e+00 : f32
    %73 = vector.broadcast %cst_39 : f32 to vector<8x384xf32>
    %74 = arith.addf %73, %72 : vector<8x384xf32>
    %75 = arith.divf %73, %74 : vector<8x384xf32>
    %76 = vector.extract_strided_slice %69 {offsets = [0, 384], sizes = [8, 128], strides = [1, 1]} : vector<8x512xf32> to vector<8x128xf32>
    %77 = math.tanh %76 : vector<8x128xf32>
    %78 = vector.extract_strided_slice %75 {offsets = [0, 0], sizes = [8, 128], strides = [1, 1]} : vector<8x384xf32> to vector<8x128xf32>
    %79 = vector.extract_strided_slice %75 {offsets = [0, 128], sizes = [8, 128], strides = [1, 1]} : vector<8x384xf32> to vector<8x128xf32>
    %80 = vector.extract_strided_slice %75 {offsets = [0, 256], sizes = [8, 128], strides = [1, 1]} : vector<8x384xf32> to vector<8x128xf32>
    %c0_40 = arith.constant 0 : index
    %c0_41 = arith.constant 0 : index
    %81 = vector.load %arg7[%c0_40, %c0_41] : memref<8x128xf32, #tpu.memory_space<vmem>>, vector<8x128xf32>
    %82 = arith.mulf %79, %81 : vector<8x128xf32>
    %83 = arith.mulf %78, %77 : vector<8x128xf32>
    %84 = arith.addf %82, %83 : vector<8x128xf32>
    %85 = math.tanh %84 : vector<8x128xf32>
    %86 = arith.mulf %80, %85 : vector<8x128xf32>
    %c0_42 = arith.constant 0 : index
    %c0_43 = arith.constant 0 : index
    %87 = vector.load %arg7[%c0_42, %c0_43] : memref<8x128xf32, #tpu.memory_space<vmem>>, vector<8x128xf32>
    tpu.vector_store %arg7[%c0_42, %c0_43], %84 {strides = array<i32>} : memref<8x128xf32, #tpu.memory_space<vmem>>, vector<8x128xf32>,
    %c0_44 = arith.constant 0 : index
    %c0_45 = arith.constant 0 : index
    %88 = vector.load %arg6[%c0_44, %c0_45] : memref<8x128xf32, #tpu.memory_space<vmem>>, vector<8x128xf32>
    tpu.vector_store %arg6[%c0_44, %c0_45], %86 {strides = array<i32>} : memref<8x128xf32, #tpu.memory_space<vmem>>, vector<8x128xf32>,
    %89 = arith.index_cast %c2_i32 : i32 to index
    %c0_46 = arith.constant 0 : index
    %c0_47 = arith.constant 0 : index
    %90 = vector.load %arg8[%89, %c0_46, %c0_47] : memref<16x8x128xf32, #tpu.memory_space<vmem>>, vector<1x8x128xf32>
    %91 = vector.shape_cast %90 : vector<1x8x128xf32> to vector<8x128xf32>
    %92 = vector.shape_cast %86 : vector<8x128xf32> to vector<1x8x128xf32>
    tpu.vector_store %arg8[%89, %c0_46, %c0_47], %92 {strides = array<i32>} : memref<16x8x128xf32, #tpu.memory_space<vmem>>, vector<1x8x128xf32>,
    %c3_i32 = arith.constant 3 : i32
    %93 = arith.index_cast %c3_i32 : i32 to index
    %c0_48 = arith.constant 0 : index
    %c0_49 = arith.constant 0 : index
    %94 = vector.load %arg1[%93, %c0_48, %c0_49] : memref<16x8x512xf32, #tpu.memory_space<vmem>>, vector<1x8x512xf32>
    %95 = vector.shape_cast %94 : vector<1x8x512xf32> to vector<8x512xf32>
    %c0_50 = arith.constant 0 : index
    %c0_51 = arith.constant 0 : index
    %96 = vector.load %arg6[%c0_50, %c0_51] : memref<8x128xf32, #tpu.memory_space<vmem>>, vector<8x128xf32>
    %c0_52 = arith.constant 0 : index
    %c0_53 = arith.constant 0 : index
    %97 = vector.load %arg2[%c0_52, %c0_53] : memref<128x512xf32, #tpu.memory_space<vmem>>, vector<128x512xf32>
    %cst_54 = arith.constant dense<0.000000e+00> : vector<8x512xf32>
    %98 = tpu.matmul %96, %97, %cst_54 {dimension_numbers = #tpu.dot_dimension_numbers<[1], [0], [0], [1], [0, 0, 1, 1], [], []>} : vector<8x128xf32>, vector<128x512xf32>, vector<8x512xf32> -> vector<8x512xf32>
    %99 = arith.addf %95, %98 : vector<8x512xf32>
    %100 = vector.extract_strided_slice %99 {offsets = [0, 0], sizes = [8, 384], strides = [1, 1]} : vector<8x512xf32> to vector<8x384xf32>
    %101 = arith.negf %100 : vector<8x384xf32>
    %102 = math.exp %101 : vector<8x384xf32>
    %cst_55 = arith.constant 1.000000e+00 : f32
    %103 = vector.broadcast %cst_55 : f32 to vector<8x384xf32>
    %104 = arith.addf %103, %102 : vector<8x384xf32>
    %105 = arith.divf %103, %104 : vector<8x384xf32>
    %106 = vector.extract_strided_slice %99 {offsets = [0, 384], sizes = [8, 128], strides = [1, 1]} : vector<8x512xf32> to vector<8x128xf32>
    %107 = math.tanh %106 : vector<8x128xf32>
    %108 = vector.extract_strided_slice %105 {offsets = [0, 0], sizes = [8, 128], strides = [1, 1]} : vector<8x384xf32> to vector<8x128xf32>
    %109 = vector.extract_strided_slice %105 {offsets = [0, 128], sizes = [8, 128], strides = [1, 1]} : vector<8x384xf32> to vector<8x128xf32>
    %110 = vector.extract_strided_slice %105 {offsets = [0, 256], sizes = [8, 128], strides = [1, 1]} : vector<8x384xf32> to vector<8x128xf32>
    %c0_56 = arith.constant 0 : index
    %c0_57 = arith.constant 0 : index
    %111 = vector.load %arg7[%c0_56, %c0_57] : memref<8x128xf32, #tpu.memory_space<vmem>>, vector<8x128xf32>
    %112 = arith.mulf %109, %111 : vector<8x128xf32>
    %113 = arith.mulf %108, %107 : vector<8x128xf32>
    %114 = arith.addf %112, %113 : vector<8x128xf32>
    %115 = math.tanh %114 : vector<8x128xf32>
    %116 = arith.mulf %110, %115 : vector<8x128xf32>
    %c0_58 = arith.constant 0 : index
    %c0_59 = arith.constant 0 : index
    %117 = vector.load %arg7[%c0_58, %c0_59] : memref<8x128xf32, #tpu.memory_space<vmem>>, vector<8x128xf32>
    tpu.vector_store %arg7[%c0_58, %c0_59], %114 {strides = array<i32>} : memref<8x128xf32, #tpu.memory_space<vmem>>, vector<8x128xf32>,
    %c0_60 = arith.constant 0 : index
    %c0_61 = arith.constant 0 : index
    %118 = vector.load %arg6[%c0_60, %c0_61] : memref<8x128xf32, #tpu.memory_space<vmem>>, vector<8x128xf32>
    tpu.vector_store %arg6[%c0_60, %c0_61], %116 {strides = array<i32>} : memref<8x128xf32, #tpu.memory_space<vmem>>, vector<8x128xf32>,
    %119 = arith.index_cast %c3_i32 : i32 to index
    %c0_62 = arith.constant 0 : index
    %c0_63 = arith.constant 0 : index
    %120 = vector.load %arg8[%119, %c0_62, %c0_63] : memref<16x8x128xf32, #tpu.memory_space<vmem>>, vector<1x8x128xf32>
    %121 = vector.shape_cast %120 : vector<1x8x128xf32> to vector<8x128xf32>
    %122 = vector.shape_cast %116 : vector<8x128xf32> to vector<1x8x128xf32>
    tpu.vector_store %arg8[%119, %c0_62, %c0_63], %122 {strides = array<i32>} : memref<16x8x128xf32, #tpu.memory_space<vmem>>, vector<1x8x128xf32>,
    %c4_i32 = arith.constant 4 : i32
    %123 = arith.index_cast %c4_i32 : i32 to index
    %c0_64 = arith.constant 0 : index
    %c0_65 = arith.constant 0 : index
    %124 = vector.load %arg1[%123, %c0_64, %c0_65] : memref<16x8x512xf32, #tpu.memory_space<vmem>>, vector<1x8x512xf32>
    %125 = vector.shape_cast %124 : vector<1x8x512xf32> to vector<8x512xf32>
    %c0_66 = arith.constant 0 : index
    %c0_67 = arith.constant 0 : index
    %126 = vector.load %arg6[%c0_66, %c0_67] : memref<8x128xf32, #tpu.memory_space<vmem>>, vector<8x128xf32>
    %c0_68 = arith.constant 0 : index
    %c0_69 = arith.constant 0 : index
    %127 = vector.load %arg2[%c0_68, %c0_69] : memref<128x512xf32, #tpu.memory_space<vmem>>, vector<128x512xf32>
    %cst_70 = arith.constant dense<0.000000e+00> : vector<8x512xf32>
    %128 = tpu.matmul %126, %127, %cst_70 {dimension_numbers = #tpu.dot_dimension_numbers<[1], [0], [0], [1], [0, 0, 1, 1], [], []>} : vector<8x128xf32>, vector<128x512xf32>, vector<8x512xf32> -> vector<8x512xf32>
    %129 = arith.addf %125, %128 : vector<8x512xf32>
    %130 = vector.extract_strided_slice %129 {offsets = [0, 0], sizes = [8, 384], strides = [1, 1]} : vector<8x512xf32> to vector<8x384xf32>
    %131 = arith.negf %130 : vector<8x384xf32>
    %132 = math.exp %131 : vector<8x384xf32>
    %cst_71 = arith.constant 1.000000e+00 : f32
    %133 = vector.broadcast %cst_71 : f32 to vector<8x384xf32>
    %134 = arith.addf %133, %132 : vector<8x384xf32>
    %135 = arith.divf %133, %134 : vector<8x384xf32>
    %136 = vector.extract_strided_slice %129 {offsets = [0, 384], sizes = [8, 128], strides = [1, 1]} : vector<8x512xf32> to vector<8x128xf32>
    %137 = math.tanh %136 : vector<8x128xf32>
    %138 = vector.extract_strided_slice %135 {offsets = [0, 0], sizes = [8, 128], strides = [1, 1]} : vector<8x384xf32> to vector<8x128xf32>
    %139 = vector.extract_strided_slice %135 {offsets = [0, 128], sizes = [8, 128], strides = [1, 1]} : vector<8x384xf32> to vector<8x128xf32>
    %140 = vector.extract_strided_slice %135 {offsets = [0, 256], sizes = [8, 128], strides = [1, 1]} : vector<8x384xf32> to vector<8x128xf32>
    %c0_72 = arith.constant 0 : index
    %c0_73 = arith.constant 0 : index
    %141 = vector.load %arg7[%c0_72, %c0_73] : memref<8x128xf32, #tpu.memory_space<vmem>>, vector<8x128xf32>
    %142 = arith.mulf %139, %141 : vector<8x128xf32>
    %143 = arith.mulf %138, %137 : vector<8x128xf32>
    %144 = arith.addf %142, %143 : vector<8x128xf32>
    %145 = math.tanh %144 : vector<8x128xf32>
    %146 = arith.mulf %140, %145 : vector<8x128xf32>
    %c0_74 = arith.constant 0 : index
    %c0_75 = arith.constant 0 : index
    %147 = vector.load %arg7[%c0_74, %c0_75] : memref<8x128xf32, #tpu.memory_space<vmem>>, vector<8x128xf32>
    tpu.vector_store %arg7[%c0_74, %c0_75], %144 {strides = array<i32>} : memref<8x128xf32, #tpu.memory_space<vmem>>, vector<8x128xf32>,
    %c0_76 = arith.constant 0 : index
    %c0_77 = arith.constant 0 : index
    %148 = vector.load %arg6[%c0_76, %c0_77] : memref<8x128xf32, #tpu.memory_space<vmem>>, vector<8x128xf32>
    tpu.vector_store %arg6[%c0_76, %c0_77], %146 {strides = array<i32>} : memref<8x128xf32, #tpu.memory_space<vmem>>, vector<8x128xf32>,
    %149 = arith.index_cast %c4_i32 : i32 to index
    %c0_78 = arith.constant 0 : index
    %c0_79 = arith.constant 0 : index
    %150 = vector.load %arg8[%149, %c0_78, %c0_79] : memref<16x8x128xf32, #tpu.memory_space<vmem>>, vector<1x8x128xf32>
    %151 = vector.shape_cast %150 : vector<1x8x128xf32> to vector<8x128xf32>
    %152 = vector.shape_cast %146 : vector<8x128xf32> to vector<1x8x128xf32>
    tpu.vector_store %arg8[%149, %c0_78, %c0_79], %152 {strides = array<i32>} : memref<16x8x128xf32, #tpu.memory_space<vmem>>, vector<1x8x128xf32>,
    %c5_i32 = arith.constant 5 : i32
    %153 = arith.index_cast %c5_i32 : i32 to index
    %c0_80 = arith.constant 0 : index
    %c0_81 = arith.constant 0 : index
    %154 = vector.load %arg1[%153, %c0_80, %c0_81] : memref<16x8x512xf32, #tpu.memory_space<vmem>>, vector<1x8x512xf32>
    %155 = vector.shape_cast %154 : vector<1x8x512xf32> to vector<8x512xf32>
    %c0_82 = arith.constant 0 : index
    %c0_83 = arith.constant 0 : index
    %156 = vector.load %arg6[%c0_82, %c0_83] : memref<8x128xf32, #tpu.memory_space<vmem>>, vector<8x128xf32>
    %c0_84 = arith.constant 0 : index
    %c0_85 = arith.constant 0 : index
    %157 = vector.load %arg2[%c0_84, %c0_85] : memref<128x512xf32, #tpu.memory_space<vmem>>, vector<128x512xf32>
    %cst_86 = arith.constant dense<0.000000e+00> : vector<8x512xf32>
    %158 = tpu.matmul %156, %157, %cst_86 {dimension_numbers = #tpu.dot_dimension_numbers<[1], [0], [0], [1], [0, 0, 1, 1], [], []>} : vector<8x128xf32>, vector<128x512xf32>, vector<8x512xf32> -> vector<8x512xf32>
    %159 = arith.addf %155, %158 : vector<8x512xf32>
    %160 = vector.extract_strided_slice %159 {offsets = [0, 0], sizes = [8, 384], strides = [1, 1]} : vector<8x512xf32> to vector<8x384xf32>
    %161 = arith.negf %160 : vector<8x384xf32>
    %162 = math.exp %161 : vector<8x384xf32>
    %cst_87 = arith.constant 1.000000e+00 : f32
    %163 = vector.broadcast %cst_87 : f32 to vector<8x384xf32>
    %164 = arith.addf %163, %162 : vector<8x384xf32>
    %165 = arith.divf %163, %164 : vector<8x384xf32>
    %166 = vector.extract_strided_slice %159 {offsets = [0, 384], sizes = [8, 128], strides = [1, 1]} : vector<8x512xf32> to vector<8x128xf32>
    %167 = math.tanh %166 : vector<8x128xf32>
    %168 = vector.extract_strided_slice %165 {offsets = [0, 0], sizes = [8, 128], strides = [1, 1]} : vector<8x384xf32> to vector<8x128xf32>
    %169 = vector.extract_strided_slice %165 {offsets = [0, 128], sizes = [8, 128], strides = [1, 1]} : vector<8x384xf32> to vector<8x128xf32>
    %170 = vector.extract_strided_slice %165 {offsets = [0, 256], sizes = [8, 128], strides = [1, 1]} : vector<8x384xf32> to vector<8x128xf32>
    %c0_88 = arith.constant 0 : index
    %c0_89 = arith.constant 0 : index
    %171 = vector.load %arg7[%c0_88, %c0_89] : memref<8x128xf32, #tpu.memory_space<vmem>>, vector<8x128xf32>
    %172 = arith.mulf %169, %171 : vector<8x128xf32>
    %173 = arith.mulf %168, %167 : vector<8x128xf32>
    %174 = arith.addf %172, %173 : vector<8x128xf32>
    %175 = math.tanh %174 : vector<8x128xf32>
    %176 = arith.mulf %170, %175 : vector<8x128xf32>
    %c0_90 = arith.constant 0 : index
    %c0_91 = arith.constant 0 : index
    %177 = vector.load %arg7[%c0_90, %c0_91] : memref<8x128xf32, #tpu.memory_space<vmem>>, vector<8x128xf32>
    tpu.vector_store %arg7[%c0_90, %c0_91], %174 {strides = array<i32>} : memref<8x128xf32, #tpu.memory_space<vmem>>, vector<8x128xf32>,
    %c0_92 = arith.constant 0 : index
    %c0_93 = arith.constant 0 : index
    %178 = vector.load %arg6[%c0_92, %c0_93] : memref<8x128xf32, #tpu.memory_space<vmem>>, vector<8x128xf32>
    tpu.vector_store %arg6[%c0_92, %c0_93], %176 {strides = array<i32>} : memref<8x128xf32, #tpu.memory_space<vmem>>, vector<8x128xf32>,
    %179 = arith.index_cast %c5_i32 : i32 to index
    %c0_94 = arith.constant 0 : index
    %c0_95 = arith.constant 0 : index
    %180 = vector.load %arg8[%179, %c0_94, %c0_95] : memref<16x8x128xf32, #tpu.memory_space<vmem>>, vector<1x8x128xf32>
    %181 = vector.shape_cast %180 : vector<1x8x128xf32> to vector<8x128xf32>
    %182 = vector.shape_cast %176 : vector<8x128xf32> to vector<1x8x128xf32>
    tpu.vector_store %arg8[%179, %c0_94, %c0_95], %182 {strides = array<i32>} : memref<16x8x128xf32, #tpu.memory_space<vmem>>, vector<1x8x128xf32>,
    %c6_i32 = arith.constant 6 : i32
    %183 = arith.index_cast %c6_i32 : i32 to index
    %c0_96 = arith.constant 0 : index
    %c0_97 = arith.constant 0 : index
    %184 = vector.load %arg1[%183, %c0_96, %c0_97] : memref<16x8x512xf32, #tpu.memory_space<vmem>>, vector<1x8x512xf32>
    %185 = vector.shape_cast %184 : vector<1x8x512xf32> to vector<8x512xf32>
    %c0_98 = arith.constant 0 : index
    %c0_99 = arith.constant 0 : index
    %186 = vector.load %arg6[%c0_98, %c0_99] : memref<8x128xf32, #tpu.memory_space<vmem>>, vector<8x128xf32>
    %c0_100 = arith.constant 0 : index
    %c0_101 = arith.constant 0 : index
    %187 = vector.load %arg2[%c0_100, %c0_101] : memref<128x512xf32, #tpu.memory_space<vmem>>, vector<128x512xf32>
    %cst_102 = arith.constant dense<0.000000e+00> : vector<8x512xf32>
    %188 = tpu.matmul %186, %187, %cst_102 {dimension_numbers = #tpu.dot_dimension_numbers<[1], [0], [0], [1], [0, 0, 1, 1], [], []>} : vector<8x128xf32>, vector<128x512xf32>, vector<8x512xf32> -> vector<8x512xf32>
    %189 = arith.addf %185, %188 : vector<8x512xf32>
    %190 = vector.extract_strided_slice %189 {offsets = [0, 0], sizes = [8, 384], strides = [1, 1]} : vector<8x512xf32> to vector<8x384xf32>
    %191 = arith.negf %190 : vector<8x384xf32>
    %192 = math.exp %191 : vector<8x384xf32>
    %cst_103 = arith.constant 1.000000e+00 : f32
    %193 = vector.broadcast %cst_103 : f32 to vector<8x384xf32>
    %194 = arith.addf %193, %192 : vector<8x384xf32>
    %195 = arith.divf %193, %194 : vector<8x384xf32>
    %196 = vector.extract_strided_slice %189 {offsets = [0, 384], sizes = [8, 128], strides = [1, 1]} : vector<8x512xf32> to vector<8x128xf32>
    %197 = math.tanh %196 : vector<8x128xf32>
    %198 = vector.extract_strided_slice %195 {offsets = [0, 0], sizes = [8, 128], strides = [1, 1]} : vector<8x384xf32> to vector<8x128xf32>
    %199 = vector.extract_strided_slice %195 {offsets = [0, 128], sizes = [8, 128], strides = [1, 1]} : vector<8x384xf32> to vector<8x128xf32>
    %200 = vector.extract_strided_slice %195 {offsets = [0, 256], sizes = [8, 128], strides = [1, 1]} : vector<8x384xf32> to vector<8x128xf32>
    %c0_104 = arith.constant 0 : index
    %c0_105 = arith.constant 0 : index
    %201 = vector.load %arg7[%c0_104, %c0_105] : memref<8x128xf32, #tpu.memory_space<vmem>>, vector<8x128xf32>
    %202 = arith.mulf %199, %201 : vector<8x128xf32>
    %203 = arith.mulf %198, %197 : vector<8x128xf32>
    %204 = arith.addf %202, %203 : vector<8x128xf32>
    %205 = math.tanh %204 : vector<8x128xf32>
    %206 = arith.mulf %200, %205 : vector<8x128xf32>
    %c0_106 = arith.constant 0 : index
    %c0_107 = arith.constant 0 : index
    %207 = vector.load %arg7[%c0_106, %c0_107] : memref<8x128xf32, #tpu.memory_space<vmem>>, vector<8x128xf32>
    tpu.vector_store %arg7[%c0_106, %c0_107], %204 {strides = array<i32>} : memref<8x128xf32, #tpu.memory_space<vmem>>, vector<8x128xf32>,
    %c0_108 = arith.constant 0 : index
    %c0_109 = arith.constant 0 : index
    %208 = vector.load %arg6[%c0_108, %c0_109] : memref<8x128xf32, #tpu.memory_space<vmem>>, vector<8x128xf32>
    tpu.vector_store %arg6[%c0_108, %c0_109], %206 {strides = array<i32>} : memref<8x128xf32, #tpu.memory_space<vmem>>, vector<8x128xf32>,
    %209 = arith.index_cast %c6_i32 : i32 to index
    %c0_110 = arith.constant 0 : index
    %c0_111 = arith.constant 0 : index
    %210 = vector.load %arg8[%209, %c0_110, %c0_111] : memref<16x8x128xf32, #tpu.memory_space<vmem>>, vector<1x8x128xf32>
    %211 = vector.shape_cast %210 : vector<1x8x128xf32> to vector<8x128xf32>
    %212 = vector.shape_cast %206 : vector<8x128xf32> to vector<1x8x128xf32>
    tpu.vector_store %arg8[%209, %c0_110, %c0_111], %212 {strides = array<i32>} : memref<16x8x128xf32, #tpu.memory_space<vmem>>, vector<1x8x128xf32>,
    %c7_i32 = arith.constant 7 : i32
    %213 = arith.index_cast %c7_i32 : i32 to index
    %c0_112 = arith.constant 0 : index
    %c0_113 = arith.constant 0 : index
    %214 = vector.load %arg1[%213, %c0_112, %c0_113] : memref<16x8x512xf32, #tpu.memory_space<vmem>>, vector<1x8x512xf32>
    %215 = vector.shape_cast %214 : vector<1x8x512xf32> to vector<8x512xf32>
    %c0_114 = arith.constant 0 : index
    %c0_115 = arith.constant 0 : index
    %216 = vector.load %arg6[%c0_114, %c0_115] : memref<8x128xf32, #tpu.memory_space<vmem>>, vector<8x128xf32>
    %c0_116 = arith.constant 0 : index
    %c0_117 = arith.constant 0 : index
    %217 = vector.load %arg2[%c0_116, %c0_117] : memref<128x512xf32, #tpu.memory_space<vmem>>, vector<128x512xf32>
    %cst_118 = arith.constant dense<0.000000e+00> : vector<8x512xf32>
    %218 = tpu.matmul %216, %217, %cst_118 {dimension_numbers = #tpu.dot_dimension_numbers<[1], [0], [0], [1], [0, 0, 1, 1], [], []>} : vector<8x128xf32>, vector<128x512xf32>, vector<8x512xf32> -> vector<8x512xf32>
    %219 = arith.addf %215, %218 : vector<8x512xf32>
    %220 = vector.extract_strided_slice %219 {offsets = [0, 0], sizes = [8, 384], strides = [1, 1]} : vector<8x512xf32> to vector<8x384xf32>
    %221 = arith.negf %220 : vector<8x384xf32>
    %222 = math.exp %221 : vector<8x384xf32>
    %cst_119 = arith.constant 1.000000e+00 : f32
    %223 = vector.broadcast %cst_119 : f32 to vector<8x384xf32>
    %224 = arith.addf %223, %222 : vector<8x384xf32>
    %225 = arith.divf %223, %224 : vector<8x384xf32>
    %226 = vector.extract_strided_slice %219 {offsets = [0, 384], sizes = [8, 128], strides = [1, 1]} : vector<8x512xf32> to vector<8x128xf32>
    %227 = math.tanh %226 : vector<8x128xf32>
    %228 = vector.extract_strided_slice %225 {offsets = [0, 0], sizes = [8, 128], strides = [1, 1]} : vector<8x384xf32> to vector<8x128xf32>
    %229 = vector.extract_strided_slice %225 {offsets = [0, 128], sizes = [8, 128], strides = [1, 1]} : vector<8x384xf32> to vector<8x128xf32>
    %230 = vector.extract_strided_slice %225 {offsets = [0, 256], sizes = [8, 128], strides = [1, 1]} : vector<8x384xf32> to vector<8x128xf32>
    %c0_120 = arith.constant 0 : index
    %c0_121 = arith.constant 0 : index
    %231 = vector.load %arg7[%c0_120, %c0_121] : memref<8x128xf32, #tpu.memory_space<vmem>>, vector<8x128xf32>
    %232 = arith.mulf %229, %231 : vector<8x128xf32>
    %233 = arith.mulf %228, %227 : vector<8x128xf32>
    %234 = arith.addf %232, %233 : vector<8x128xf32>
    %235 = math.tanh %234 : vector<8x128xf32>
    %236 = arith.mulf %230, %235 : vector<8x128xf32>
    %c0_122 = arith.constant 0 : index
    %c0_123 = arith.constant 0 : index
    %237 = vector.load %arg7[%c0_122, %c0_123] : memref<8x128xf32, #tpu.memory_space<vmem>>, vector<8x128xf32>
    tpu.vector_store %arg7[%c0_122, %c0_123], %234 {strides = array<i32>} : memref<8x128xf32, #tpu.memory_space<vmem>>, vector<8x128xf32>,
    %c0_124 = arith.constant 0 : index
    %c0_125 = arith.constant 0 : index
    %238 = vector.load %arg6[%c0_124, %c0_125] : memref<8x128xf32, #tpu.memory_space<vmem>>, vector<8x128xf32>
    tpu.vector_store %arg6[%c0_124, %c0_125], %236 {strides = array<i32>} : memref<8x128xf32, #tpu.memory_space<vmem>>, vector<8x128xf32>,
    %239 = arith.index_cast %c7_i32 : i32 to index
    %c0_126 = arith.constant 0 : index
    %c0_127 = arith.constant 0 : index
    %240 = vector.load %arg8[%239, %c0_126, %c0_127] : memref<16x8x128xf32, #tpu.memory_space<vmem>>, vector<1x8x128xf32>
    %241 = vector.shape_cast %240 : vector<1x8x128xf32> to vector<8x128xf32>
    %242 = vector.shape_cast %236 : vector<8x128xf32> to vector<1x8x128xf32>
    tpu.vector_store %arg8[%239, %c0_126, %c0_127], %242 {strides = array<i32>} : memref<16x8x128xf32, #tpu.memory_space<vmem>>, vector<1x8x128xf32>,
    %c8_i32 = arith.constant 8 : i32
    %243 = arith.index_cast %c8_i32 : i32 to index
    %c0_128 = arith.constant 0 : index
    %c0_129 = arith.constant 0 : index
    %244 = vector.load %arg1[%243, %c0_128, %c0_129] : memref<16x8x512xf32, #tpu.memory_space<vmem>>, vector<1x8x512xf32>
    %245 = vector.shape_cast %244 : vector<1x8x512xf32> to vector<8x512xf32>
    %c0_130 = arith.constant 0 : index
    %c0_131 = arith.constant 0 : index
    %246 = vector.load %arg6[%c0_130, %c0_131] : memref<8x128xf32, #tpu.memory_space<vmem>>, vector<8x128xf32>
    %c0_132 = arith.constant 0 : index
    %c0_133 = arith.constant 0 : index
    %247 = vector.load %arg2[%c0_132, %c0_133] : memref<128x512xf32, #tpu.memory_space<vmem>>, vector<128x512xf32>
    %cst_134 = arith.constant dense<0.000000e+00> : vector<8x512xf32>
    %248 = tpu.matmul %246, %247, %cst_134 {dimension_numbers = #tpu.dot_dimension_numbers<[1], [0], [0], [1], [0, 0, 1, 1], [], []>} : vector<8x128xf32>, vector<128x512xf32>, vector<8x512xf32> -> vector<8x512xf32>
    %249 = arith.addf %245, %248 : vector<8x512xf32>
    %250 = vector.extract_strided_slice %249 {offsets = [0, 0], sizes = [8, 384], strides = [1, 1]} : vector<8x512xf32> to vector<8x384xf32>
    %251 = arith.negf %250 : vector<8x384xf32>
    %252 = math.exp %251 : vector<8x384xf32>
    %cst_135 = arith.constant 1.000000e+00 : f32
    %253 = vector.broadcast %cst_135 : f32 to vector<8x384xf32>
    %254 = arith.addf %253, %252 : vector<8x384xf32>
    %255 = arith.divf %253, %254 : vector<8x384xf32>
    %256 = vector.extract_strided_slice %249 {offsets = [0, 384], sizes = [8, 128], strides = [1, 1]} : vector<8x512xf32> to vector<8x128xf32>
    %257 = math.tanh %256 : vector<8x128xf32>
    %258 = vector.extract_strided_slice %255 {offsets = [0, 0], sizes = [8, 128], strides = [1, 1]} : vector<8x384xf32> to vector<8x128xf32>
    %259 = vector.extract_strided_slice %255 {offsets = [0, 128], sizes = [8, 128], strides = [1, 1]} : vector<8x384xf32> to vector<8x128xf32>
    %260 = vector.extract_strided_slice %255 {offsets = [0, 256], sizes = [8, 128], strides = [1, 1]} : vector<8x384xf32> to vector<8x128xf32>
    %c0_136 = arith.constant 0 : index
    %c0_137 = arith.constant 0 : index
    %261 = vector.load %arg7[%c0_136, %c0_137] : memref<8x128xf32, #tpu.memory_space<vmem>>, vector<8x128xf32>
    %262 = arith.mulf %259, %261 : vector<8x128xf32>
    %263 = arith.mulf %258, %257 : vector<8x128xf32>
    %264 = arith.addf %262, %263 : vector<8x128xf32>
    %265 = math.tanh %264 : vector<8x128xf32>
    %266 = arith.mulf %260, %265 : vector<8x128xf32>
    %c0_138 = arith.constant 0 : index
    %c0_139 = arith.constant 0 : index
    %267 = vector.load %arg7[%c0_138, %c0_139] : memref<8x128xf32, #tpu.memory_space<vmem>>, vector<8x128xf32>
    tpu.vector_store %arg7[%c0_138, %c0_139], %264 {strides = array<i32>} : memref<8x128xf32, #tpu.memory_space<vmem>>, vector<8x128xf32>,
    %c0_140 = arith.constant 0 : index
    %c0_141 = arith.constant 0 : index
    %268 = vector.load %arg6[%c0_140, %c0_141] : memref<8x128xf32, #tpu.memory_space<vmem>>, vector<8x128xf32>
    tpu.vector_store %arg6[%c0_140, %c0_141], %266 {strides = array<i32>} : memref<8x128xf32, #tpu.memory_space<vmem>>, vector<8x128xf32>,
    %269 = arith.index_cast %c8_i32 : i32 to index
    %c0_142 = arith.constant 0 : index
    %c0_143 = arith.constant 0 : index
    %270 = vector.load %arg8[%269, %c0_142, %c0_143] : memref<16x8x128xf32, #tpu.memory_space<vmem>>, vector<1x8x128xf32>
    %271 = vector.shape_cast %270 : vector<1x8x128xf32> to vector<8x128xf32>
    %272 = vector.shape_cast %266 : vector<8x128xf32> to vector<1x8x128xf32>
    tpu.vector_store %arg8[%269, %c0_142, %c0_143], %272 {strides = array<i32>} : memref<16x8x128xf32, #tpu.memory_space<vmem>>, vector<1x8x128xf32>,
    %c9_i32 = arith.constant 9 : i32
    %273 = arith.index_cast %c9_i32 : i32 to index
    %c0_144 = arith.constant 0 : index
    %c0_145 = arith.constant 0 : index
    %274 = vector.load %arg1[%273, %c0_144, %c0_145] : memref<16x8x512xf32, #tpu.memory_space<vmem>>, vector<1x8x512xf32>
    %275 = vector.shape_cast %274 : vector<1x8x512xf32> to vector<8x512xf32>
    %c0_146 = arith.constant 0 : index
    %c0_147 = arith.constant 0 : index
    %276 = vector.load %arg6[%c0_146, %c0_147] : memref<8x128xf32, #tpu.memory_space<vmem>>, vector<8x128xf32>
    %c0_148 = arith.constant 0 : index
    %c0_149 = arith.constant 0 : index
    %277 = vector.load %arg2[%c0_148, %c0_149] : memref<128x512xf32, #tpu.memory_space<vmem>>, vector<128x512xf32>
    %cst_150 = arith.constant dense<0.000000e+00> : vector<8x512xf32>
    %278 = tpu.matmul %276, %277, %cst_150 {dimension_numbers = #tpu.dot_dimension_numbers<[1], [0], [0], [1], [0, 0, 1, 1], [], []>} : vector<8x128xf32>, vector<128x512xf32>, vector<8x512xf32> -> vector<8x512xf32>
    %279 = arith.addf %275, %278 : vector<8x512xf32>
    %280 = vector.extract_strided_slice %279 {offsets = [0, 0], sizes = [8, 384], strides = [1, 1]} : vector<8x512xf32> to vector<8x384xf32>
    %281 = arith.negf %280 : vector<8x384xf32>
    %282 = math.exp %281 : vector<8x384xf32>
    %cst_151 = arith.constant 1.000000e+00 : f32
    %283 = vector.broadcast %cst_151 : f32 to vector<8x384xf32>
    %284 = arith.addf %283, %282 : vector<8x384xf32>
    %285 = arith.divf %283, %284 : vector<8x384xf32>
    %286 = vector.extract_strided_slice %279 {offsets = [0, 384], sizes = [8, 128], strides = [1, 1]} : vector<8x512xf32> to vector<8x128xf32>
    %287 = math.tanh %286 : vector<8x128xf32>
    %288 = vector.extract_strided_slice %285 {offsets = [0, 0], sizes = [8, 128], strides = [1, 1]} : vector<8x384xf32> to vector<8x128xf32>
    %289 = vector.extract_strided_slice %285 {offsets = [0, 128], sizes = [8, 128], strides = [1, 1]} : vector<8x384xf32> to vector<8x128xf32>
    %290 = vector.extract_strided_slice %285 {offsets = [0, 256], sizes = [8, 128], strides = [1, 1]} : vector<8x384xf32> to vector<8x128xf32>
    %c0_152 = arith.constant 0 : index
    %c0_153 = arith.constant 0 : index
    %291 = vector.load %arg7[%c0_152, %c0_153] : memref<8x128xf32, #tpu.memory_space<vmem>>, vector<8x128xf32>
    %292 = arith.mulf %289, %291 : vector<8x128xf32>
    %293 = arith.mulf %288, %287 : vector<8x128xf32>
    %294 = arith.addf %292, %293 : vector<8x128xf32>
    %295 = math.tanh %294 : vector<8x128xf32>
    %296 = arith.mulf %290, %295 : vector<8x128xf32>
    %c0_154 = arith.constant 0 : index
    %c0_155 = arith.constant 0 : index
    %297 = vector.load %arg7[%c0_154, %c0_155] : memref<8x128xf32, #tpu.memory_space<vmem>>, vector<8x128xf32>
    tpu.vector_store %arg7[%c0_154, %c0_155], %294 {strides = array<i32>} : memref<8x128xf32, #tpu.memory_space<vmem>>, vector<8x128xf32>,
    %c0_156 = arith.constant 0 : index
    %c0_157 = arith.constant 0 : index
    %298 = vector.load %arg6[%c0_156, %c0_157] : memref<8x128xf32, #tpu.memory_space<vmem>>, vector<8x128xf32>
    tpu.vector_store %arg6[%c0_156, %c0_157], %296 {strides = array<i32>} : memref<8x128xf32, #tpu.memory_space<vmem>>, vector<8x128xf32>,
    %299 = arith.index_cast %c9_i32 : i32 to index
    %c0_158 = arith.constant 0 : index
    %c0_159 = arith.constant 0 : index
    %300 = vector.load %arg8[%299, %c0_158, %c0_159] : memref<16x8x128xf32, #tpu.memory_space<vmem>>, vector<1x8x128xf32>
    %301 = vector.shape_cast %300 : vector<1x8x128xf32> to vector<8x128xf32>
    %302 = vector.shape_cast %296 : vector<8x128xf32> to vector<1x8x128xf32>
    tpu.vector_store %arg8[%299, %c0_158, %c0_159], %302 {strides = array<i32>} : memref<16x8x128xf32, #tpu.memory_space<vmem>>, vector<1x8x128xf32>,
    %c10_i32 = arith.constant 10 : i32
    %303 = arith.index_cast %c10_i32 : i32 to index
    %c0_160 = arith.constant 0 : index
    %c0_161 = arith.constant 0 : index
    %304 = vector.load %arg1[%303, %c0_160, %c0_161] : memref<16x8x512xf32, #tpu.memory_space<vmem>>, vector<1x8x512xf32>
    %305 = vector.shape_cast %304 : vector<1x8x512xf32> to vector<8x512xf32>
    %c0_162 = arith.constant 0 : index
    %c0_163 = arith.constant 0 : index
    %306 = vector.load %arg6[%c0_162, %c0_163] : memref<8x128xf32, #tpu.memory_space<vmem>>, vector<8x128xf32>
    %c0_164 = arith.constant 0 : index
    %c0_165 = arith.constant 0 : index
    %307 = vector.load %arg2[%c0_164, %c0_165] : memref<128x512xf32, #tpu.memory_space<vmem>>, vector<128x512xf32>
    %cst_166 = arith.constant dense<0.000000e+00> : vector<8x512xf32>
    %308 = tpu.matmul %306, %307, %cst_166 {dimension_numbers = #tpu.dot_dimension_numbers<[1], [0], [0], [1], [0, 0, 1, 1], [], []>} : vector<8x128xf32>, vector<128x512xf32>, vector<8x512xf32> -> vector<8x512xf32>
    %309 = arith.addf %305, %308 : vector<8x512xf32>
    %310 = vector.extract_strided_slice %309 {offsets = [0, 0], sizes = [8, 384], strides = [1, 1]} : vector<8x512xf32> to vector<8x384xf32>
    %311 = arith.negf %310 : vector<8x384xf32>
    %312 = math.exp %311 : vector<8x384xf32>
    %cst_167 = arith.constant 1.000000e+00 : f32
    %313 = vector.broadcast %cst_167 : f32 to vector<8x384xf32>
    %314 = arith.addf %313, %312 : vector<8x384xf32>
    %315 = arith.divf %313, %314 : vector<8x384xf32>
    %316 = vector.extract_strided_slice %309 {offsets = [0, 384], sizes = [8, 128], strides = [1, 1]} : vector<8x512xf32> to vector<8x128xf32>
    %317 = math.tanh %316 : vector<8x128xf32>
    %318 = vector.extract_strided_slice %315 {offsets = [0, 0], sizes = [8, 128], strides = [1, 1]} : vector<8x384xf32> to vector<8x128xf32>
    %319 = vector.extract_strided_slice %315 {offsets = [0, 128], sizes = [8, 128], strides = [1, 1]} : vector<8x384xf32> to vector<8x128xf32>
    %320 = vector.extract_strided_slice %315 {offsets = [0, 256], sizes = [8, 128], strides = [1, 1]} : vector<8x384xf32> to vector<8x128xf32>
    %c0_168 = arith.constant 0 : index
    %c0_169 = arith.constant 0 : index
    %321 = vector.load %arg7[%c0_168, %c0_169] : memref<8x128xf32, #tpu.memory_space<vmem>>, vector<8x128xf32>
    %322 = arith.mulf %319, %321 : vector<8x128xf32>
    %323 = arith.mulf %318, %317 : vector<8x128xf32>
    %324 = arith.addf %322, %323 : vector<8x128xf32>
    %325 = math.tanh %324 : vector<8x128xf32>
    %326 = arith.mulf %320, %325 : vector<8x128xf32>
    %c0_170 = arith.constant 0 : index
    %c0_171 = arith.constant 0 : index
    %327 = vector.load %arg7[%c0_170, %c0_171] : memref<8x128xf32, #tpu.memory_space<vmem>>, vector<8x128xf32>
    tpu.vector_store %arg7[%c0_170, %c0_171], %324 {strides = array<i32>} : memref<8x128xf32, #tpu.memory_space<vmem>>, vector<8x128xf32>,
    %c0_172 = arith.constant 0 : index
    %c0_173 = arith.constant 0 : index
    %328 = vector.load %arg6[%c0_172, %c0_173] : memref<8x128xf32, #tpu.memory_space<vmem>>, vector<8x128xf32>
    tpu.vector_store %arg6[%c0_172, %c0_173], %326 {strides = array<i32>} : memref<8x128xf32, #tpu.memory_space<vmem>>, vector<8x128xf32>,
    %329 = arith.index_cast %c10_i32 : i32 to index
    %c0_174 = arith.constant 0 : index
    %c0_175 = arith.constant 0 : index
    %330 = vector.load %arg8[%329, %c0_174, %c0_175] : memref<16x8x128xf32, #tpu.memory_space<vmem>>, vector<1x8x128xf32>
    %331 = vector.shape_cast %330 : vector<1x8x128xf32> to vector<8x128xf32>
    %332 = vector.shape_cast %326 : vector<8x128xf32> to vector<1x8x128xf32>
    tpu.vector_store %arg8[%329, %c0_174, %c0_175], %332 {strides = array<i32>} : memref<16x8x128xf32, #tpu.memory_space<vmem>>, vector<1x8x128xf32>,
    %c11_i32 = arith.constant 11 : i32
    %333 = arith.index_cast %c11_i32 : i32 to index
    %c0_176 = arith.constant 0 : index
    %c0_177 = arith.constant 0 : index
    %334 = vector.load %arg1[%333, %c0_176, %c0_177] : memref<16x8x512xf32, #tpu.memory_space<vmem>>, vector<1x8x512xf32>
    %335 = vector.shape_cast %334 : vector<1x8x512xf32> to vector<8x512xf32>
    %c0_178 = arith.constant 0 : index
    %c0_179 = arith.constant 0 : index
    %336 = vector.load %arg6[%c0_178, %c0_179] : memref<8x128xf32, #tpu.memory_space<vmem>>, vector<8x128xf32>
    %c0_180 = arith.constant 0 : index
    %c0_181 = arith.constant 0 : index
    %337 = vector.load %arg2[%c0_180, %c0_181] : memref<128x512xf32, #tpu.memory_space<vmem>>, vector<128x512xf32>
    %cst_182 = arith.constant dense<0.000000e+00> : vector<8x512xf32>
    %338 = tpu.matmul %336, %337, %cst_182 {dimension_numbers = #tpu.dot_dimension_numbers<[1], [0], [0], [1], [0, 0, 1, 1], [], []>} : vector<8x128xf32>, vector<128x512xf32>, vector<8x512xf32> -> vector<8x512xf32>
    %339 = arith.addf %335, %338 : vector<8x512xf32>
    %340 = vector.extract_strided_slice %339 {offsets = [0, 0], sizes = [8, 384], strides = [1, 1]} : vector<8x512xf32> to vector<8x384xf32>
    %341 = arith.negf %340 : vector<8x384xf32>
    %342 = math.exp %341 : vector<8x384xf32>
    %cst_183 = arith.constant 1.000000e+00 : f32
    %343 = vector.broadcast %cst_183 : f32 to vector<8x384xf32>
    %344 = arith.addf %343, %342 : vector<8x384xf32>
    %345 = arith.divf %343, %344 : vector<8x384xf32>
    %346 = vector.extract_strided_slice %339 {offsets = [0, 384], sizes = [8, 128], strides = [1, 1]} : vector<8x512xf32> to vector<8x128xf32>
    %347 = math.tanh %346 : vector<8x128xf32>
    %348 = vector.extract_strided_slice %345 {offsets = [0, 0], sizes = [8, 128], strides = [1, 1]} : vector<8x384xf32> to vector<8x128xf32>
    %349 = vector.extract_strided_slice %345 {offsets = [0, 128], sizes = [8, 128], strides = [1, 1]} : vector<8x384xf32> to vector<8x128xf32>
    %350 = vector.extract_strided_slice %345 {offsets = [0, 256], sizes = [8, 128], strides = [1, 1]} : vector<8x384xf32> to vector<8x128xf32>
    %c0_184 = arith.constant 0 : index
    %c0_185 = arith.constant 0 : index
    %351 = vector.load %arg7[%c0_184, %c0_185] : memref<8x128xf32, #tpu.memory_space<vmem>>, vector<8x128xf32>
    %352 = arith.mulf %349, %351 : vector<8x128xf32>
    %353 = arith.mulf %348, %347 : vector<8x128xf32>
    %354 = arith.addf %352, %353 : vector<8x128xf32>
    %355 = math.tanh %354 : vector<8x128xf32>
    %356 = arith.mulf %350, %355 : vector<8x128xf32>
    %c0_186 = arith.constant 0 : index
    %c0_187 = arith.constant 0 : index
    %357 = vector.load %arg7[%c0_186, %c0_187] : memref<8x128xf32, #tpu.memory_space<vmem>>, vector<8x128xf32>
    tpu.vector_store %arg7[%c0_186, %c0_187], %354 {strides = array<i32>} : memref<8x128xf32, #tpu.memory_space<vmem>>, vector<8x128xf32>,
    %c0_188 = arith.constant 0 : index
    %c0_189 = arith.constant 0 : index
    %358 = vector.load %arg6[%c0_188, %c0_189] : memref<8x128xf32, #tpu.memory_space<vmem>>, vector<8x128xf32>
    tpu.vector_store %arg6[%c0_188, %c0_189], %356 {strides = array<i32>} : memref<8x128xf32, #tpu.memory_space<vmem>>, vector<8x128xf32>,
    %359 = arith.index_cast %c11_i32 : i32 to index
    %c0_190 = arith.constant 0 : index
    %c0_191 = arith.constant 0 : index
    %360 = vector.load %arg8[%359, %c0_190, %c0_191] : memref<16x8x128xf32, #tpu.memory_space<vmem>>, vector<1x8x128xf32>
    %361 = vector.shape_cast %360 : vector<1x8x128xf32> to vector<8x128xf32>
    %362 = vector.shape_cast %356 : vector<8x128xf32> to vector<1x8x128xf32>
    tpu.vector_store %arg8[%359, %c0_190, %c0_191], %362 {strides = array<i32>} : memref<16x8x128xf32, #tpu.memory_space<vmem>>, vector<1x8x128xf32>,
    %c12_i32 = arith.constant 12 : i32
    %363 = arith.index_cast %c12_i32 : i32 to index
    %c0_192 = arith.constant 0 : index
    %c0_193 = arith.constant 0 : index
    %364 = vector.load %arg1[%363, %c0_192, %c0_193] : memref<16x8x512xf32, #tpu.memory_space<vmem>>, vector<1x8x512xf32>
    %365 = vector.shape_cast %364 : vector<1x8x512xf32> to vector<8x512xf32>
    %c0_194 = arith.constant 0 : index
    %c0_195 = arith.constant 0 : index
    %366 = vector.load %arg6[%c0_194, %c0_195] : memref<8x128xf32, #tpu.memory_space<vmem>>, vector<8x128xf32>
    %c0_196 = arith.constant 0 : index
    %c0_197 = arith.constant 0 : index
    %367 = vector.load %arg2[%c0_196, %c0_197] : memref<128x512xf32, #tpu.memory_space<vmem>>, vector<128x512xf32>
    %cst_198 = arith.constant dense<0.000000e+00> : vector<8x512xf32>
    %368 = tpu.matmul %366, %367, %cst_198 {dimension_numbers = #tpu.dot_dimension_numbers<[1], [0], [0], [1], [0, 0, 1, 1], [], []>} : vector<8x128xf32>, vector<128x512xf32>, vector<8x512xf32> -> vector<8x512xf32>
    %369 = arith.addf %365, %368 : vector<8x512xf32>
    %370 = vector.extract_strided_slice %369 {offsets = [0, 0], sizes = [8, 384], strides = [1, 1]} : vector<8x512xf32> to vector<8x384xf32>
    %371 = arith.negf %370 : vector<8x384xf32>
    %372 = math.exp %371 : vector<8x384xf32>
    %cst_199 = arith.constant 1.000000e+00 : f32
    %373 = vector.broadcast %cst_199 : f32 to vector<8x384xf32>
    %374 = arith.addf %373, %372 : vector<8x384xf32>
    %375 = arith.divf %373, %374 : vector<8x384xf32>
    %376 = vector.extract_strided_slice %369 {offsets = [0, 384], sizes = [8, 128], strides = [1, 1]} : vector<8x512xf32> to vector<8x128xf32>
    %377 = math.tanh %376 : vector<8x128xf32>
    %378 = vector.extract_strided_slice %375 {offsets = [0, 0], sizes = [8, 128], strides = [1, 1]} : vector<8x384xf32> to vector<8x128xf32>
    %379 = vector.extract_strided_slice %375 {offsets = [0, 128], sizes = [8, 128], strides = [1, 1]} : vector<8x384xf32> to vector<8x128xf32>
    %380 = vector.extract_strided_slice %375 {offsets = [0, 256], sizes = [8, 128], strides = [1, 1]} : vector<8x384xf32> to vector<8x128xf32>
    %c0_200 = arith.constant 0 : index
    %c0_201 = arith.constant 0 : index
    %381 = vector.load %arg7[%c0_200, %c0_201] : memref<8x128xf32, #tpu.memory_space<vmem>>, vector<8x128xf32>
    %382 = arith.mulf %379, %381 : vector<8x128xf32>
    %383 = arith.mulf %378, %377 : vector<8x128xf32>
    %384 = arith.addf %382, %383 : vector<8x128xf32>
    %385 = math.tanh %384 : vector<8x128xf32>
    %386 = arith.mulf %380, %385 : vector<8x128xf32>
    %c0_202 = arith.constant 0 : index
    %c0_203 = arith.constant 0 : index
    %387 = vector.load %arg7[%c0_202, %c0_203] : memref<8x128xf32, #tpu.memory_space<vmem>>, vector<8x128xf32>
    tpu.vector_store %arg7[%c0_202, %c0_203], %384 {strides = array<i32>} : memref<8x128xf32, #tpu.memory_space<vmem>>, vector<8x128xf32>,
    %c0_204 = arith.constant 0 : index
    %c0_205 = arith.constant 0 : index
    %388 = vector.load %arg6[%c0_204, %c0_205] : memref<8x128xf32, #tpu.memory_space<vmem>>, vector<8x128xf32>
    tpu.vector_store %arg6[%c0_204, %c0_205], %386 {strides = array<i32>} : memref<8x128xf32, #tpu.memory_space<vmem>>, vector<8x128xf32>,
    %389 = arith.index_cast %c12_i32 : i32 to index
    %c0_206 = arith.constant 0 : index
    %c0_207 = arith.constant 0 : index
    %390 = vector.load %arg8[%389, %c0_206, %c0_207] : memref<16x8x128xf32, #tpu.memory_space<vmem>>, vector<1x8x128xf32>
    %391 = vector.shape_cast %390 : vector<1x8x128xf32> to vector<8x128xf32>
    %392 = vector.shape_cast %386 : vector<8x128xf32> to vector<1x8x128xf32>
    tpu.vector_store %arg8[%389, %c0_206, %c0_207], %392 {strides = array<i32>} : memref<16x8x128xf32, #tpu.memory_space<vmem>>, vector<1x8x128xf32>,
    %c13_i32 = arith.constant 13 : i32
    %393 = arith.index_cast %c13_i32 : i32 to index
    %c0_208 = arith.constant 0 : index
    %c0_209 = arith.constant 0 : index
    %394 = vector.load %arg1[%393, %c0_208, %c0_209] : memref<16x8x512xf32, #tpu.memory_space<vmem>>, vector<1x8x512xf32>
    %395 = vector.shape_cast %394 : vector<1x8x512xf32> to vector<8x512xf32>
    %c0_210 = arith.constant 0 : index
    %c0_211 = arith.constant 0 : index
    %396 = vector.load %arg6[%c0_210, %c0_211] : memref<8x128xf32, #tpu.memory_space<vmem>>, vector<8x128xf32>
    %c0_212 = arith.constant 0 : index
    %c0_213 = arith.constant 0 : index
    %397 = vector.load %arg2[%c0_212, %c0_213] : memref<128x512xf32, #tpu.memory_space<vmem>>, vector<128x512xf32>
    %cst_214 = arith.constant dense<0.000000e+00> : vector<8x512xf32>
    %398 = tpu.matmul %396, %397, %cst_214 {dimension_numbers = #tpu.dot_dimension_numbers<[1], [0], [0], [1], [0, 0, 1, 1], [], []>} : vector<8x128xf32>, vector<128x512xf32>, vector<8x512xf32> -> vector<8x512xf32>
    %399 = arith.addf %395, %398 : vector<8x512xf32>
    %400 = vector.extract_strided_slice %399 {offsets = [0, 0], sizes = [8, 384], strides = [1, 1]} : vector<8x512xf32> to vector<8x384xf32>
    %401 = arith.negf %400 : vector<8x384xf32>
    %402 = math.exp %401 : vector<8x384xf32>
    %cst_215 = arith.constant 1.000000e+00 : f32
    %403 = vector.broadcast %cst_215 : f32 to vector<8x384xf32>
    %404 = arith.addf %403, %402 : vector<8x384xf32>
    %405 = arith.divf %403, %404 : vector<8x384xf32>
    %406 = vector.extract_strided_slice %399 {offsets = [0, 384], sizes = [8, 128], strides = [1, 1]} : vector<8x512xf32> to vector<8x128xf32>
    %407 = math.tanh %406 : vector<8x128xf32>
    %408 = vector.extract_strided_slice %405 {offsets = [0, 0], sizes = [8, 128], strides = [1, 1]} : vector<8x384xf32> to vector<8x128xf32>
    %409 = vector.extract_strided_slice %405 {offsets = [0, 128], sizes = [8, 128], strides = [1, 1]} : vector<8x384xf32> to vector<8x128xf32>
    %410 = vector.extract_strided_slice %405 {offsets = [0, 256], sizes = [8, 128], strides = [1, 1]} : vector<8x384xf32> to vector<8x128xf32>
    %c0_216 = arith.constant 0 : index
    %c0_217 = arith.constant 0 : index
    %411 = vector.load %arg7[%c0_216, %c0_217] : memref<8x128xf32, #tpu.memory_space<vmem>>, vector<8x128xf32>
    %412 = arith.mulf %409, %411 : vector<8x128xf32>
    %413 = arith.mulf %408, %407 : vector<8x128xf32>
    %414 = arith.addf %412, %413 : vector<8x128xf32>
    %415 = math.tanh %414 : vector<8x128xf32>
    %416 = arith.mulf %410, %415 : vector<8x128xf32>
    %c0_218 = arith.constant 0 : index
    %c0_219 = arith.constant 0 : index
    %417 = vector.load %arg7[%c0_218, %c0_219] : memref<8x128xf32, #tpu.memory_space<vmem>>, vector<8x128xf32>
    tpu.vector_store %arg7[%c0_218, %c0_219], %414 {strides = array<i32>} : memref<8x128xf32, #tpu.memory_space<vmem>>, vector<8x128xf32>,
    %c0_220 = arith.constant 0 : index
    %c0_221 = arith.constant 0 : index
    %418 = vector.load %arg6[%c0_220, %c0_221] : memref<8x128xf32, #tpu.memory_space<vmem>>, vector<8x128xf32>
    tpu.vector_store %arg6[%c0_220, %c0_221], %416 {strides = array<i32>} : memref<8x128xf32, #tpu.memory_space<vmem>>, vector<8x128xf32>,
    %419 = arith.index_cast %c13_i32 : i32 to index
    %c0_222 = arith.constant 0 : index
    %c0_223 = arith.constant 0 : index
    %420 = vector.load %arg8[%419, %c0_222, %c0_223] : memref<16x8x128xf32, #tpu.memory_space<vmem>>, vector<1x8x128xf32>
    %421 = vector.shape_cast %420 : vector<1x8x128xf32> to vector<8x128xf32>
    %422 = vector.shape_cast %416 : vector<8x128xf32> to vector<1x8x128xf32>
    tpu.vector_store %arg8[%419, %c0_222, %c0_223], %422 {strides = array<i32>} : memref<16x8x128xf32, #tpu.memory_space<vmem>>, vector<1x8x128xf32>,
    %c14_i32 = arith.constant 14 : i32
    %423 = arith.index_cast %c14_i32 : i32 to index
    %c0_224 = arith.constant 0 : index
    %c0_225 = arith.constant 0 : index
    %424 = vector.load %arg1[%423, %c0_224, %c0_225] : memref<16x8x512xf32, #tpu.memory_space<vmem>>, vector<1x8x512xf32>
    %425 = vector.shape_cast %424 : vector<1x8x512xf32> to vector<8x512xf32>
    %c0_226 = arith.constant 0 : index
    %c0_227 = arith.constant 0 : index
    %426 = vector.load %arg6[%c0_226, %c0_227] : memref<8x128xf32, #tpu.memory_space<vmem>>, vector<8x128xf32>
    %c0_228 = arith.constant 0 : index
    %c0_229 = arith.constant 0 : index
    %427 = vector.load %arg2[%c0_228, %c0_229] : memref<128x512xf32, #tpu.memory_space<vmem>>, vector<128x512xf32>
    %cst_230 = arith.constant dense<0.000000e+00> : vector<8x512xf32>
    %428 = tpu.matmul %426, %427, %cst_230 {dimension_numbers = #tpu.dot_dimension_numbers<[1], [0], [0], [1], [0, 0, 1, 1], [], []>} : vector<8x128xf32>, vector<128x512xf32>, vector<8x512xf32> -> vector<8x512xf32>
    %429 = arith.addf %425, %428 : vector<8x512xf32>
    %430 = vector.extract_strided_slice %429 {offsets = [0, 0], sizes = [8, 384], strides = [1, 1]} : vector<8x512xf32> to vector<8x384xf32>
    %431 = arith.negf %430 : vector<8x384xf32>
    %432 = math.exp %431 : vector<8x384xf32>
    %cst_231 = arith.constant 1.000000e+00 : f32
    %433 = vector.broadcast %cst_231 : f32 to vector<8x384xf32>
    %434 = arith.addf %433, %432 : vector<8x384xf32>
    %435 = arith.divf %433, %434 : vector<8x384xf32>
    %436 = vector.extract_strided_slice %429 {offsets = [0, 384], sizes = [8, 128], strides = [1, 1]} : vector<8x512xf32> to vector<8x128xf32>
    %437 = math.tanh %436 : vector<8x128xf32>
    %438 = vector.extract_strided_slice %435 {offsets = [0, 0], sizes = [8, 128], strides = [1, 1]} : vector<8x384xf32> to vector<8x128xf32>
    %439 = vector.extract_strided_slice %435 {offsets = [0, 128], sizes = [8, 128], strides = [1, 1]} : vector<8x384xf32> to vector<8x128xf32>
    %440 = vector.extract_strided_slice %435 {offsets = [0, 256], sizes = [8, 128], strides = [1, 1]} : vector<8x384xf32> to vector<8x128xf32>
    %c0_232 = arith.constant 0 : index
    %c0_233 = arith.constant 0 : index
    %441 = vector.load %arg7[%c0_232, %c0_233] : memref<8x128xf32, #tpu.memory_space<vmem>>, vector<8x128xf32>
    %442 = arith.mulf %439, %441 : vector<8x128xf32>
    %443 = arith.mulf %438, %437 : vector<8x128xf32>
    %444 = arith.addf %442, %443 : vector<8x128xf32>
    %445 = math.tanh %444 : vector<8x128xf32>
    %446 = arith.mulf %440, %445 : vector<8x128xf32>
    %c0_234 = arith.constant 0 : index
    %c0_235 = arith.constant 0 : index
    %447 = vector.load %arg7[%c0_234, %c0_235] : memref<8x128xf32, #tpu.memory_space<vmem>>, vector<8x128xf32>
    tpu.vector_store %arg7[%c0_234, %c0_235], %444 {strides = array<i32>} : memref<8x128xf32, #tpu.memory_space<vmem>>, vector<8x128xf32>,
    %c0_236 = arith.constant 0 : index
    %c0_237 = arith.constant 0 : index
    %448 = vector.load %arg6[%c0_236, %c0_237] : memref<8x128xf32, #tpu.memory_space<vmem>>, vector<8x128xf32>
    tpu.vector_store %arg6[%c0_236, %c0_237], %446 {strides = array<i32>} : memref<8x128xf32, #tpu.memory_space<vmem>>, vector<8x128xf32>,
    %449 = arith.index_cast %c14_i32 : i32 to index
    %c0_238 = arith.constant 0 : index
    %c0_239 = arith.constant 0 : index
    %450 = vector.load %arg8[%449, %c0_238, %c0_239] : memref<16x8x128xf32, #tpu.memory_space<vmem>>, vector<1x8x128xf32>
    %451 = vector.shape_cast %450 : vector<1x8x128xf32> to vector<8x128xf32>
    %452 = vector.shape_cast %446 : vector<8x128xf32> to vector<1x8x128xf32>
    tpu.vector_store %arg8[%449, %c0_238, %c0_239], %452 {strides = array<i32>} : memref<16x8x128xf32, #tpu.memory_space<vmem>>, vector<1x8x128xf32>,
    %c15_i32 = arith.constant 15 : i32
    %453 = arith.index_cast %c15_i32 : i32 to index
    %c0_240 = arith.constant 0 : index
    %c0_241 = arith.constant 0 : index
    %454 = vector.load %arg1[%453, %c0_240, %c0_241] : memref<16x8x512xf32, #tpu.memory_space<vmem>>, vector<1x8x512xf32>
    %455 = vector.shape_cast %454 : vector<1x8x512xf32> to vector<8x512xf32>
    %c0_242 = arith.constant 0 : index
    %c0_243 = arith.constant 0 : index
    %456 = vector.load %arg6[%c0_242, %c0_243] : memref<8x128xf32, #tpu.memory_space<vmem>>, vector<8x128xf32>
    %c0_244 = arith.constant 0 : index
    %c0_245 = arith.constant 0 : index
    %457 = vector.load %arg2[%c0_244, %c0_245] : memref<128x512xf32, #tpu.memory_space<vmem>>, vector<128x512xf32>
    %cst_246 = arith.constant dense<0.000000e+00> : vector<8x512xf32>
    %458 = tpu.matmul %456, %457, %cst_246 {dimension_numbers = #tpu.dot_dimension_numbers<[1], [0], [0], [1], [0, 0, 1, 1], [], []>} : vector<8x128xf32>, vector<128x512xf32>, vector<8x512xf32> -> vector<8x512xf32>
    %459 = arith.addf %455, %458 : vector<8x512xf32>
    %460 = vector.extract_strided_slice %459 {offsets = [0, 0], sizes = [8, 384], strides = [1, 1]} : vector<8x512xf32> to vector<8x384xf32>
    %461 = arith.negf %460 : vector<8x384xf32>
    %462 = math.exp %461 : vector<8x384xf32>
    %cst_247 = arith.constant 1.000000e+00 : f32
    %463 = vector.broadcast %cst_247 : f32 to vector<8x384xf32>
    %464 = arith.addf %463, %462 : vector<8x384xf32>
    %465 = arith.divf %463, %464 : vector<8x384xf32>
    %466 = vector.extract_strided_slice %459 {offsets = [0, 384], sizes = [8, 128], strides = [1, 1]} : vector<8x512xf32> to vector<8x128xf32>
    %467 = math.tanh %466 : vector<8x128xf32>
    %468 = vector.extract_strided_slice %465 {offsets = [0, 0], sizes = [8, 128], strides = [1, 1]} : vector<8x384xf32> to vector<8x128xf32>
    %469 = vector.extract_strided_slice %465 {offsets = [0, 128], sizes = [8, 128], strides = [1, 1]} : vector<8x384xf32> to vector<8x128xf32>
    %470 = vector.extract_strided_slice %465 {offsets = [0, 256], sizes = [8, 128], strides = [1, 1]} : vector<8x384xf32> to vector<8x128xf32>
    %c0_248 = arith.constant 0 : index
    %c0_249 = arith.constant 0 : index
    %471 = vector.load %arg7[%c0_248, %c0_249] : memref<8x128xf32, #tpu.memory_space<vmem>>, vector<8x128xf32>
    %472 = arith.mulf %469, %471 : vector<8x128xf32>
    %473 = arith.mulf %468, %467 : vector<8x128xf32>
    %474 = arith.addf %472, %473 : vector<8x128xf32>
    %475 = math.tanh %474 : vector<8x128xf32>
    %476 = arith.mulf %470, %475 : vector<8x128xf32>
    %c0_250 = arith.constant 0 : index
    %c0_251 = arith.constant 0 : index
    %477 = vector.load %arg7[%c0_250, %c0_251] : memref<8x128xf32, #tpu.memory_space<vmem>>, vector<8x128xf32>
    tpu.vector_store %arg7[%c0_250, %c0_251], %474 {strides = array<i32>} : memref<8x128xf32, #tpu.memory_space<vmem>>, vector<8x128xf32>,
    %c0_252 = arith.constant 0 : index
    %c0_253 = arith.constant 0 : index
    %478 = vector.load %arg6[%c0_252, %c0_253] : memref<8x128xf32, #tpu.memory_space<vmem>>, vector<8x128xf32>
    tpu.vector_store %arg6[%c0_252, %c0_253], %476 {strides = array<i32>} : memref<8x128xf32, #tpu.memory_space<vmem>>, vector<8x128xf32>,
    %479 = arith.index_cast %c15_i32 : i32 to index
    %c0_254 = arith.constant 0 : index
    %c0_255 = arith.constant 0 : index
    %480 = vector.load %arg8[%479, %c0_254, %c0_255] : memref<16x8x128xf32, #tpu.memory_space<vmem>>, vector<1x8x128xf32>
    %481 = vector.shape_cast %480 : vector<1x8x128xf32> to vector<8x128xf32>
    %482 = vector.shape_cast %476 : vector<8x128xf32> to vector<1x8x128xf32>
    tpu.vector_store %arg8[%479, %c0_254, %c0_255], %482 {strides = array<i32>} : memref<16x8x128xf32, #tpu.memory_space<vmem>>, vector<1x8x128xf32>,
    %c16_i32 = arith.constant 16 : i32
    %c0_256 = arith.constant 0 : index
    %c0_257 = arith.constant 0 : index
    %c0_258 = arith.constant 0 : index
    %483 = vector.load %arg8[%c0_256, %c0_257, %c0_258] : memref<16x8x128xf32, #tpu.memory_space<vmem>>, vector<16x8x128xf32>
    %484 = vector.shape_cast %483 : vector<16x8x128xf32> to vector<128x128xf32>
    %c0_259 = arith.constant 0 : index
    %c0_260 = arith.constant 0 : index
    %485 = vector.load %arg3[%c0_259, %c0_260] : memref<128x8xf32, #tpu.memory_space<vmem>>, vector<128x8xf32>
    %cst_261 = arith.constant dense<0.000000e+00> : vector<128x8xf32>
    %486 = tpu.matmul %484, %485, %cst_261 {dimension_numbers = #tpu.dot_dimension_numbers<[1], [0], [0], [1], [0, 0, 1, 1], [], []>} : vector<128x128xf32>, vector<128x8xf32>, vector<128x8xf32> -> vector<128x8xf32>
    %c0_262 = arith.constant 0 : index
    %c0_263 = arith.constant 0 : index
    %487 = vector.load %arg4[%c0_262, %c0_263] : memref<1x8xf32, #tpu.memory_space<vmem>>, vector<1x8xf32>
    %488 = vector.broadcast %487 : vector<1x8xf32> to vector<128x8xf32>
    %489 = arith.addf %486, %488 : vector<128x8xf32>
    %c0_264 = arith.constant 0 : index
    %c0_265 = arith.constant 0 : index
    %490 = vector.load %arg5[%c0_264, %c0_265] : memref<128x8xf32, #tpu.memory_space<vmem>>, vector<128x8xf32>
    tpu.vector_store %arg5[%c0_264, %c0_265], %489 {strides = array<i32>} : memref<128x8xf32, #tpu.memory_space<vmem>>, vector<128x8xf32>,
    return
  }
  func.func @transform_0(%arg0: i32) -> (i32, i32, i32) {
    %c0_i32 = arith.constant 0 : i32
    %c0_i32_0 = arith.constant 0 : i32
    %c0_i32_1 = arith.constant 0 : i32
    return %arg0, %c0_i32, %c0_i32_0 : i32, i32, i32
  }
  func.func @transform_1(%arg0: i32) -> (i32, i32) {
    %c0_i32 = arith.constant 0 : i32
    %c0_i32_0 = arith.constant 0 : i32
    %c0_i32_1 = arith.constant 0 : i32
    return %c0_i32, %c0_i32_0 : i32, i32
  }
  func.func @transform_2(%arg0: i32) -> (i32, i32) {
    %c0_i32 = arith.constant 0 : i32
    %c0_i32_0 = arith.constant 0 : i32
    %c0_i32_1 = arith.constant 0 : i32
    return %c0_i32, %c0_i32_0 : i32, i32
  }
  func.func @transform_3(%arg0: i32) -> (i32, i32) {
    %c0_i32 = arith.constant 0 : i32
    %c0_i32_0 = arith.constant 0 : i32
    %c0_i32_1 = arith.constant 0 : i32
    return %c0_i32, %c0_i32_0 : i32, i32
  }
  func.func @transform_4(%arg0: i32) -> (i32, i32) {
    %c0_i32 = arith.constant 0 : i32
    %c0_i32_0 = arith.constant 0 : i32
    return %arg0, %c0_i32 : i32, i32
  }
}

</mosaic_0001>

<bundles_post_ra>
// kernel: simple_lstm_forward.2
= control target key start
LH: loop header
LB: loop body
LE: loop exit
PB: predicated region body
PF: predicated region fallthrough
CT: control target
= control target key end

     0   :  { %10 = vsyncpa [#allocation3], 0  ;;  %s905_s18 = smov [#allocation2]   ;;  %s1341_s0 = inlined_call_operand.vmem [shape: f32[128,16], index: 0, kind: input, shape index: {}]   ;;  %s1342_s1 = inlined_call_operand.vmem [shape: f32[16,128], index: 1, kind: input, shape index: {}]   ;;  %s1343_s2 = inlined_call_operand.vmem [shape: f32[1,128], index: 2, kind: input, shape index: {}]   ;;  %s1344_s3 = inlined_call_operand.hbm [shape: f32[128,512], index: 3, kind: input, shape index: {}]   ;;  %s1345_s4 = inlined_call_operand.vmem [shape: f32[1,512], index: 4, kind: input, shape index: {}]   ;;  %s1346_s5 = inlined_call_operand.vmem [shape: f32[128,512], index: 5, kind: output, shape index: {}]  }
   0x1   :  { %s22_s19 = sshll.u32 %s905_s18, 4  ;;  %s881_s22 = scalar_lea.hbm %s1344_s3, 8192  ;;  %s23_s19 = int_to_ptr.vmem [resolvable:$true] %s22_s19 }
   0x2   :  { %p882_p0 = scmp.ne.s32.totalorder %s1344_s3, %s881_s22  ;;  %p885_p1 = scmp.lt.u32.totalorder %s881_s22, %s1344_s3 }
   0x4   :  { %p887_p2 = pnand %p885_p1, %p882_p0 }
   0x6   :  { %890 = shalt.err (!%p887_p2)
}
   0x7   :  { %s891_s27 = scalar_lea.vmem %s23_s19, 8192  ;;  %p896_p4 = scmp.lt.s32.totalorder %s23_s19, %s23_s19 }
   0x8   :  { %p892_p3 = scmp.ne.s32.totalorder %s23_s19, %s891_s27  ;;  %p897_p5 = scmp.lt.s32.totalorder %s891_s27, %s891_s27 }
   0xa   :  { %p898_p6 = por %p897_p5, %p896_p4 }
   0xc   :  { %p899_p7 = pnand %p898_p6, %p892_p3 }
   0xe   :  { %902 = shalt.err (!%p899_p7)
}
   0xf   :  { %s906_s28 = smov 512   ;;  %s907_s29 = smov 32  }
  0x10   :  { %28 = dma.hbm_to_vmem [thread:$0]  %s1344_s3, 8192, %s23_s19, [#allocation3], %s906_s28, %s906_s28, %s907_s29  }
  0x11   :  { %903 = dma.done.wait [#allocation3], 8192  }
  0x12   :  { %904 = vsyncadd [#allocation3], 4294959104  ;;  %vm59_vm0 = vcmask 130048   ;;  %v50_v0 = vld [vmem:[%s1342_s1] sm:$0xff]  ;;  %v51_v1 = vld [vmem:[%s1342_s1 + $0x8] sm:$0xff] }
  0x13   :  { %v34_v2 = vld [vmem:[%s1341_s0] sm:$0xff]  ;;  %v809_v3 = vpack.c.bf16 %v51_v1, %v50_v0  ;;  %v35_v4 = vld [vmem:[%s1341_s0 + $0x8] sm:$0xff]  ;;  %v36_v5 = vld [vmem:[%s1341_s0 + $0x10] sm:$0xff] }
  0x14   :  { %785 = vmatprep.mubr.msk.f32.mxu0 %vm59_vm0, %v34_v2  ;;  %v37_v6 = vld [vmem:[%s1341_s0 + $0x18] sm:$0xff]  ;;  %v270_v9 = vld [vmem:[#allocation2 + $0x8] sm:$0xff]  ;;  %v38_v10 = vld [vmem:[%s1341_s0 + $0x20] sm:$0xff] }
  0x15   :  { %810 = vmatprep.subr.bf16.mxu0 %v809_v3  ;;  %v272_v7 = vld [vmem:[#allocation2 + $0x18] sm:$0xff]  ;;  %v274_v12 = vld [vmem:[#allocation2 + $0x28] sm:$0xff]  ;;  %v271_v13 = vld [vmem:[#allocation2 + $0x10] sm:$0xff] }
  0x16   :  { %812 = vmatpush3.bf16.msra.mxu0 %v809_v3  ;;  %v276_v8 = vld [vmem:[#allocation2 + $0x38] sm:$0xff]  ;;  %v275_v14 = vld [vmem:[#allocation2 + $0x30] sm:$0xff]  ;;  %v813_v15 = vpack.c.bf16 %v274_v12, %v270_v9  ;;  %v269_v17 = vld [vmem:[#allocation2] sm:$0xff] }
  0x17   :  { %v845_v11 = vpack.c.bf16 %v276_v8, %v272_v7  ;;  %v847_v16 = vpack.c.bf16 %v275_v14, %v271_v13  ;;  %v273_v18 = vld [vmem:[#allocation2 + $0x20] sm:$0xff]  ;;  %v280_v19 = vld [vmem:[#allocation2 + $0x58] sm:$0xff]  ;;  %v278_v22 = vld [vmem:[#allocation2 + $0x48] sm:$0xff] }
  0x18   :  { %v815_v20 = vpack.c.bf16 %v273_v18, %v269_v17  ;;  %v284_v21 = vld [vmem:[#allocation2 + $0x78] sm:$0xff]  ;;  %v282_v23 = vld [vmem:[#allocation2 + $0x68] sm:$0xff]  ;;  %814 = vmatprep.subr.bf16.mxu1 %v813_v15  ;;  %v279_v27 = vld [vmem:[#allocation2 + $0x50] sm:$0xff] }
  0x19   :  { %786 = vmatmul.mubr.msk.f32.vlgmr.msra.gmra.mrb[0].mxu0 %vm59_vm0, %v35_v4  ;;  %846 = vmatprep.subr.bf16.mxu0 %v845_v11  ;;  %v39_v24 = vld [vmem:[%s1341_s0 + $0x28] sm:$0xff]  ;;  %v849_v25 = vpack.c.bf16 %v284_v21, %v280_v19  ;;  %v817_v26 = vpack.c.bf16 %v282_v23, %v278_v22  ;;  %v283_v28 = vld [vmem:[#allocation2 + $0x70] sm:$0xff]  ;;  %v277_v29 = vld [vmem:[#allocation2 + $0x40] sm:$0xff] }
  0x1a   :  { %788 = vmatprep.mubr.msk.f32.mxu0 %vm59_vm0, %v36_v5  ;;  %848 = vmatpush1.bf16.msra.mxu0 %v847_v16  ;;  %v40_v30 = vld [vmem:[%s1341_s0 + $0x30] sm:$0xff]  ;;  %v851_v31 = vpack.c.bf16 %v283_v28, %v279_v27  ;;  %v281_v32 = vld [vmem:[#allocation2 + $0x60] sm:$0xff]  ;;  %v288_v33 = vld [vmem:[#allocation2 + $0x98] sm:$0xff] }
  0x1b   :  { %816 = vmatpush1.bf16.msra.mxu1 %v815_v20  ;;  %v292_v34 = vld [vmem:[#allocation2 + $0xb8] sm:$0xff]  ;;  %850 = vmatprep.subr.bf16.mxu0 %v849_v25  ;;  %v819_v35 = vpack.c.bf16 %v281_v32, %v277_v29  ;;  %v286_v37 = vld [vmem:[#allocation2 + $0x88] sm:$0xff]  ;;  %v287_v39 = vld [vmem:[#allocation2 + $0x90] sm:$0xff] }
  0x1c   :  { %v853_v36 = vpack.c.bf16 %v292_v34, %v288_v33  ;;  %v290_v38 = vld [vmem:[#allocation2 + $0xa8] sm:$0xff]  ;;  %818 = vmatprep.subr.bf16.mxu1 %v817_v26  ;;  %v291_v41 = vld [vmem:[#allocation2 + $0xb0] sm:$0xff]  ;;  %v285_v42 = vld [vmem:[#allocation2 + $0x80] sm:$0xff] }
  0x1d   :  { %789 = vmatmul.mubr.msk.f32.gmra.mrb[2].mxu0 %vm59_vm0, %v37_v6  ;;  %v821_v40 = vpack.c.bf16 %v290_v38, %v286_v37  ;;  %v289_v43 = vld [vmem:[#allocation2 + $0xa0] sm:$0xff]  ;;  %v855_v44 = vpack.c.bf16 %v291_v41, %v287_v39  ;;  %v296_v45 = vld [vmem:[#allocation2 + $0xd8] sm:$0xff]  ;;  %v294_v47 = vld [vmem:[#allocation2 + $0xc8] sm:$0xff] }
  0x1e   :  { %791 = vmatprep.mubr.msk.f32.mxu0 %vm59_vm0, %v38_v10  ;;  %852 = vmatpush1.bf16.msra.mxu0 %v851_v31  ;;  %v300_v46 = vld [vmem:[#allocation2 + $0xf8] sm:$0xff]  ;;  %v823_v48 = vpack.c.bf16 %v289_v43, %v285_v42  ;;  %v298_v49 = vld [vmem:[#allocation2 + $0xe8] sm:$0xff]  ;;  %v295_v50 = vld [vmem:[#allocation2 + $0xd0] sm:$0xff] }
  0x1f   :  { %820 = vmatpush1.bf16.msra.mxu1 %v819_v35  ;;  %v299_v51 = vld [vmem:[#allocation2 + $0xf0] sm:$0xff]  ;;  %v41_v52 = vld [vmem:[%s1341_s0 + $0x38] sm:$0xff]  ;;  %854 = vmatprep.subr.bf16.mxu0 %v853_v36  ;;  %v857_v53 = vpack.c.bf16 %v300_v46, %v296_v45  ;;  %v293_v54 = vld [vmem:[#allocation2 + $0xc0] sm:$0xff]  ;;  %v825_v57 = vpack.c.bf16 %v298_v49, %v294_v47 }
  0x20   :  { %v297_v55 = vld [vmem:[#allocation2 + $0xe0] sm:$0xff]  ;;  %822 = vmatprep.subr.bf16.mxu1 %v821_v40  ;;  %v304_v58 = vld [vmem:[#allocation2 + $0x118] sm:$0xff]  ;;  %v859_v60 = vpack.c.bf16 %v299_v51, %v295_v50  ;;  %v302_v61 = vld [vmem:[#allocation2 + $0x108] sm:$0xff]  ;;  %v908_v51 = vmov 0.0  }
  0x21   :  { %792 = vmatmul.mubr.msk.f32.gmra.mrb[4].mxu0 %vm59_vm0, %v39_v24  ;;  %v42_v56 = vld [vmem:[%s1341_s0 + $0x40] sm:$0xff]  ;;  %v308_v59 = vld [vmem:[#allocation2 + $0x138] sm:$0xff]  ;;  %v306_v62 = vld [vmem:[#allocation2 + $0x128] sm:$0xff]  ;;  %v827_v63 = vpack.c.bf16 %v297_v55, %v293_v54  ;;  %419 = vmatprep.mubr.f32.mxu1 %v908_v51 }
  0x22   :  { %794 = vmatprep.mubr.msk.f32.mxu0 %vm59_vm0, %v40_v30  ;;  %856 = vmatpush1.bf16.msra.mxu0 %v855_v44  ;;  %v303_v0 = vld [vmem:[#allocation2 + $0x110] sm:$0xff]  ;;  %v43_v2 = vld [vmem:[%s1341_s0 + $0x48] sm:$0xff]  ;;  %v861_v3 = vpack.c.bf16 %v308_v59, %v304_v58  ;;  %v301_v4 = vld [vmem:[#allocation2 + $0x100] sm:$0xff]  ;;  %v829_v7 = vpack.c.bf16 %v306_v62, %v302_v61 }
  0x23   :  { %824 = vmatpush1.bf16.msra.mxu1 %v823_v48  ;;  %v307_v1 = vld [vmem:[#allocation2 + $0x130] sm:$0xff]  ;;  %858 = vmatprep.subr.bf16.mxu0 %v857_v53  ;;  %v305_v5 = vld [vmem:[#allocation2 + $0x120] sm:$0xff]  ;;  %v312_v8 = vld [vmem:[#allocation2 + $0x158] sm:$0xff] }
  0x24   :  { %v44_v6 = vld [vmem:[%s1341_s0 + $0x50] sm:$0xff]  ;;  %826 = vmatprep.subr.bf16.mxu1 %v825_v57  ;;  %v316_v9 = vld [vmem:[#allocation2 + $0x178] sm:$0xff]  ;;  %v863_v10 = vpack.c.bf16 %v307_v1, %v303_v0  ;;  %v310_v11 = vld [vmem:[#allocation2 + $0x148] sm:$0xff]  ;;  %v831_v13 = vpack.c.bf16 %v305_v5, %v301_v4 }
  0x25   :  { %795 = vmatmul.mubr.msk.f32.gmra.mrb[6].mxu0 %vm59_vm0, %v41_v52  ;;  %v314_v12 = vld [vmem:[#allocation2 + $0x168] sm:$0xff]  ;;  %v311_v14 = vld [vmem:[#allocation2 + $0x150] sm:$0xff]  ;;  %v45_v16 = vld [vmem:[%s1341_s0 + $0x58] sm:$0xff]  ;;  %v865_v17 = vpack.c.bf16 %v316_v9, %v312_v8 }
  0x26   :  { %797 = vmatprep.mubr.msk.f32.mxu0 %vm59_vm0, %v42_v56  ;;  %860 = vmatpush1.bf16.msra.mxu0 %v859_v60  ;;  %v315_v15 = vld [vmem:[#allocation2 + $0x170] sm:$0xff]  ;;  %v309_v18 = vld [vmem:[#allocation2 + $0x140] sm:$0xff]  ;;  %v833_v21 = vpack.c.bf16 %v314_v12, %v310_v11  ;;  %v320_v22 = vld [vmem:[#allocation2 + $0x198] sm:$0xff] }
  0x27   :  { %828 = vmatpush1.bf16.msra.mxu1 %v827_v63  ;;  %862 = vmatprep.subr.bf16.mxu0 %v861_v3  ;;  %v313_v19 = vld [vmem:[#allocation2 + $0x160] sm:$0xff]  ;;  %v324_v23 = vld [vmem:[#allocation2 + $0x1b8] sm:$0xff]  ;;  %v867_v24 = vpack.c.bf16 %v315_v15, %v311_v14  ;;  %v318_v25 = vld [vmem:[#allocation2 + $0x188] sm:$0xff] }
  0x28   :  { %v46_v20 = vld [vmem:[%s1341_s0 + $0x60] sm:$0xff]  ;;  %830 = vmatprep.subr.bf16.mxu1 %v829_v7  ;;  %v322_v26 = vld [vmem:[#allocation2 + $0x1a8] sm:$0xff]  ;;  %v835_v27 = vpack.c.bf16 %v313_v19, %v309_v18  ;;  %v319_v28 = vld [vmem:[#allocation2 + $0x190] sm:$0xff]  ;;  %v869_v31 = vpack.c.bf16 %v324_v23, %v320_v22 }
  0x29   :  { %798 = vmatmul.mubr.msk.f32.gmra.mrb[8].mxu0 %vm59_vm0, %v43_v2  ;;  %v323_v29 = vld [vmem:[#allocation2 + $0x1b0] sm:$0xff]  ;;  %v47_v30 = vld [vmem:[%s1341_s0 + $0x68] sm:$0xff]  ;;  %v317_v32 = vld [vmem:[#allocation2 + $0x180] sm:$0xff]  ;;  %v837_v35 = vpack.c.bf16 %v322_v26, %v318_v25 }
  0x2a   :  { %800 = vmatprep.mubr.msk.f32.mxu0 %vm59_vm0, %v44_v6  ;;  %864 = vmatpush1.bf16.msra.mxu0 %v863_v10  ;;  %v321_v33 = vld [vmem:[#allocation2 + $0x1a0] sm:$0xff]  ;;  %v48_v34 = vld [vmem:[%s1341_s0 + $0x70] sm:$0xff]  ;;  %v871_v36 = vpack.c.bf16 %v323_v29, %v319_v28  ;;  %v49_v38 = vld [vmem:[%s1341_s0 + $0x78] sm:$0xff] }
  0x2b   :  { %832 = vmatpush1.bf16.msra.mxu1 %v831_v13  ;;  %866 = vmatprep.subr.bf16.mxu0 %v865_v17  ;;  %v839_v37 = vpack.c.bf16 %v321_v33, %v317_v32  ;;  %v328_v39 = vld [vmem:[#allocation2 + $0x1d8] sm:$0xff]  ;;  %v326_v41 = vld [vmem:[#allocation2 + $0x1c8] sm:$0xff]  ;;  %v327_v44 = vld [vmem:[#allocation2 + $0x1d0] sm:$0xff] }
  0x2c   :  { %834 = vmatprep.subr.bf16.mxu1 %v833_v21  ;;  %v332_v40 = vld [vmem:[#allocation2 + $0x1f8] sm:$0xff]  ;;  %v330_v43 = vld [vmem:[#allocation2 + $0x1e8] sm:$0xff]  ;;  %v331_v46 = vld [vmem:[#allocation2 + $0x1f0] sm:$0xff] }
  0x2d   :  { %801 = vmatmul.mubr.msk.f32.gmra.mrb[10].mxu0 %vm59_vm0, %v45_v16  ;;  %v873_v42 = vpack.c.bf16 %v332_v40, %v328_v39  ;;  %v841_v45 = vpack.c.bf16 %v330_v43, %v326_v41  ;;  %v325_v47 = vld [vmem:[#allocation2 + $0x1c0] sm:$0xff]  ;;  %v875_v49 = vpack.c.bf16 %v331_v46, %v327_v44 }
  0x2e   :  { %803 = vmatprep.mubr.msk.f32.mxu0 %vm59_vm0, %v46_v20  ;;  %868 = vmatpush1.bf16.msra.mxu0 %v867_v24  ;;  %v329_v48 = vld [vmem:[#allocation2 + $0x1e0] sm:$0xff] }
  0x2f   :  { %836 = vmatpush1.bf16.msra.mxu1 %v835_v27  ;;  %870 = vmatprep.subr.bf16.mxu0 %v869_v31  ;;  %v843_v50 = vpack.c.bf16 %v329_v48, %v325_v47  ;;  %v1026_v52 = vld [vmem:[%s1343_s2] ss:$0 sm:$0xff] }
  0x30   :  { %838 = vmatprep.subr.bf16.mxu1 %v837_v35  ;;  %v333_v41 = vld [vmem:[%s1345_s4] sm:$0xf] }
  0x31   :  { %804 = vmatmul.mubr.msk.f32.gmra.mrb[12].mxu0 %vm59_vm0, %v47_v30 }
  0x32   :  { %806 = vmatprep.mubr.msk.f32.mxu0 %vm59_vm0, %v48_v34  ;;  %872 = vmatpush1.bf16.msra.mxu0 %v871_v36 }
  0x33   :  { %840 = vmatpush1.bf16.msra.mxu1 %v839_v37  ;;  %874 = vmatprep.subr.bf16.mxu0 %v873_v42  ;;  %v335_v37 = vlaneseq }
  0x34   :  { %842 = vmatprep.subr.bf16.mxu1 %v841_v45 }
  0x35   :  { %807 = vmatmul.mubr.msk.f32.gmra.mrb[14].mxu0 %vm59_vm0, %v49_v38  ;;  %v336_v38 = vshrl.u32 %v335_v37, 7 }
  0x36   :  { %876 = vmatpush1.bf16.msra.mxu0 %v875_v49  ;;  %580 = vmatprep.mubr.f32.mxu0 %v908_v51 }
  0x37   :  { %844 = vmatpush1.bf16.msra.mxu1 %v843_v50  ;;  %v337_v39 = vsub.s32 0, %v336_v38  ;;  %v345_v40 = vsub.s32 2, %v336_v38  ;;  %v341_v42 = vsub.s32 1, %v336_v38  ;;  %v349_v43 = vsub.s32 3, %v336_v38 }
  0x39   :  { %v1077_v44 = vrot.slane %v333_v41, %v337_v39  ;;  %v1079_v45 = vrot.slane %v333_v41, %v345_v40  ;;  %v1081_v46 = vrot.slane %v333_v41, %v341_v42  ;;  %v1083_v47 = vrot.slane %v333_v41, %v349_v43 }
  0xec   :  { %v787_v53 = vpop.f32.mrb[0].mxu0 }
  0xed   :  { %v174_v54 = vpop.f32.mrb[1].mxu0  ;;  %v180_v56 = vadd.f32 %v787_v53, %v1026_v52 }
  0xee   :  { %v175_v55 = vadd.f32 %v1026_v52, %v174_v54 }
  0xef   :  { %v254_v61 = vmax.f32 %v180_v56, 0.0 }
  0xf0   :  { %v253_v57 = vmax.f32 %v175_v55, 0.0  ;;  %v790_v58 = vpop.f32.mrb[2].mxu0 }
  0xf1   :  { %v184_v59 = vpop.f32.mrb[3].mxu0  ;;  %v190_v1 = vadd.f32 %v790_v58, %v1026_v52 }
  0xf2   :  { %420 = vmatmul.mubr.f32.vlgmr.msra.gmra.mrb[0].mxu1 %v253_v57  ;;  %581 = vmatmul.mubr.f32.vlgmr.msra.gmra.mrb[16].mxu0 %v253_v57  ;;  %v185_v60 = vadd.f32 %v1026_v52, %v184_v59 }
  0xf3   :  { %425 = vmatprep.mubr.f32.mxu1 %v908_v51  ;;  %586 = vmatprep.mubr.f32.mxu0 %v908_v51  ;;  %v256_v5 = vmax.f32 %v190_v1, 0.0 }
  0xf4   :  { %v793_v62 = vpop.f32.mrb[4].mxu0  ;;  %v255_v0 = vmax.f32 %v185_v60, 0.0 }
  0xf5   :  { %v194_v63 = vpop.f32.mrb[5].mxu0  ;;  %v200_v9 = vadd.f32 %v793_v62, %v1026_v52 }
  0xf6   :  { %426 = vmatmul.mubr.f32.gmra.mrb[2].mxu1 %v254_v61  ;;  %587 = vmatmul.mubr.f32.gmra.mrb[18].mxu0 %v254_v61  ;;  %v195_v4 = vadd.f32 %v1026_v52, %v194_v63 }
  0xf7   :  { %431 = vmatprep.mubr.f32.mxu1 %v908_v51  ;;  %592 = vmatprep.mubr.f32.mxu0 %v908_v51  ;;  %v258_v13 = vmax.f32 %v200_v9, 0.0 }
  0xf8   :  { %v796_v2 = vpop.f32.mrb[6].mxu0  ;;  %v257_v8 = vmax.f32 %v195_v4, 0.0 }
  0xf9   :  { %v204_v3 = vpop.f32.mrb[7].mxu0  ;;  %v210_v17 = vadd.f32 %v796_v2, %v1026_v52 }
  0xfa   :  { %432 = vmatmul.mubr.f32.gmra.mrb[4].mxu1 %v255_v0  ;;  %593 = vmatmul.mubr.f32.gmra.mrb[20].mxu0 %v255_v0  ;;  %v205_v12 = vadd.f32 %v1026_v52, %v204_v3 }
  0xfb   :  { %437 = vmatprep.mubr.f32.mxu1 %v908_v51  ;;  %598 = vmatprep.mubr.f32.mxu0 %v908_v51  ;;  %v260_v21 = vmax.f32 %v210_v17, 0.0 }
  0xfc   :  { %v799_v6 = vpop.f32.mrb[8].mxu0  ;;  %v259_v16 = vmax.f32 %v205_v12, 0.0 }
  0xfd   :  { %v214_v7 = vpop.f32.mrb[9].mxu0  ;;  %v220_v23 = vadd.f32 %v799_v6, %v1026_v52 }
  0xfe   :  { %438 = vmatmul.mubr.f32.gmra.mrb[6].mxu1 %v256_v5  ;;  %599 = vmatmul.mubr.f32.gmra.mrb[22].mxu0 %v256_v5  ;;  %v215_v20 = vadd.f32 %v1026_v52, %v214_v7 }
  0xff   :  { %443 = vmatprep.mubr.f32.mxu1 %v908_v51  ;;  %604 = vmatprep.mubr.f32.mxu0 %v908_v51  ;;  %v262_v25 = vmax.f32 %v220_v23, 0.0 }
 0x100   :  { %v802_v10 = vpop.f32.mrb[10].mxu0  ;;  %v261_v22 = vmax.f32 %v215_v20, 0.0 }
 0x101   :  { %v224_v11 = vpop.f32.mrb[11].mxu0  ;;  %v230_v27 = vadd.f32 %v802_v10, %v1026_v52 }
 0x102   :  { %444 = vmatmul.mubr.f32.gmra.mrb[8].mxu1 %v257_v8  ;;  %605 = vmatmul.mubr.f32.gmra.mrb[24].mxu0 %v257_v8  ;;  %v225_v24 = vadd.f32 %v1026_v52, %v224_v11 }
 0x103   :  { %449 = vmatprep.mubr.f32.mxu1 %v908_v51  ;;  %610 = vmatprep.mubr.f32.mxu0 %v908_v51  ;;  %v264_v29 = vmax.f32 %v230_v27, 0.0 }
 0x104   :  { %v805_v14 = vpop.f32.mrb[12].mxu0  ;;  %v263_v26 = vmax.f32 %v225_v24, 0.0 }
 0x105   :  { %v234_v15 = vpop.f32.mrb[13].mxu0  ;;  %v240_v31 = vadd.f32 %v805_v14, %v1026_v52 }
 0x106   :  { %450 = vmatmul.mubr.f32.gmra.mrb[10].mxu1 %v258_v13  ;;  %611 = vmatmul.mubr.f32.gmra.mrb[26].mxu0 %v258_v13  ;;  %v235_v28 = vadd.f32 %v1026_v52, %v234_v15 }
 0x107   :  { %455 = vmatprep.mubr.f32.mxu1 %v908_v51  ;;  %616 = vmatprep.mubr.f32.mxu0 %v908_v51  ;;  %v266_v33 = vmax.f32 %v240_v31, 0.0 }
 0x108   :  { %v808_v18 = vpop.f32.mrb[14].mxu0  ;;  %v265_v30 = vmax.f32 %v235_v28, 0.0 }
 0x109   :  { %v244_v19 = vpop.f32.mrb[15].mxu0  ;;  %v250_v35 = vadd.f32 %v808_v18, %v1026_v52 }
 0x10a   :  { %456 = vmatmul.mubr.f32.gmra.mrb[12].mxu1 %v259_v16  ;;  %617 = vmatmul.mubr.f32.gmra.mrb[28].mxu0 %v259_v16  ;;  %v245_v32 = vadd.f32 %v1026_v52, %v244_v19 }
 0x10b   :  { %461 = vmatprep.mubr.f32.mxu1 %v908_v51  ;;  %622 = vmatprep.mubr.f32.mxu0 %v908_v51  ;;  %v268_v36 = vmax.f32 %v250_v35, 0.0 }
 0x10c   :  { %v267_v34 = vmax.f32 %v245_v32, 0.0 }
 0x10e   :  { %462 = vmatmul.mubr.f32.gmra.mrb[14].mxu1 %v260_v21  ;;  %623 = vmatmul.mubr.f32.gmra.mrb[30].mxu0 %v260_v21 }
 0x10f   :  { %467 = vmatprep.mubr.f32.mxu1 %v908_v51  ;;  %628 = vmatprep.mubr.f32.mxu0 %v908_v51 }
 0x112   :  { %468 = vmatmul.mubr.f32.gmra.mrb[16].mxu1 %v261_v22  ;;  %629 = vmatmul.mubr.f32.gmra.mrb[32].mxu0 %v261_v22 }
 0x113   :  { %473 = vmatprep.mubr.f32.mxu1 %v908_v51  ;;  %634 = vmatprep.mubr.f32.mxu0 %v908_v51 }
 0x116   :  { %474 = vmatmul.mubr.f32.gmra.mrb[18].mxu1 %v262_v25  ;;  %635 = vmatmul.mubr.f32.gmra.mrb[34].mxu0 %v262_v25 }
 0x117   :  { %479 = vmatprep.mubr.f32.mxu1 %v908_v51  ;;  %640 = vmatprep.mubr.f32.mxu0 %v908_v51 }
 0x11a   :  { %480 = vmatmul.mubr.f32.gmra.mrb[20].mxu1 %v263_v26  ;;  %641 = vmatmul.mubr.f32.gmra.mrb[36].mxu0 %v263_v26 }
 0x11b   :  { %485 = vmatprep.mubr.f32.mxu1 %v908_v51  ;;  %646 = vmatprep.mubr.f32.mxu0 %v908_v51 }
 0x11e   :  { %486 = vmatmul.mubr.f32.gmra.mrb[22].mxu1 %v264_v29  ;;  %647 = vmatmul.mubr.f32.gmra.mrb[38].mxu0 %v264_v29 }
 0x11f   :  { %491 = vmatprep.mubr.f32.mxu1 %v908_v51  ;;  %652 = vmatprep.mubr.f32.mxu0 %v908_v51 }
 0x122   :  { %492 = vmatmul.mubr.f32.gmra.mrb[24].mxu1 %v265_v30  ;;  %653 = vmatmul.mubr.f32.gmra.mrb[40].mxu0 %v265_v30 }
 0x123   :  { %497 = vmatprep.mubr.f32.mxu1 %v908_v51  ;;  %658 = vmatprep.mubr.f32.mxu0 %v908_v51 }
 0x126   :  { %498 = vmatmul.mubr.f32.gmra.mrb[26].mxu1 %v266_v33  ;;  %659 = vmatmul.mubr.f32.gmra.mrb[42].mxu0 %v266_v33 }
 0x127   :  { %503 = vmatprep.mubr.f32.mxu1 %v908_v51  ;;  %664 = vmatprep.mubr.f32.mxu0 %v908_v51 }
 0x12a   :  { %504 = vmatmul.mubr.f32.gmra.mrb[28].mxu1 %v267_v34  ;;  %665 = vmatmul.mubr.f32.gmra.mrb[44].mxu0 %v267_v34 }
 0x12b   :  { %509 = vmatprep.mubr.f32.mxu1 %v908_v51  ;;  %670 = vmatprep.mubr.f32.mxu0 %v908_v51 }
 0x12e   :  { %510 = vmatmul.mubr.f32.gmra.mrb[30].mxu1 %v268_v36  ;;  %671 = vmatmul.mubr.f32.gmra.mrb[46].mxu0 %v268_v36 }
 0x1c5   :  { %v421_v48 = vpop.f32.mrb[0].mxu1  ;;  %v582_v49 = vpop.f32.mrb[16].mxu0 }
 0x1c6   :  { %v422_v50 = vadd.f32 %v421_v48, %v1077_v44  ;;  %v583_v51 = vadd.f32 %v582_v49, %v1079_v45  ;;  %v423_v52 = vpop.f32.mrb[1].mxu1  ;;  %v584_v53 = vpop.f32.mrb[17].mxu0 }
 0x1c7   :  { %v424_v54 = vadd.f32 %v423_v52, %v1081_v46  ;;  %v585_v55 = vadd.f32 %v584_v53, %v1083_v47 }
 0x1c8   :  { %677 = vst [vmem:[%s1346_s5] sm:$0xff] %v422_v50  ;;  %679 = vst [vmem:[%s1346_s5 + $0x10] sm:$0xff] %v583_v51 }
 0x1c9   :  { %678 = vst [vmem:[%s1346_s5 + $0x8] sm:$0xff] %v424_v54  ;;  %680 = vst [vmem:[%s1346_s5 + $0x18] sm:$0xff] %v585_v55  ;;  %v427_v56 = vpop.f32.mrb[2].mxu1  ;;  %v588_v57 = vpop.f32.mrb[18].mxu0 }
 0x1ca   :  { %v428_v58 = vadd.f32 %v427_v56, %v1077_v44  ;;  %v589_v59 = vadd.f32 %v588_v57, %v1079_v45  ;;  %v429_v60 = vpop.f32.mrb[3].mxu1  ;;  %v590_v61 = vpop.f32.mrb[19].mxu0 }
 0x1cb   :  { %v430_v62 = vadd.f32 %v429_v60, %v1081_v46  ;;  %v591_v63 = vadd.f32 %v590_v61, %v1083_v47 }
 0x1cc   :  { %681 = vst [vmem:[%s1346_s5 + $0x20] sm:$0xff] %v428_v58  ;;  %683 = vst [vmem:[%s1346_s5 + $0x30] sm:$0xff] %v589_v59 }
 0x1cd   :  { %682 = vst [vmem:[%s1346_s5 + $0x28] sm:$0xff] %v430_v62  ;;  %684 = vst [vmem:[%s1346_s5 + $0x38] sm:$0xff] %v591_v63  ;;  %v433_v0 = vpop.f32.mrb[4].mxu1  ;;  %v594_v1 = vpop.f32.mrb[20].mxu0 }
 0x1ce   :  { %v434_v2 = vadd.f32 %v433_v0, %v1077_v44  ;;  %v595_v3 = vadd.f32 %v594_v1, %v1079_v45  ;;  %v435_v4 = vpop.f32.mrb[5].mxu1  ;;  %v596_v5 = vpop.f32.mrb[21].mxu0 }
 0x1cf   :  { %v436_v6 = vadd.f32 %v435_v4, %v1081_v46  ;;  %v597_v7 = vadd.f32 %v596_v5, %v1083_v47 }
 0x1d0   :  { %685 = vst [vmem:[%s1346_s5 + $0x40] sm:$0xff] %v434_v2  ;;  %687 = vst [vmem:[%s1346_s5 + $0x50] sm:$0xff] %v595_v3 }
 0x1d1   :  { %686 = vst [vmem:[%s1346_s5 + $0x48] sm:$0xff] %v436_v6  ;;  %688 = vst [vmem:[%s1346_s5 + $0x58] sm:$0xff] %v597_v7  ;;  %v439_v8 = vpop.f32.mrb[6].mxu1  ;;  %v600_v9 = vpop.f32.mrb[22].mxu0 }
 0x1d2   :  { %v440_v10 = vadd.f32 %v439_v8, %v1077_v44  ;;  %v601_v11 = vadd.f32 %v600_v9, %v1079_v45  ;;  %v441_v12 = vpop.f32.mrb[7].mxu1  ;;  %v602_v13 = vpop.f32.mrb[23].mxu0 }
 0x1d3   :  { %v442_v14 = vadd.f32 %v441_v12, %v1081_v46  ;;  %v603_v15 = vadd.f32 %v602_v13, %v1083_v47 }
 0x1d4   :  { %689 = vst [vmem:[%s1346_s5 + $0x60] sm:$0xff] %v440_v10  ;;  %691 = vst [vmem:[%s1346_s5 + $0x70] sm:$0xff] %v601_v11 }
 0x1d5   :  { %690 = vst [vmem:[%s1346_s5 + $0x68] sm:$0xff] %v442_v14  ;;  %692 = vst [vmem:[%s1346_s5 + $0x78] sm:$0xff] %v603_v15  ;;  %v445_v16 = vpop.f32.mrb[8].mxu1  ;;  %v606_v17 = vpop.f32.mrb[24].mxu0 }
 0x1d6   :  { %v446_v18 = vadd.f32 %v445_v16, %v1077_v44  ;;  %v607_v19 = vadd.f32 %v606_v17, %v1079_v45  ;;  %v447_v20 = vpop.f32.mrb[9].mxu1  ;;  %v608_v21 = vpop.f32.mrb[25].mxu0 }
 0x1d7   :  { %v448_v22 = vadd.f32 %v447_v20, %v1081_v46  ;;  %v609_v23 = vadd.f32 %v608_v21, %v1083_v47 }
 0x1d8   :  { %693 = vst [vmem:[%s1346_s5 + $0x80] sm:$0xff] %v446_v18  ;;  %695 = vst [vmem:[%s1346_s5 + $0x90] sm:$0xff] %v607_v19 }
 0x1d9   :  { %694 = vst [vmem:[%s1346_s5 + $0x88] sm:$0xff] %v448_v22  ;;  %696 = vst [vmem:[%s1346_s5 + $0x98] sm:$0xff] %v609_v23  ;;  %v451_v24 = vpop.f32.mrb[10].mxu1  ;;  %v612_v25 = vpop.f32.mrb[26].mxu0 }
 0x1da   :  { %v452_v26 = vadd.f32 %v451_v24, %v1077_v44  ;;  %v613_v27 = vadd.f32 %v612_v25, %v1079_v45  ;;  %v453_v28 = vpop.f32.mrb[11].mxu1  ;;  %v614_v29 = vpop.f32.mrb[27].mxu0 }
 0x1db   :  { %v454_v30 = vadd.f32 %v453_v28, %v1081_v46  ;;  %v615_v31 = vadd.f32 %v614_v29, %v1083_v47 }
 0x1dc   :  { %697 = vst [vmem:[%s1346_s5 + $0xa0] sm:$0xff] %v452_v26  ;;  %699 = vst [vmem:[%s1346_s5 + $0xb0] sm:$0xff] %v613_v27 }
 0x1dd   :  { %698 = vst [vmem:[%s1346_s5 + $0xa8] sm:$0xff] %v454_v30  ;;  %700 = vst [vmem:[%s1346_s5 + $0xb8] sm:$0xff] %v615_v31  ;;  %v457_v32 = vpop.f32.mrb[12].mxu1  ;;  %v618_v33 = vpop.f32.mrb[28].mxu0 }
 0x1de   :  { %v458_v34 = vadd.f32 %v457_v32, %v1077_v44  ;;  %v619_v35 = vadd.f32 %v618_v33, %v1079_v45  ;;  %v459_v36 = vpop.f32.mrb[13].mxu1  ;;  %v620_v37 = vpop.f32.mrb[29].mxu0 }
 0x1df   :  { %v460_v38 = vadd.f32 %v459_v36, %v1081_v46  ;;  %v621_v39 = vadd.f32 %v620_v37, %v1083_v47 }
 0x1e0   :  { %701 = vst [vmem:[%s1346_s5 + $0xc0] sm:$0xff] %v458_v34  ;;  %703 = vst [vmem:[%s1346_s5 + $0xd0] sm:$0xff] %v619_v35 }
 0x1e1   :  { %702 = vst [vmem:[%s1346_s5 + $0xc8] sm:$0xff] %v460_v38  ;;  %704 = vst [vmem:[%s1346_s5 + $0xd8] sm:$0xff] %v621_v39  ;;  %v463_v40 = vpop.f32.mrb[14].mxu1  ;;  %v624_v41 = vpop.f32.mrb[30].mxu0 }
 0x1e2   :  { %v464_v42 = vadd.f32 %v463_v40, %v1077_v44  ;;  %v625_v43 = vadd.f32 %v624_v41, %v1079_v45  ;;  %v465_v48 = vpop.f32.mrb[15].mxu1  ;;  %v626_v49 = vpop.f32.mrb[31].mxu0 }
 0x1e3   :  { %v466_v50 = vadd.f32 %v465_v48, %v1081_v46  ;;  %v627_v51 = vadd.f32 %v626_v49, %v1083_v47 }
 0x1e4   :  { %705 = vst [vmem:[%s1346_s5 + $0xe0] sm:$0xff] %v464_v42  ;;  %707 = vst [vmem:[%s1346_s5 + $0xf0] sm:$0xff] %v625_v43 }
 0x1e5   :  { %706 = vst [vmem:[%s1346_s5 + $0xe8] sm:$0xff] %v466_v50  ;;  %708 = vst [vmem:[%s1346_s5 + $0xf8] sm:$0xff] %v627_v51  ;;  %v469_v52 = vpop.f32.mrb[16].mxu1  ;;  %v630_v53 = vpop.f32.mrb[32].mxu0 }
 0x1e6   :  { %v470_v54 = vadd.f32 %v469_v52, %v1077_v44  ;;  %v631_v55 = vadd.f32 %v630_v53, %v1079_v45  ;;  %v471_v56 = vpop.f32.mrb[17].mxu1  ;;  %v632_v57 = vpop.f32.mrb[33].mxu0 }
 0x1e7   :  { %v472_v58 = vadd.f32 %v471_v56, %v1081_v46  ;;  %v633_v59 = vadd.f32 %v632_v57, %v1083_v47 }
 0x1e8   :  { %709 = vst [vmem:[%s1346_s5 + $0x100] sm:$0xff] %v470_v54  ;;  %711 = vst [vmem:[%s1346_s5 + $0x110] sm:$0xff] %v631_v55 }
 0x1e9   :  { %710 = vst [vmem:[%s1346_s5 + $0x108] sm:$0xff] %v472_v58  ;;  %712 = vst [vmem:[%s1346_s5 + $0x118] sm:$0xff] %v633_v59  ;;  %v475_v60 = vpop.f32.mrb[18].mxu1  ;;  %v636_v61 = vpop.f32.mrb[34].mxu0 }
 0x1ea   :  { %v476_v62 = vadd.f32 %v475_v60, %v1077_v44  ;;  %v637_v63 = vadd.f32 %v636_v61, %v1079_v45  ;;  %v477_v0 = vpop.f32.mrb[19].mxu1  ;;  %v638_v1 = vpop.f32.mrb[35].mxu0 }
 0x1eb   :  { %v478_v2 = vadd.f32 %v477_v0, %v1081_v46  ;;  %v639_v3 = vadd.f32 %v638_v1, %v1083_v47 }
 0x1ec   :  { %713 = vst [vmem:[%s1346_s5 + $0x120] sm:$0xff] %v476_v62  ;;  %715 = vst [vmem:[%s1346_s5 + $0x130] sm:$0xff] %v637_v63 }
 0x1ed   :  { %714 = vst [vmem:[%s1346_s5 + $0x128] sm:$0xff] %v478_v2  ;;  %716 = vst [vmem:[%s1346_s5 + $0x138] sm:$0xff] %v639_v3  ;;  %v481_v4 = vpop.f32.mrb[20].mxu1  ;;  %v642_v5 = vpop.f32.mrb[36].mxu0 }
 0x1ee   :  { %v482_v6 = vadd.f32 %v481_v4, %v1077_v44  ;;  %v643_v7 = vadd.f32 %v642_v5, %v1079_v45  ;;  %v483_v8 = vpop.f32.mrb[21].mxu1  ;;  %v644_v9 = vpop.f32.mrb[37].mxu0 }
 0x1ef   :  { %v484_v10 = vadd.f32 %v483_v8, %v1081_v46  ;;  %v645_v11 = vadd.f32 %v644_v9, %v1083_v47 }
 0x1f0   :  { %717 = vst [vmem:[%s1346_s5 + $0x140] sm:$0xff] %v482_v6  ;;  %719 = vst [vmem:[%s1346_s5 + $0x150] sm:$0xff] %v643_v7 }
 0x1f1   :  { %718 = vst [vmem:[%s1346_s5 + $0x148] sm:$0xff] %v484_v10  ;;  %720 = vst [vmem:[%s1346_s5 + $0x158] sm:$0xff] %v645_v11  ;;  %v487_v12 = vpop.f32.mrb[22].mxu1  ;;  %v648_v13 = vpop.f32.mrb[38].mxu0 }
 0x1f2   :  { %v488_v14 = vadd.f32 %v487_v12, %v1077_v44  ;;  %v649_v15 = vadd.f32 %v648_v13, %v1079_v45  ;;  %v489_v16 = vpop.f32.mrb[23].mxu1  ;;  %v650_v17 = vpop.f32.mrb[39].mxu0 }
 0x1f3   :  { %v490_v18 = vadd.f32 %v489_v16, %v1081_v46  ;;  %v651_v19 = vadd.f32 %v650_v17, %v1083_v47 }
 0x1f4   :  { %721 = vst [vmem:[%s1346_s5 + $0x160] sm:$0xff] %v488_v14  ;;  %723 = vst [vmem:[%s1346_s5 + $0x170] sm:$0xff] %v649_v15 }
 0x1f5   :  { %722 = vst [vmem:[%s1346_s5 + $0x168] sm:$0xff] %v490_v18  ;;  %724 = vst [vmem:[%s1346_s5 + $0x178] sm:$0xff] %v651_v19  ;;  %v493_v20 = vpop.f32.mrb[24].mxu1  ;;  %v654_v21 = vpop.f32.mrb[40].mxu0 }
 0x1f6   :  { %v494_v22 = vadd.f32 %v493_v20, %v1077_v44  ;;  %v655_v23 = vadd.f32 %v654_v21, %v1079_v45  ;;  %v495_v24 = vpop.f32.mrb[25].mxu1  ;;  %v656_v25 = vpop.f32.mrb[41].mxu0 }
 0x1f7   :  { %v496_v26 = vadd.f32 %v495_v24, %v1081_v46  ;;  %v657_v27 = vadd.f32 %v656_v25, %v1083_v47 }
 0x1f8   :  { %725 = vst [vmem:[%s1346_s5 + $0x180] sm:$0xff] %v494_v22  ;;  %727 = vst [vmem:[%s1346_s5 + $0x190] sm:$0xff] %v655_v23 }
 0x1f9   :  { %726 = vst [vmem:[%s1346_s5 + $0x188] sm:$0xff] %v496_v26  ;;  %728 = vst [vmem:[%s1346_s5 + $0x198] sm:$0xff] %v657_v27  ;;  %v499_v28 = vpop.f32.mrb[26].mxu1  ;;  %v660_v29 = vpop.f32.mrb[42].mxu0 }
 0x1fa   :  { %v500_v30 = vadd.f32 %v499_v28, %v1077_v44  ;;  %v661_v31 = vadd.f32 %v660_v29, %v1079_v45  ;;  %v501_v32 = vpop.f32.mrb[27].mxu1  ;;  %v662_v33 = vpop.f32.mrb[43].mxu0 }
 0x1fb   :  { %v502_v34 = vadd.f32 %v501_v32, %v1081_v46  ;;  %v663_v35 = vadd.f32 %v662_v33, %v1083_v47 }
 0x1fc   :  { %729 = vst [vmem:[%s1346_s5 + $0x1a0] sm:$0xff] %v500_v30  ;;  %731 = vst [vmem:[%s1346_s5 + $0x1b0] sm:$0xff] %v661_v31 }
 0x1fd   :  { %730 = vst [vmem:[%s1346_s5 + $0x1a8] sm:$0xff] %v502_v34  ;;  %732 = vst [vmem:[%s1346_s5 + $0x1b8] sm:$0xff] %v663_v35  ;;  %v505_v36 = vpop.f32.mrb[28].mxu1  ;;  %v666_v37 = vpop.f32.mrb[44].mxu0 }
 0x1fe   :  { %v506_v38 = vadd.f32 %v505_v36, %v1077_v44  ;;  %v667_v39 = vadd.f32 %v666_v37, %v1079_v45  ;;  %v507_v40 = vpop.f32.mrb[29].mxu1  ;;  %v668_v41 = vpop.f32.mrb[45].mxu0 }
 0x1ff   :  { %v508_v42 = vadd.f32 %v507_v40, %v1081_v46  ;;  %v669_v43 = vadd.f32 %v668_v41, %v1083_v47 }
 0x200   :  { %733 = vst [vmem:[%s1346_s5 + $0x1c0] sm:$0xff] %v506_v38  ;;  %735 = vst [vmem:[%s1346_s5 + $0x1d0] sm:$0xff] %v667_v39 }
 0x201   :  { %734 = vst [vmem:[%s1346_s5 + $0x1c8] sm:$0xff] %v508_v42  ;;  %736 = vst [vmem:[%s1346_s5 + $0x1d8] sm:$0xff] %v669_v43  ;;  %v511_v48 = vpop.f32.mrb[30].mxu1  ;;  %v672_v49 = vpop.f32.mrb[46].mxu0 }
 0x202   :  { %v512_v50 = vadd.f32 %v511_v48, %v1077_v44  ;;  %v673_v51 = vadd.f32 %v672_v49, %v1079_v45  ;;  %v513_v52 = vpop.f32.mrb[31].mxu1  ;;  %v674_v53 = vpop.f32.mrb[47].mxu0 }
 0x203   :  { %v514_v54 = vadd.f32 %v513_v52, %v1081_v46  ;;  %v675_v55 = vadd.f32 %v674_v53, %v1083_v47 }
 0x204   :  { %737 = vst [vmem:[%s1346_s5 + $0x1e0] sm:$0xff] %v512_v50  ;;  %739 = vst [vmem:[%s1346_s5 + $0x1f0] sm:$0xff] %v673_v51 }
 0x205   :  { %738 = vst [vmem:[%s1346_s5 + $0x1e8] sm:$0xff] %v514_v54  ;;  %740 = vst [vmem:[%s1346_s5 + $0x1f8] sm:$0xff] %v675_v55 }
 0x206   :  { %745 = vsyncpa [#allocation3], 1 }

// kernel: simple_lstm_forward.3
= control target key start
LH: loop header
LB: loop body
LE: loop exit
PB: predicated region body
PF: predicated region fallthrough
CT: control target
= control target key end

     0   :  { %v5656_v3 = vmov 0.0   ;;  %vm4125_vm0 = vcmask 64512   ;;  %s7734_s1 = inlined_call_operand.vmem [shape: f32[128,512], index: 1, kind: input, shape index: {}]   ;;  %s7735_s0 = inlined_call_operand.vmem [shape: f32[16,8,512], index: 0, kind: input, shape index: {}]   ;;  %s7736_s2 = inlined_call_operand.vmem [shape: f32[128,8], index: 2, kind: input, shape index: {}]   ;;  %s7737_s3 = inlined_call_operand.vmem [shape: f32[1,8], index: 3, kind: input, shape index: {}]   ;;  %s7738_s4 = inlined_call_operand.vmem [shape: f32[128,8], index: 4, kind: output, shape index: {}]  }
   0x1   :  { %v29_v0 = vld [vmem:[%s7734_s1 + $0x8] sm:$0xff]  ;;  %v28_v2 = vld [vmem:[%s7734_s1] sm:$0xff]  ;;  %156 = vmatprep.mubr.f32.mxu1 %v5656_v3  ;;  %400 = vmatprep.mubr.f32.mxu0 %v5656_v3  ;;  %v31_v48 = vld [vmem:[%s7734_s1 + $0x18] sm:$0xff] }
   0x2   :  { %v33_v1 = vld [vmem:[%s7734_s1 + $0x28] sm:$0xff]  ;;  %v32_v5 = vld [vmem:[%s7734_s1 + $0x20] sm:$0xff]  ;;  %v35_v49 = vld [vmem:[%s7734_s1 + $0x38] sm:$0xff] }
   0x3   :  { %v5693_v4 = vpack.c.bf16 %v33_v1, %v29_v0  ;;  %v37_v6 = vld [vmem:[%s7734_s1 + $0x48] sm:$0xff]  ;;  %v5704_v8 = vpack.c.bf16 %v32_v5, %v28_v2  ;;  %v36_v10 = vld [vmem:[%s7734_s1 + $0x40] sm:$0xff]  ;;  %v5847_v51 = vpack.c.bf16 %v35_v49, %v31_v48  ;;  %v30_v52 = vld [vmem:[%s7734_s1 + $0x10] sm:$0xff] }
   0x4   :  { %v41_v7 = vld [vmem:[%s7734_s1 + $0x68] sm:$0xff]  ;;  %v40_v11 = vld [vmem:[%s7734_s1 + $0x60] sm:$0xff]  ;;  %v34_v53 = vld [vmem:[%s7734_s1 + $0x30] sm:$0xff] }
   0x5   :  { %v5706_v9 = vpack.c.bf16 %v41_v7, %v37_v6  ;;  %v45_v12 = vld [vmem:[%s7734_s1 + $0x88] sm:$0xff]  ;;  %4344 = vmatprep.subr.bf16.mxu1 %v5693_v4  ;;  %4408 = vmatprep.subr.bf16.mxu0 %v5693_v4  ;;  %v5723_v14 = vpack.c.bf16 %v40_v11, %v36_v10  ;;  %v44_v16 = vld [vmem:[%s7734_s1 + $0x80] sm:$0xff]  ;;  %v39_v54 = vld [vmem:[%s7734_s1 + $0x58] sm:$0xff]  ;;  %v5863_v56 = vpack.c.bf16 %v34_v53, %v30_v52 }
   0x6   :  { %v49_v13 = vld [vmem:[%s7734_s1 + $0xa8] sm:$0xff]  ;;  %4346 = vmatpush1.bf16.msra.mxu1 %v5704_v8  ;;  %4410 = vmatpush1.bf16.msra.mxu0 %v5704_v8  ;;  %v48_v17 = vld [vmem:[%s7734_s1 + $0xa0] sm:$0xff]  ;;  %v43_v55 = vld [vmem:[%s7734_s1 + $0x78] sm:$0xff] }
   0x7   :  { %4348 = vmatprep.subr.bf16.mxu1 %v5706_v9  ;;  %v5727_v15 = vpack.c.bf16 %v49_v13, %v45_v12  ;;  %4412 = vmatprep.subr.bf16.mxu0 %v5706_v9  ;;  %v53_v18 = vld [vmem:[%s7734_s1 + $0xc8] sm:$0xff]  ;;  %v5743_v20 = vpack.c.bf16 %v48_v17, %v44_v16  ;;  %v52_v22 = vld [vmem:[%s7734_s1 + $0xc0] sm:$0xff]  ;;  %v5867_v57 = vpack.c.bf16 %v43_v55, %v39_v54  ;;  %v38_v58 = vld [vmem:[%s7734_s1 + $0x50] sm:$0xff] }
   0x8   :  { %v57_v19 = vld [vmem:[%s7734_s1 + $0xe8] sm:$0xff]  ;;  %v56_v23 = vld [vmem:[%s7734_s1 + $0xe0] sm:$0xff]  ;;  %v42_v59 = vld [vmem:[%s7734_s1 + $0x70] sm:$0xff] }
   0x9   :  { %v5747_v21 = vpack.c.bf16 %v57_v19, %v53_v18  ;;  %v61_v24 = vld [vmem:[%s7734_s1 + $0x108] sm:$0xff]  ;;  %v5763_v26 = vpack.c.bf16 %v56_v23, %v52_v22  ;;  %v60_v28 = vld [vmem:[%s7734_s1 + $0x100] sm:$0xff]  ;;  %v47_v60 = vld [vmem:[%s7734_s1 + $0x98] sm:$0xff]  ;;  %v5884_v62 = vpack.c.bf16 %v42_v59, %v38_v58 }
   0xa   :  { %4350 = vmatpush1.bf16.msra.mxu1 %v5723_v14  ;;  %4414 = vmatpush1.bf16.msra.mxu0 %v5723_v14  ;;  %v65_v25 = vld [vmem:[%s7734_s1 + $0x128] sm:$0xff]  ;;  %v64_v29 = vld [vmem:[%s7734_s1 + $0x120] sm:$0xff]  ;;  %v51_v61 = vld [vmem:[%s7734_s1 + $0xb8] sm:$0xff] }
   0xb   :  { %4352 = vmatprep.subr.bf16.mxu1 %v5727_v15  ;;  %4416 = vmatprep.subr.bf16.mxu0 %v5727_v15  ;;  %v5767_v27 = vpack.c.bf16 %v65_v25, %v61_v24  ;;  %v69_v30 = vld [vmem:[%s7734_s1 + $0x148] sm:$0xff]  ;;  %v5783_v32 = vpack.c.bf16 %v64_v29, %v60_v28  ;;  %v68_v34 = vld [vmem:[%s7734_s1 + $0x140] sm:$0xff]  ;;  %v5888_v63 = vpack.c.bf16 %v51_v61, %v47_v60  ;;  %v46_v0 = vld [vmem:[%s7734_s1 + $0x90] sm:$0xff] }
   0xc   :  { %v73_v31 = vld [vmem:[%s7734_s1 + $0x168] sm:$0xff]  ;;  %v72_v35 = vld [vmem:[%s7734_s1 + $0x160] sm:$0xff]  ;;  %v50_v1 = vld [vmem:[%s7734_s1 + $0xb0] sm:$0xff] }
   0xd   :  { %v5787_v33 = vpack.c.bf16 %v73_v31, %v69_v30  ;;  %v77_v36 = vld [vmem:[%s7734_s1 + $0x188] sm:$0xff]  ;;  %v5803_v38 = vpack.c.bf16 %v72_v35, %v68_v34  ;;  %v76_v40 = vld [vmem:[%s7734_s1 + $0x180] sm:$0xff]  ;;  %v55_v2 = vld [vmem:[%s7734_s1 + $0xd8] sm:$0xff]  ;;  %v5903_v6 = vpack.c.bf16 %v50_v1, %v46_v0 }
   0xe   :  { %4354 = vmatpush1.bf16.msra.mxu1 %v5743_v20  ;;  %4418 = vmatpush1.bf16.msra.mxu0 %v5743_v20  ;;  %v81_v37 = vld [vmem:[%s7734_s1 + $0x1a8] sm:$0xff]  ;;  %v80_v41 = vld [vmem:[%s7734_s1 + $0x1a0] sm:$0xff]  ;;  %v59_v5 = vld [vmem:[%s7734_s1 + $0xf8] sm:$0xff] }
   0xf   :  { %4356 = vmatprep.subr.bf16.mxu1 %v5747_v21  ;;  %4420 = vmatprep.subr.bf16.mxu0 %v5747_v21  ;;  %v5807_v39 = vpack.c.bf16 %v81_v37, %v77_v36  ;;  %v85_v42 = vld [vmem:[%s7734_s1 + $0x1c8] sm:$0xff]  ;;  %v5823_v44 = vpack.c.bf16 %v80_v41, %v76_v40  ;;  %v84_v46 = vld [vmem:[%s7734_s1 + $0x1c0] sm:$0xff]  ;;  %v5906_v7 = vpack.c.bf16 %v59_v5, %v55_v2  ;;  %v54_v10 = vld [vmem:[%s7734_s1 + $0xd0] sm:$0xff] }
  0x10   :  { %v89_v43 = vld [vmem:[%s7734_s1 + $0x1e8] sm:$0xff]  ;;  %v88_v47 = vld [vmem:[%s7734_s1 + $0x1e0] sm:$0xff]  ;;  %v58_v11 = vld [vmem:[%s7734_s1 + $0xf0] sm:$0xff] }
  0x11   :  { %v5827_v45 = vpack.c.bf16 %v89_v43, %v85_v42  ;;  %v5843_v50 = vpack.c.bf16 %v88_v47, %v84_v46  ;;  %v63_v12 = vld [vmem:[%s7734_s1 + $0x118] sm:$0xff]  ;;  %v5921_v16 = vpack.c.bf16 %v58_v11, %v54_v10  ;;  %v62_v18 = vld [vmem:[%s7734_s1 + $0x110] sm:$0xff]  ;;  %v24_v53 = vld [vmem:[%s7735_s0 + $0x8] sm:$0xff] }
  0x12   :  { %4358 = vmatpush1.bf16.msra.mxu1 %v5763_v26  ;;  %4422 = vmatpush1.bf16.msra.mxu0 %v5763_v26  ;;  %v67_v13 = vld [vmem:[%s7734_s1 + $0x138] sm:$0xff]  ;;  %v66_v19 = vld [vmem:[%s7734_s1 + $0x130] sm:$0xff]  ;;  %v23_v54 = vld [vmem:[%s7735_s0] sm:$0xff] }
  0x13   :  { %4360 = vmatprep.subr.bf16.mxu1 %v5767_v27  ;;  %4424 = vmatprep.subr.bf16.mxu0 %v5767_v27  ;;  %v5924_v17 = vpack.c.bf16 %v67_v13, %v63_v12  ;;  %v71_v22 = vld [vmem:[%s7734_s1 + $0x158] sm:$0xff]  ;;  %v5939_v24 = vpack.c.bf16 %v66_v19, %v62_v18  ;;  %v70_v28 = vld [vmem:[%s7734_s1 + $0x150] sm:$0xff] }
  0x14   :  { %v75_v23 = vld [vmem:[%s7734_s1 + $0x178] sm:$0xff]  ;;  %v74_v29 = vld [vmem:[%s7734_s1 + $0x170] sm:$0xff] }
  0x15   :  { %v5942_v25 = vpack.c.bf16 %v75_v23, %v71_v22  ;;  %v79_v30 = vld [vmem:[%s7734_s1 + $0x198] sm:$0xff]  ;;  %v5957_v34 = vpack.c.bf16 %v74_v29, %v70_v28  ;;  %v78_v36 = vld [vmem:[%s7734_s1 + $0x190] sm:$0xff] }
  0x16   :  { %4362 = vmatpush1.bf16.msra.mxu1 %v5783_v32  ;;  %4426 = vmatpush1.bf16.msra.mxu0 %v5783_v32  ;;  %v83_v31 = vld [vmem:[%s7734_s1 + $0x1b8] sm:$0xff]  ;;  %v82_v37 = vld [vmem:[%s7734_s1 + $0x1b0] sm:$0xff] }
  0x17   :  { %4364 = vmatprep.subr.bf16.mxu1 %v5787_v33  ;;  %4428 = vmatprep.subr.bf16.mxu0 %v5787_v33  ;;  %v5960_v35 = vpack.c.bf16 %v83_v31, %v79_v30  ;;  %v87_v40 = vld [vmem:[%s7734_s1 + $0x1d8] sm:$0xff]  ;;  %v5975_v42 = vpack.c.bf16 %v82_v37, %v78_v36  ;;  %v86_v46 = vld [vmem:[%s7734_s1 + $0x1d0] sm:$0xff] }
  0x18   :  { %v91_v41 = vld [vmem:[%s7734_s1 + $0x1f8] sm:$0xff]  ;;  %v90_v47 = vld [vmem:[%s7734_s1 + $0x1f0] sm:$0xff] }
  0x19   :  { %v5978_v43 = vpack.c.bf16 %v91_v41, %v87_v40  ;;  %v5987_v48 = vpack.c.bf16 %v90_v47, %v86_v46  ;;  %v25_v2 = vld [vmem:[%s7735_s0 + $0x10] sm:$0xff]  ;;  %v26_v10 = vld [vmem:[%s7735_s0 + $0x18] sm:$0xff] }
  0x1a   :  { %4366 = vmatpush1.bf16.msra.mxu1 %v5803_v38  ;;  %4430 = vmatpush1.bf16.msra.mxu0 %v5803_v38 }
  0x1b   :  { %4368 = vmatprep.subr.bf16.mxu1 %v5807_v39  ;;  %4432 = vmatprep.subr.bf16.mxu0 %v5807_v39 }
  0x1e   :  { %4370 = vmatpush1.bf16.msra.mxu1 %v5823_v44  ;;  %4434 = vmatpush1.bf16.msra.mxu0 %v5823_v44 }
  0x1f   :  { %4372 = vmatprep.subr.bf16.mxu1 %v5827_v45  ;;  %4436 = vmatprep.subr.bf16.mxu0 %v5827_v45 }
  0x22   :  { %4374 = vmatpush1.bf16.msra.mxu1 %v5843_v50  ;;  %4438 = vmatpush1.bf16.msra.mxu0 %v5843_v50 }
  0x23   :  { %4376 = vmatprep.subr.bf16.mxu1 %v5847_v51  ;;  %4472 = vmatprep.subr.bf16.mxu0 %v5693_v4 }
  0x25   :  { %157 = vmatmul.mubr.f32.vlgmr.msra.gmra.mrb[0].mxu1 %v5656_v3 }
  0x26   :  { %4378 = vmatpush1.bf16.msra.mxu1 %v5863_v56  ;;  %227 = vmatprep.mubr.f32.mxu1 %v5656_v3 }
  0x27   :  { %4380 = vmatprep.subr.bf16.mxu1 %v5867_v57 }
  0x2a   :  { %4382 = vmatpush1.bf16.msra.mxu1 %v5884_v62 }
  0x2b   :  { %4384 = vmatprep.subr.bf16.mxu1 %v5888_v63 }
  0x2e   :  { %4386 = vmatpush1.bf16.msra.mxu1 %v5903_v6 }
  0x2f   :  { %4388 = vmatprep.subr.bf16.mxu1 %v5906_v7 }
  0x32   :  { %4390 = vmatpush1.bf16.msra.mxu1 %v5921_v16 }
  0x33   :  { %4392 = vmatprep.subr.bf16.mxu1 %v5924_v17 }
  0x36   :  { %4394 = vmatpush1.bf16.msra.mxu1 %v5939_v24 }
  0x37   :  { %4396 = vmatprep.subr.bf16.mxu1 %v5942_v25 }
  0x3a   :  { %4398 = vmatpush1.bf16.msra.mxu1 %v5957_v34 }
  0x3b   :  { %4400 = vmatprep.subr.bf16.mxu1 %v5960_v35 }
  0x3e   :  { %4402 = vmatpush1.bf16.msra.mxu1 %v5975_v42 }
  0x3f   :  { %4404 = vmatprep.subr.bf16.mxu1 %v5978_v43 }
  0x42   :  { %4406 = vmatpush1.bf16.msra.mxu1 %v5987_v48 }
  0x43   :  { %4440 = vmatprep.subr.bf16.mxu1 %v5847_v51 }
  0x45   :  { %228 = vmatmul.mubr.f32.vlgmr.msra.gmra.mrb[2].mxu1 %v5656_v3 }
  0x46   :  { %4442 = vmatpush1.bf16.msra.mxu1 %v5863_v56  ;;  %471 = vmatprep.mubr.f32.mxu1 %v5656_v3 }
  0x47   :  { %4444 = vmatprep.subr.bf16.mxu1 %v5867_v57 }
  0x4a   :  { %4446 = vmatpush1.bf16.msra.mxu1 %v5884_v62 }
  0x4b   :  { %4448 = vmatprep.subr.bf16.mxu1 %v5888_v63 }
  0x4e   :  { %4450 = vmatpush1.bf16.msra.mxu1 %v5903_v6 }
  0x4f   :  { %4452 = vmatprep.subr.bf16.mxu1 %v5906_v7 }
  0x52   :  { %4454 = vmatpush1.bf16.msra.mxu1 %v5921_v16 }
  0x53   :  { %4456 = vmatprep.subr.bf16.mxu1 %v5924_v17 }
  0x56   :  { %4458 = vmatpush1.bf16.msra.mxu1 %v5939_v24 }
  0x57   :  { %4460 = vmatprep.subr.bf16.mxu1 %v5942_v25 }
  0x5a   :  { %4462 = vmatpush1.bf16.msra.mxu1 %v5957_v34 }
  0x5b   :  { %4464 = vmatprep.subr.bf16.mxu1 %v5960_v35 }
  0x5e   :  { %4466 = vmatpush1.bf16.msra.mxu1 %v5975_v42 }
  0x5f   :  { %4468 = vmatprep.subr.bf16.mxu1 %v5978_v43 }
  0x62   :  { %4470 = vmatpush1.bf16.msra.mxu1 %v5987_v48 }
  0x63   :  { %4504 = vmatprep.subr.bf16.mxu1 %v5847_v51 }
  0xf8   :  { %v158_v49 = vpop.f32.mrb[0].mxu1 }
  0xf9   :  { %v160_v52 = vpop.f32.mrb[1].mxu1  ;;  %v234_v58 = vadd.f32 %v158_v49, %v23_v54  ;;  %v4152_v49 = vld [vmem:[%s7735_s0 + $0x38] sm:$0xff] }
  0xfa   :  { %v235_v55 = vadd.f32 %v160_v52, %v24_v53 }
  0xfb   :  { %v4146_v60 = vmul.f32 -1.442695, %v234_v58 }
  0xfc   :  { %v4147_v59 = vmul.f32 -1.442695, %v235_v55 }
  0xfe   :  { %5400 = vpow2.f32 %v4147_v59 }
  0xff   :  { %5402 = vpow2.f32 %v4146_v60 }
 0x108   :  { %v5401_v61 = vpop.eup %5400 }
 0x109   :  { %v5403_v0 = vpop.eup %5402  ;;  %v248_v1 = vadd.f32 1.0, %v5401_v61 }
 0x10a   :  { %v247_v5 = vadd.f32 1.0, %v5403_v0 }
 0x10b   :  { %5404 = vrcp.f32 %v248_v1 }
 0x10c   :  { %5406 = vrcp.f32 %v247_v5 }
 0x115   :  { %v5405_v22 = vpop.eup %5404 }
 0x116   :  { %v5407_v23 = vpop.eup %5406  ;;  %v258_v30 = vmul.f32 0.0, %v5405_v22 }
 0x118   :  { %v229_v11 = vpop.f32.mrb[2].mxu1 }
 0x119   :  { %v236_v12 = vadd.f32 %v229_v11, %v25_v2  ;;  %v231_v13 = vpop.f32.mrb[3].mxu1 }
 0x11a   :  { %v237_v18 = vadd.f32 %v231_v13, %v26_v10 }
 0x11b   :  { %v4148_v19 = vmul.f32 -1.442695, %v236_v12 }
 0x11c   :  { %5408 = vtanh.f32 %v237_v18 }
 0x11d   :  { %5410 = vpow2.f32 %v4148_v19  ;;  %v823_v19 = vld [vmem:[%s7734_s1 + $0x1e8] sm:$0xff] }
 0x126   :  { %v5409_v28 = vpop.eup %5408 }
 0x127   :  { %v5411_v29 = vpop.eup %5410  ;;  %v259_v31 = vmul.f32 %v5409_v28, %v5407_v23  ;;  %v818_v28 = vld [vmem:[%s7734_s1 + $0x1c0] sm:$0xff] }
 0x128   :  { %v249_v36 = vadd.f32 1.0, %v5411_v29  ;;  %v822_v29 = vld [vmem:[%s7734_s1 + $0x1e0] sm:$0xff] }
 0x129   :  { %v6022_v37 = vadd.f32 %v259_v31, %v258_v30  ;;  %v6183_v30 = vpack.c.bf16 %v822_v29, %v818_v28  ;;  %v4156_v31 = vld [vmem:[%s7735_s0 + $0x40] sm:$0xff]  ;;  %v1017_v29 = vld [vmem:[%s7734_s1 + $0x50] sm:$0xff] }
 0x12a   :  { %5412 = vrcp.f32 %v249_v36  ;;  %v4157_v36 = vld [vmem:[%s7735_s0 + $0x48] sm:$0xff] }
 0x12b   :  { %5414 = vtanh.f32 %v6022_v37 }
 0x134   :  { %v5413_v40 = vpop.eup %5412 }
 0x135   :  { %v5415_v41 = vpop.eup %5414 }
 0x136   :  { %v6025_v46 = vmul.f32 %v5415_v41, %v5413_v40 }
 0x138   :  { %401 = vmatmul.mubr.f32.vlgmr.msra.gmra.mrb[0].mxu0 %v6025_v46  ;;  %472 = vmatmul.mubr.f32.vlgmr.msra.gmra.mrb[4].mxu1 %v6025_v46 }
 0x139   :  { %4474 = vmatpush1.bf16.msra.mxu0 %v5704_v8  ;;  %4506 = vmatpush1.bf16.msra.mxu1 %v5863_v56 }
 0x13a   :  { %4476 = vmatprep.subr.bf16.mxu0 %v5706_v9  ;;  %4508 = vmatprep.subr.bf16.mxu1 %v5867_v57 }
 0x13b   :  { %645 = vmatprep.mubr.f32.mxu0 %v5656_v3  ;;  %716 = vmatprep.mubr.f32.mxu1 %v5656_v3 }
 0x13d   :  { %4478 = vmatpush1.bf16.msra.mxu0 %v5723_v14  ;;  %4510 = vmatpush1.bf16.msra.mxu1 %v5884_v62 }
 0x13e   :  { %4480 = vmatprep.subr.bf16.mxu0 %v5727_v15  ;;  %4512 = vmatprep.subr.bf16.mxu1 %v5888_v63 }
 0x141   :  { %4482 = vmatpush1.bf16.msra.mxu0 %v5743_v20  ;;  %4514 = vmatpush1.bf16.msra.mxu1 %v5903_v6 }
 0x142   :  { %4484 = vmatprep.subr.bf16.mxu0 %v5747_v21  ;;  %4516 = vmatprep.subr.bf16.mxu1 %v5906_v7 }
 0x145   :  { %4486 = vmatpush1.bf16.msra.mxu0 %v5763_v26  ;;  %4518 = vmatpush1.bf16.msra.mxu1 %v5921_v16  ;;  %v4149_v26 = vld [vmem:[%s7735_s0 + $0x20] sm:$0xff] }
 0x146   :  { %4488 = vmatprep.subr.bf16.mxu0 %v5767_v27  ;;  %4520 = vmatprep.subr.bf16.mxu1 %v5924_v17  ;;  %v4150_v27 = vld [vmem:[%s7735_s0 + $0x28] sm:$0xff] }
 0x149   :  { %4490 = vmatpush1.bf16.msra.mxu0 %v5783_v32  ;;  %4522 = vmatpush1.bf16.msra.mxu1 %v5939_v24 }
 0x14a   :  { %4492 = vmatprep.subr.bf16.mxu0 %v5787_v33  ;;  %4524 = vmatprep.subr.bf16.mxu1 %v5942_v25 }
 0x14d   :  { %4494 = vmatpush1.bf16.msra.mxu0 %v5803_v38  ;;  %4526 = vmatpush1.bf16.msra.mxu1 %v5957_v34 }
 0x14e   :  { %4496 = vmatprep.subr.bf16.mxu0 %v5807_v39  ;;  %4528 = vmatprep.subr.bf16.mxu1 %v5960_v35 }
 0x151   :  { %4498 = vmatpush1.bf16.msra.mxu0 %v5823_v44  ;;  %4530 = vmatpush1.bf16.msra.mxu1 %v5975_v42 }
 0x152   :  { %4500 = vmatprep.subr.bf16.mxu0 %v5827_v45  ;;  %4532 = vmatprep.subr.bf16.mxu1 %v5978_v43 }
 0x155   :  { %4502 = vmatpush1.bf16.msra.mxu0 %v5843_v50  ;;  %4534 = vmatpush1.bf16.msra.mxu1 %v5987_v48 }
 0x156   :  { %4536 = vmatprep.subr.bf16.mxu0 %v5693_v4  ;;  %4568 = vmatprep.subr.bf16.mxu1 %v5847_v51  ;;  %v4151_v4 = vld [vmem:[%s7735_s0 + $0x30] sm:$0xff] }
 0x20b   :  { %v402_v32 = vpop.f32.mrb[0].mxu0  ;;  %v473_v33 = vpop.f32.mrb[4].mxu1 }
 0x20c   :  { %v478_v38 = vadd.f32 %v4149_v26, %v402_v32  ;;  %v404_v39 = vpop.f32.mrb[1].mxu0  ;;  %v475_v44 = vpop.f32.mrb[5].mxu1  ;;  %v480_v51 = vadd.f32 %v4151_v4, %v473_v33 }
 0x20d   :  { %v479_v45 = vadd.f32 %v4150_v27, %v404_v39  ;;  %v481_v52 = vadd.f32 %v4152_v49, %v475_v44  ;;  %v4158_v39 = vld [vmem:[%s7735_s0 + $0x50] sm:$0xff] }
 0x20e   :  { %v4153_v50 = vmul.f32 -1.442695, %v478_v38  ;;  %v4155_v53 = vmul.f32 -1.442695, %v480_v51 }
 0x20f   :  { %v4154_v47 = vmul.f32 -1.442695, %v479_v45  ;;  %v4159_v45 = vld [vmem:[%s7735_s0 + $0x58] sm:$0xff] }
 0x210   :  { %5416 = vpow2.f32 %v4153_v50 }
 0x211   :  { %5418 = vpow2.f32 %v4154_v47 }
 0x212   :  { %5420 = vtanh.f32 %v481_v52 }
 0x213   :  { %5422 = vpow2.f32 %v4155_v53 }
 0x21a   :  { %v5417_v54 = vpop.eup %5416 }
 0x21b   :  { %v491_v55 = vadd.f32 1.0, %v5417_v54  ;;  %v5419_v58 = vpop.eup %5418 }
 0x21c   :  { %v492_v59 = vadd.f32 1.0, %v5419_v58  ;;  %v5421_v60 = vpop.eup %5420 }
 0x21d   :  { %5424 = vrcp.f32 %v491_v55  ;;  %v5423_v61 = vpop.eup %5422 }
 0x21e   :  { %5426 = vrcp.f32 %v492_v59  ;;  %v493_v5 = vadd.f32 1.0, %v5423_v61 }
 0x220   :  { %5428 = vrcp.f32 %v493_v5 }
 0x227   :  { %v5425_v0 = vpop.eup %5424 }
 0x228   :  { %v503_v1 = vmul.f32 %v5425_v0, %v5421_v60  ;;  %v5427_v2 = vpop.eup %5426 }
 0x229   :  { %v502_v10 = vmul.f32 %v5427_v2, %v6022_v37 }
 0x22a   :  { %v5429_v12 = vpop.eup %5428 }
 0x22b   :  { %v6076_v11 = vadd.f32 %v503_v1, %v502_v10  ;;  %v1008_v10 = vld [vmem:[%s7734_s1 + $0x8] sm:$0xff] }
 0x22d   :  { %5430 = vtanh.f32 %v6076_v11 }
 0x237   :  { %v5431_v13 = vpop.eup %5430 }
 0x238   :  { %v6079_v18 = vmul.f32 %v5431_v13, %v5429_v12  ;;  %v1010_v12 = vld [vmem:[%s7734_s1 + $0x18] sm:$0xff] }
 0x23a   :  { %646 = vmatmul.mubr.f32.vlgmr.msra.gmra.mrb[2].mxu0 %v6079_v18  ;;  %717 = vmatmul.mubr.f32.vlgmr.msra.gmra.mrb[6].mxu1 %v6079_v18 }
 0x23b   :  { %4538 = vmatpush1.bf16.msra.mxu0 %v5704_v8  ;;  %4570 = vmatpush1.bf16.msra.mxu1 %v5863_v56  ;;  %v786_v8 = vld [vmem:[%s7734_s1 + $0xc0] sm:$0xff] }
 0x23c   :  { %4540 = vmatprep.subr.bf16.mxu0 %v5706_v9  ;;  %4572 = vmatprep.subr.bf16.mxu1 %v5867_v57  ;;  %v790_v9 = vld [vmem:[%s7734_s1 + $0xe0] sm:$0xff] }
 0x23d   :  { %890 = vmatprep.mubr.f32.mxu0 %v5656_v3  ;;  %961 = vmatprep.mubr.f32.mxu1 %v5656_v3  ;;  %v794_v56 = vld [vmem:[%s7734_s1 + $0x100] sm:$0xff] }
 0x23e   :  { %v798_v57 = vld [vmem:[%s7734_s1 + $0x120] sm:$0xff] }
 0x23f   :  { %4542 = vmatpush1.bf16.msra.mxu0 %v5723_v14  ;;  %4574 = vmatpush1.bf16.msra.mxu1 %v5884_v62  ;;  %v6112_v14 = vpack.c.bf16 %v790_v9, %v786_v8  ;;  %v6129_v62 = vpack.c.bf16 %v798_v57, %v794_v56  ;;  %v1014_v8 = vld [vmem:[%s7734_s1 + $0x38] sm:$0xff]  ;;  %v1007_v9 = vld [vmem:[%s7734_s1] sm:$0xff]  ;;  %v1009_v57 = vld [vmem:[%s7734_s1 + $0x10] sm:$0xff] }
 0x240   :  { %4544 = vmatprep.subr.bf16.mxu0 %v5727_v15  ;;  %4576 = vmatprep.subr.bf16.mxu1 %v5888_v63  ;;  %v795_v15 = vld [vmem:[%s7734_s1 + $0x108] sm:$0xff] }
 0x241   :  { %v803_v63 = vld [vmem:[%s7734_s1 + $0x148] sm:$0xff] }
 0x243   :  { %4546 = vmatpush1.bf16.msra.mxu0 %v5743_v20  ;;  %4578 = vmatpush1.bf16.msra.mxu1 %v5903_v6  ;;  %v799_v20 = vld [vmem:[%s7734_s1 + $0x128] sm:$0xff] }
 0x244   :  { %4548 = vmatprep.subr.bf16.mxu0 %v5747_v21  ;;  %4580 = vmatprep.subr.bf16.mxu1 %v5906_v7  ;;  %v6121_v21 = vpack.c.bf16 %v799_v20, %v795_v15  ;;  %v807_v6 = vld [vmem:[%s7734_s1 + $0x168] sm:$0xff]  ;;  %v1011_v15 = vld [vmem:[%s7734_s1 + $0x20] sm:$0xff]  ;;  %v6229_v20 = vpack.c.bf16 %v1014_v8, %v1010_v12  ;;  %v1054_v12 = vld [vmem:[%s7734_s1 + $0x178] sm:$0xff] }
 0x245   :  { %v6139_v7 = vpack.c.bf16 %v807_v6, %v803_v63  ;;  %v6231_v56 = vpack.c.bf16 %v1011_v15, %v1007_v9  ;;  %v1013_v63 = vld [vmem:[%s7734_s1 + $0x30] sm:$0xff] }
 0x246   :  { %v6240_v6 = vpack.c.bf16 %v1013_v63, %v1009_v57  ;;  %v1049_v9 = vld [vmem:[%s7734_s1 + $0x150] sm:$0xff]  ;;  %v1058_v63 = vld [vmem:[%s7734_s1 + $0x198] sm:$0xff] }
 0x247   :  { %4582 = vmatpush1.bf16.msra.mxu1 %v5921_v16  ;;  %4550 = vmatpush1.bf16.msra.mxu0 %v6112_v14  ;;  %v802_v16 = vld [vmem:[%s7734_s1 + $0x140] sm:$0xff]  ;;  %v1053_v15 = vld [vmem:[%s7734_s1 + $0x170] sm:$0xff] }
 0x248   :  { %4584 = vmatprep.subr.bf16.mxu1 %v5924_v17  ;;  %4552 = vmatprep.subr.bf16.mxu0 %v6121_v21  ;;  %v806_v17 = vld [vmem:[%s7734_s1 + $0x160] sm:$0xff]  ;;  %v6380_v57 = vpack.c.bf16 %v1053_v15, %v1049_v9 }
 0x24b   :  { %4586 = vmatpush1.bf16.msra.mxu1 %v5939_v24  ;;  %4554 = vmatpush1.bf16.msra.mxu0 %v6129_v62  ;;  %v6147_v24 = vpack.c.bf16 %v806_v17, %v802_v16  ;;  %v1016_v16 = vld [vmem:[%s7734_s1 + $0x48] sm:$0xff] }
 0x24c   :  { %4588 = vmatprep.subr.bf16.mxu1 %v5942_v25  ;;  %v811_v25 = vld [vmem:[%s7734_s1 + $0x188] sm:$0xff]  ;;  %4556 = vmatprep.subr.bf16.mxu0 %v6139_v7 }
 0x24d   :  { %v1020_v17 = vld [vmem:[%s7734_s1 + $0x68] sm:$0xff] }
 0x24f   :  { %4590 = vmatpush1.bf16.msra.mxu1 %v5957_v34  ;;  %v815_v34 = vld [vmem:[%s7734_s1 + $0x1a8] sm:$0xff]  ;;  %4558 = vmatpush1.bf16.msra.mxu0 %v6147_v24 }
 0x250   :  { %4592 = vmatprep.subr.bf16.mxu1 %v5960_v35  ;;  %v810_v35 = vld [vmem:[%s7734_s1 + $0x180] sm:$0xff] }
 0x253   :  { %4594 = vmatpush1.bf16.msra.mxu1 %v5975_v42  ;;  %v6159_v42 = vpack.c.bf16 %v815_v34, %v811_v25  ;;  %v1018_v25 = vld [vmem:[%s7734_s1 + $0x58] sm:$0xff]  ;;  %v6254_v34 = vpack.c.bf16 %v1020_v17, %v1016_v16  ;;  %v1057_v17 = vld [vmem:[%s7734_s1 + $0x190] sm:$0xff] }
 0x254   :  { %4596 = vmatprep.subr.bf16.mxu1 %v5978_v43  ;;  %v814_v43 = vld [vmem:[%s7734_s1 + $0x1a0] sm:$0xff]  ;;  %v1062_v16 = vld [vmem:[%s7734_s1 + $0x1b8] sm:$0xff] }
 0x255   :  { %v6171_v22 = vpack.c.bf16 %v814_v43, %v810_v35  ;;  %4560 = vmatprep.subr.bf16.mxu0 %v6159_v42  ;;  %v1022_v35 = vld [vmem:[%s7734_s1 + $0x78] sm:$0xff]  ;;  %v1015_v43 = vld [vmem:[%s7734_s1 + $0x40] sm:$0xff] }
 0x257   :  { %4598 = vmatpush1.bf16.msra.mxu1 %v5987_v48  ;;  %v819_v48 = vld [vmem:[%s7734_s1 + $0x1c8] sm:$0xff]  ;;  %4562 = vmatpush1.bf16.msra.mxu0 %v6171_v22 }
 0x258   :  { %v6174_v23 = vpack.c.bf16 %v823_v19, %v819_v48  ;;  %4632 = vmatprep.subr.bf16.mxu1 %v6229_v20  ;;  %v1019_v48 = vld [vmem:[%s7734_s1 + $0x60] sm:$0xff]  ;;  %v6265_v19 = vpack.c.bf16 %v1022_v35, %v1018_v25  ;;  %v6392_v25 = vpack.c.bf16 %v1062_v16, %v1058_v63  ;;  %v1061_v35 = vld [vmem:[%s7734_s1 + $0x1b0] sm:$0xff] }
 0x259   :  { %v6267_v28 = vpack.c.bf16 %v1019_v48, %v1015_v43  ;;  %v1066_v43 = vld [vmem:[%s7734_s1 + $0x1d8] sm:$0xff] }
 0x25a   :  { %4564 = vmatprep.subr.bf16.mxu0 %v6174_v23  ;;  %v1070_v48 = vld [vmem:[%s7734_s1 + $0x1f8] sm:$0xff] }
 0x25b   :  { %4566 = vmatpush1.bf16.msra.mxu0 %v6183_v30 }
 0x30d   :  { %v647_v37 = vpop.f32.mrb[2].mxu0  ;;  %v718_v40 = vpop.f32.mrb[6].mxu1 }
 0x30e   :  { %v723_v41 = vadd.f32 %v4156_v31, %v647_v37  ;;  %v649_v26 = vpop.f32.mrb[3].mxu0  ;;  %v720_v27 = vpop.f32.mrb[7].mxu1  ;;  %v725_v44 = vadd.f32 %v4158_v39, %v718_v40  ;;  %v1021_v31 = vld [vmem:[%s7734_s1 + $0x70] sm:$0xff]  ;;  %v1024_v37 = vld [vmem:[%s7734_s1 + $0x88] sm:$0xff] }
 0x30f   :  { %v724_v32 = vadd.f32 %v4157_v36, %v649_v26  ;;  %v726_v50 = vadd.f32 %v4159_v45, %v720_v27  ;;  %v6276_v36 = vpack.c.bf16 %v1021_v31, %v1017_v29  ;;  %v1028_v40 = vld [vmem:[%s7734_s1 + $0xa8] sm:$0xff]  ;;  %v1030_v27 = vld [vmem:[%s7734_s1 + $0xb8] sm:$0xff]  ;;  %v1029_v45 = vld [vmem:[%s7734_s1 + $0xb0] sm:$0xff]  ;;  %v6406_v29 = vpack.c.bf16 %v1061_v35, %v1057_v17 }
 0x310   :  { %v4160_v33 = vmul.f32 -1.442695, %v723_v41  ;;  %v4162_v47 = vmul.f32 -1.442695, %v725_v44  ;;  %v1026_v41 = vld [vmem:[%s7734_s1 + $0x98] sm:$0xff]  ;;  %v6290_v26 = vpack.c.bf16 %v1028_v40, %v1024_v37  ;;  %v1025_v44 = vld [vmem:[%s7734_s1 + $0x90] sm:$0xff]  ;;  %v6409_v31 = vpack.c.bf16 %v1070_v48, %v1066_v43 }
 0x311   :  { %v4161_v38 = vmul.f32 -1.442695, %v724_v32  ;;  %v1023_v32 = vld [vmem:[%s7734_s1 + $0x80] sm:$0xff]  ;;  %v1065_v37 = vld [vmem:[%s7734_s1 + $0x1d0] sm:$0xff] }
 0x312   :  { %5432 = vpow2.f32 %v4160_v33  ;;  %v1027_v33 = vld [vmem:[%s7734_s1 + $0xa0] sm:$0xff]  ;;  %v1069_v40 = vld [vmem:[%s7734_s1 + $0x1f0] sm:$0xff] }
 0x313   :  { %5434 = vpow2.f32 %v4161_v38  ;;  %v6301_v38 = vpack.c.bf16 %v1030_v27, %v1026_v41  ;;  %v6303_v39 = vpack.c.bf16 %v1027_v33, %v1023_v32  ;;  %v6420_v41 = vpack.c.bf16 %v1069_v40, %v1065_v37  ;;  %v4163_v27 = vld [vmem:[%s7735_s0 + $0x60] sm:$0xff]  ;;  %v4164_v32 = vld [vmem:[%s7735_s0 + $0x68] sm:$0xff] }
 0x314   :  { %5436 = vtanh.f32 %v726_v50  ;;  %v6312_v50 = vpack.c.bf16 %v1029_v45, %v1025_v44 }
 0x315   :  { %5438 = vpow2.f32 %v4162_v47  ;;  %v1032_v47 = vld [vmem:[%s7734_s1 + $0xc8] sm:$0xff] }
 0x31c   :  { %v5433_v4 = vpop.eup %5432 }
 0x31d   :  { %v736_v51 = vadd.f32 1.0, %v5433_v4  ;;  %v5435_v49 = vpop.eup %5434  ;;  %v1036_v4 = vld [vmem:[%s7734_s1 + $0xe8] sm:$0xff] }
 0x31e   :  { %v737_v52 = vadd.f32 1.0, %v5435_v49  ;;  %v5437_v53 = vpop.eup %5436  ;;  %v6326_v49 = vpack.c.bf16 %v1036_v4, %v1032_v47 }
 0x31f   :  { %5440 = vrcp.f32 %v736_v51  ;;  %v5439_v54 = vpop.eup %5438  ;;  %v1034_v51 = vld [vmem:[%s7734_s1 + $0xd8] sm:$0xff] }
 0x320   :  { %5442 = vrcp.f32 %v737_v52  ;;  %v738_v60 = vadd.f32 1.0, %v5439_v54  ;;  %v1038_v52 = vld [vmem:[%s7734_s1 + $0xf8] sm:$0xff]  ;;  %v1037_v54 = vld [vmem:[%s7734_s1 + $0xf0] sm:$0xff] }
 0x322   :  { %5444 = vrcp.f32 %v738_v60  ;;  %v1046_v60 = vld [vmem:[%s7734_s1 + $0x138] sm:$0xff] }
 0x329   :  { %v5441_v55 = vpop.eup %5440 }
 0x32a   :  { %v748_v58 = vmul.f32 %v5441_v55, %v5437_v53  ;;  %v5443_v59 = vpop.eup %5442  ;;  %v1033_v53 = vld [vmem:[%s7734_s1 + $0xd0] sm:$0xff]  ;;  %v6337_v55 = vpack.c.bf16 %v1038_v52, %v1034_v51 }
 0x32b   :  { %v747_v61 = vmul.f32 %v5443_v59, %v6076_v11  ;;  %v1012_v11 = vld [vmem:[%s7734_s1 + $0x28] sm:$0xff]  ;;  %v1042_v59 = vld [vmem:[%s7734_s1 + $0x118] sm:$0xff] }
 0x32c   :  { %v5445_v1 = vpop.eup %5444  ;;  %v6218_v13 = vpack.c.bf16 %v1012_v11, %v1008_v10  ;;  %v1050_v11 = vld [vmem:[%s7734_s1 + $0x158] sm:$0xff] }
 0x32d   :  { %v6200_v0 = vadd.f32 %v748_v58, %v747_v61  ;;  %v6339_v58 = vpack.c.bf16 %v1037_v54, %v1033_v53  ;;  %v6352_v61 = vpack.c.bf16 %v1046_v60, %v1042_v59  ;;  %v6372_v8 = vpack.c.bf16 %v1054_v12, %v1050_v11  ;;  %v4165_v54 = vld [vmem:[%s7735_s0 + $0x70] sm:$0xff]  ;;  %v4166_v60 = vld [vmem:[%s7735_s0 + $0x78] sm:$0xff] }
 0x32e   :  { %4600 = vmatprep.subr.bf16.mxu0 %v6218_v13 }
 0x32f   :  { %5446 = vtanh.f32 %v6200_v0 }
 0x339   :  { %v5447_v2 = vpop.eup %5446 }
 0x33a   :  { %v6203_v5 = vmul.f32 %v5447_v2, %v5445_v1  ;;  %v1041_v1 = vld [vmem:[%s7734_s1 + $0x110] sm:$0xff] }
 0x33b   :  { %v1045_v2 = vld [vmem:[%s7734_s1 + $0x130] sm:$0xff] }
 0x33c   :  { %891 = vmatmul.mubr.f32.vlgmr.msra.gmra.mrb[4].mxu0 %v6203_v5  ;;  %962 = vmatmul.mubr.f32.vlgmr.msra.gmra.mrb[8].mxu1 %v6203_v5  ;;  %v6360_v10 = vpack.c.bf16 %v1045_v2, %v1041_v1 }
 0x33d   :  { %1135 = vmatprep.mubr.f32.mxu0 %v5656_v3  ;;  %1206 = vmatprep.mubr.f32.mxu1 %v5656_v3 }
 0x33e   :  { %4602 = vmatpush1.bf16.msra.mxu0 %v6231_v56  ;;  %4634 = vmatpush1.bf16.msra.mxu1 %v6240_v6 }
 0x33f   :  { %4604 = vmatprep.subr.bf16.mxu0 %v6254_v34  ;;  %4636 = vmatprep.subr.bf16.mxu1 %v6265_v19 }
 0x342   :  { %4606 = vmatpush1.bf16.msra.mxu0 %v6267_v28  ;;  %4638 = vmatpush1.bf16.msra.mxu1 %v6276_v36 }
 0x343   :  { %4608 = vmatprep.subr.bf16.mxu0 %v6290_v26  ;;  %4640 = vmatprep.subr.bf16.mxu1 %v6301_v38 }
 0x346   :  { %4610 = vmatpush1.bf16.msra.mxu0 %v6303_v39  ;;  %4642 = vmatpush1.bf16.msra.mxu1 %v6312_v50 }
 0x347   :  { %4612 = vmatprep.subr.bf16.mxu0 %v6326_v49  ;;  %4644 = vmatprep.subr.bf16.mxu1 %v6337_v55 }
 0x34a   :  { %4614 = vmatpush1.bf16.msra.mxu0 %v6112_v14  ;;  %4646 = vmatpush1.bf16.msra.mxu1 %v6339_v58 }
 0x34b   :  { %4616 = vmatprep.subr.bf16.mxu0 %v6121_v21  ;;  %4648 = vmatprep.subr.bf16.mxu1 %v6352_v61 }
 0x34e   :  { %4618 = vmatpush1.bf16.msra.mxu0 %v6129_v62  ;;  %4650 = vmatpush1.bf16.msra.mxu1 %v6360_v10 }
 0x34f   :  { %4620 = vmatprep.subr.bf16.mxu0 %v6139_v7  ;;  %4652 = vmatprep.subr.bf16.mxu1 %v6372_v8 }
 0x352   :  { %4622 = vmatpush1.bf16.msra.mxu0 %v6147_v24  ;;  %4654 = vmatpush1.bf16.msra.mxu1 %v6380_v57 }
 0x353   :  { %4624 = vmatprep.subr.bf16.mxu0 %v6159_v42  ;;  %4656 = vmatprep.subr.bf16.mxu1 %v6392_v25 }
 0x356   :  { %4626 = vmatpush1.bf16.msra.mxu0 %v6171_v22  ;;  %4658 = vmatpush1.bf16.msra.mxu1 %v6406_v29 }
 0x357   :  { %4628 = vmatprep.subr.bf16.mxu0 %v6174_v23  ;;  %4660 = vmatprep.subr.bf16.mxu1 %v6409_v31 }
 0x35a   :  { %4630 = vmatpush1.bf16.msra.mxu0 %v6183_v30  ;;  %4662 = vmatpush1.bf16.msra.mxu1 %v6420_v41 }
 0x35b   :  { %4664 = vmatprep.subr.bf16.mxu0 %v6218_v13  ;;  %4696 = vmatprep.subr.bf16.mxu1 %v6229_v20 }
 0x40f   :  { %v892_v33 = vpop.f32.mrb[4].mxu0  ;;  %v963_v44 = vpop.f32.mrb[8].mxu1 }
 0x410   :  { %v968_v45 = vadd.f32 %v4163_v27, %v892_v33  ;;  %v894_v47 = vpop.f32.mrb[5].mxu0  ;;  %v965_v4 = vpop.f32.mrb[9].mxu1  ;;  %v970_v59 = vadd.f32 %v4165_v54, %v963_v44  ;;  %v4171_v44 = vld [vmem:[%s7735_s0 + $0x88] sm:$0xff] }
 0x411   :  { %v969_v51 = vadd.f32 %v4164_v32, %v894_v47  ;;  %v971_v1 = vadd.f32 %v4166_v60, %v965_v4  ;;  %v4172_v60 = vld [vmem:[%s7735_s0 + $0x90] sm:$0xff] }
 0x412   :  { %v4167_v52 = vmul.f32 -1.442695, %v968_v45  ;;  %v4169_v2 = vmul.f32 -1.442695, %v970_v59 }
 0x413   :  { %v4168_v53 = vmul.f32 -1.442695, %v969_v51 }
 0x414   :  { %5448 = vpow2.f32 %v4167_v52 }
 0x415   :  { %5450 = vpow2.f32 %v4168_v53 }
 0x416   :  { %5452 = vtanh.f32 %v971_v1 }
 0x417   :  { %5454 = vpow2.f32 %v4169_v2  ;;  %v4173_v2 = vld [vmem:[%s7735_s0 + $0x98] sm:$0xff] }
 0x41e   :  { %v5449_v11 = vpop.eup %5448 }
 0x41f   :  { %v981_v12 = vadd.f32 1.0, %v5449_v11  ;;  %v5451_v9 = vpop.eup %5450 }
 0x420   :  { %v982_v15 = vadd.f32 1.0, %v5451_v9  ;;  %v5453_v63 = vpop.eup %5452 }
 0x421   :  { %5456 = vrcp.f32 %v981_v12  ;;  %v5455_v16 = vpop.eup %5454 }
 0x422   :  { %5458 = vrcp.f32 %v982_v15  ;;  %v983_v48 = vadd.f32 1.0, %v5455_v16 }
 0x424   :  { %5460 = vrcp.f32 %v983_v48 }
 0x42b   :  { %v5457_v17 = vpop.eup %5456 }
 0x42c   :  { %v993_v35 = vmul.f32 %v5457_v17, %v5453_v63  ;;  %v5459_v43 = vpop.eup %5458 }
 0x42d   :  { %v992_v37 = vmul.f32 %v5459_v43, %v6200_v0  ;;  %v4170_v0 = vld [vmem:[%s7735_s0 + $0x80] sm:$0xff] }
 0x42e   :  { %v5461_v27 = vpop.eup %5460 }
 0x42f   :  { %v6440_v40 = vadd.f32 %v993_v35, %v992_v37 }
 0x431   :  { %5462 = vtanh.f32 %v6440_v40 }
 0x43b   :  { %v5463_v32 = vpop.eup %5462 }
 0x43c   :  { %v6443_v33 = vmul.f32 %v5463_v32, %v5461_v27 }
 0x43e   :  { %1136 = vmatmul.mubr.f32.vlgmr.msra.gmra.mrb[6].mxu0 %v6443_v33  ;;  %1207 = vmatmul.mubr.f32.vlgmr.msra.gmra.mrb[10].mxu1 %v6443_v33 }
 0x43f   :  { %4666 = vmatpush1.bf16.msra.mxu0 %v6231_v56  ;;  %4698 = vmatpush1.bf16.msra.mxu1 %v6240_v6 }
 0x440   :  { %4668 = vmatprep.subr.bf16.mxu0 %v6254_v34  ;;  %4700 = vmatprep.subr.bf16.mxu1 %v6265_v19 }
 0x441   :  { %1380 = vmatprep.mubr.f32.mxu0 %v5656_v3  ;;  %1451 = vmatprep.mubr.f32.mxu1 %v5656_v3 }
 0x443   :  { %4670 = vmatpush1.bf16.msra.mxu0 %v6267_v28  ;;  %4702 = vmatpush1.bf16.msra.mxu1 %v6276_v36 }
 0x444   :  { %4672 = vmatprep.subr.bf16.mxu0 %v6290_v26  ;;  %4704 = vmatprep.subr.bf16.mxu1 %v6301_v38 }
 0x447   :  { %4674 = vmatpush1.bf16.msra.mxu0 %v6303_v39  ;;  %4706 = vmatpush1.bf16.msra.mxu1 %v6312_v50 }
 0x448   :  { %4676 = vmatprep.subr.bf16.mxu0 %v6326_v49  ;;  %4708 = vmatprep.subr.bf16.mxu1 %v6337_v55 }
 0x44b   :  { %4678 = vmatpush1.bf16.msra.mxu0 %v6112_v14  ;;  %4710 = vmatpush1.bf16.msra.mxu1 %v6339_v58 }
 0x44c   :  { %4680 = vmatprep.subr.bf16.mxu0 %v6121_v21  ;;  %4712 = vmatprep.subr.bf16.mxu1 %v6352_v61 }
 0x44f   :  { %4682 = vmatpush1.bf16.msra.mxu0 %v6129_v62  ;;  %4714 = vmatpush1.bf16.msra.mxu1 %v6360_v10 }
 0x450   :  { %4684 = vmatprep.subr.bf16.mxu0 %v6139_v7  ;;  %4716 = vmatprep.subr.bf16.mxu1 %v6372_v8 }
 0x453   :  { %4686 = vmatpush1.bf16.msra.mxu0 %v6147_v24  ;;  %4718 = vmatpush1.bf16.msra.mxu1 %v6380_v57 }
 0x454   :  { %4688 = vmatprep.subr.bf16.mxu0 %v6159_v42  ;;  %4720 = vmatprep.subr.bf16.mxu1 %v6392_v25 }
 0x457   :  { %4690 = vmatpush1.bf16.msra.mxu0 %v6171_v22  ;;  %4722 = vmatpush1.bf16.msra.mxu1 %v6406_v29 }
 0x458   :  { %4692 = vmatprep.subr.bf16.mxu0 %v6174_v23  ;;  %4724 = vmatprep.subr.bf16.mxu1 %v6409_v31 }
 0x45b   :  { %4694 = vmatpush1.bf16.msra.mxu0 %v6183_v30  ;;  %4726 = vmatpush1.bf16.msra.mxu1 %v6420_v41 }
 0x45c   :  { %4728 = vmatprep.subr.bf16.mxu0 %v6218_v13  ;;  %4760 = vmatprep.subr.bf16.mxu1 %v6229_v20 }
 0x511   :  { %v1137_v45 = vpop.f32.mrb[6].mxu0  ;;  %v1208_v47 = vpop.f32.mrb[10].mxu1 }
 0x512   :  { %v1213_v4 = vadd.f32 %v4170_v0, %v1137_v45  ;;  %v1139_v51 = vpop.f32.mrb[7].mxu0  ;;  %v1210_v52 = vpop.f32.mrb[11].mxu1  ;;  %v1215_v1 = vadd.f32 %v4172_v60, %v1208_v47 }
 0x513   :  { %v1214_v53 = vadd.f32 %v4171_v44, %v1139_v51  ;;  %v1216_v11 = vadd.f32 %v4173_v2, %v1210_v52 }
 0x514   :  { %v4174_v54 = vmul.f32 -1.442695, %v1213_v4  ;;  %v4176_v12 = vmul.f32 -1.442695, %v1215_v1  ;;  %v4180_v4 = vld [vmem:[%s7735_s0 + $0xb8] sm:$0xff] }
 0x515   :  { %v4175_v59 = vmul.f32 -1.442695, %v1214_v53 }
 0x516   :  { %5464 = vpow2.f32 %v4174_v54 }
 0x517   :  { %5466 = vpow2.f32 %v4175_v59 }
 0x518   :  { %5468 = vtanh.f32 %v1216_v11 }
 0x519   :  { %5470 = vpow2.f32 %v4176_v12 }
 0x520   :  { %v5465_v9 = vpop.eup %5464 }
 0x521   :  { %v1226_v15 = vadd.f32 1.0, %v5465_v9  ;;  %v5467_v63 = vpop.eup %5466 }
 0x522   :  { %v1227_v16 = vadd.f32 1.0, %v5467_v63  ;;  %v5469_v17 = vpop.eup %5468 }
 0x523   :  { %5472 = vrcp.f32 %v1226_v15  ;;  %v5471_v35 = vpop.eup %5470 }
 0x524   :  { %5474 = vrcp.f32 %v1227_v16  ;;  %v1228_v27 = vadd.f32 1.0, %v5471_v35 }
 0x526   :  { %5476 = vrcp.f32 %v1228_v27 }
 0x52d   :  { %v5473_v43 = vpop.eup %5472 }
 0x52e   :  { %v1238_v48 = vmul.f32 %v5473_v43, %v5469_v17  ;;  %v5475_v37 = vpop.eup %5474 }
 0x52f   :  { %v1237_v32 = vmul.f32 %v5475_v37, %v6440_v40 }
 0x530   :  { %v5477_v44 = vpop.eup %5476 }
 0x531   :  { %v6494_v0 = vadd.f32 %v1238_v48, %v1237_v32  ;;  %v1803_v48 = vld [vmem:[%s7734_s1 + $0x1e8] sm:$0xff]  ;;  %v1798_v32 = vld [vmem:[%s7734_s1 + $0x1c0] sm:$0xff] }
 0x533   :  { %5478 = vtanh.f32 %v6494_v0 }
 0x53d   :  { %v5479_v45 = vpop.eup %5478 }
 0x53e   :  { %v6497_v47 = vmul.f32 %v5479_v45, %v5477_v44  ;;  %v4184_v45 = vld [vmem:[%s7735_s0 + $0xc0] sm:$0xff] }
 0x540   :  { %1381 = vmatmul.mubr.f32.vlgmr.msra.gmra.mrb[8].mxu0 %v6497_v47  ;;  %1452 = vmatmul.mubr.f32.vlgmr.msra.gmra.mrb[12].mxu1 %v6497_v47 }
 0x541   :  { %4730 = vmatpush1.bf16.msra.mxu0 %v6231_v56  ;;  %4762 = vmatpush1.bf16.msra.mxu1 %v6240_v6 }
 0x542   :  { %4732 = vmatprep.subr.bf16.mxu0 %v6254_v34  ;;  %4764 = vmatprep.subr.bf16.mxu1 %v6265_v19 }
 0x543   :  { %1625 = vmatprep.mubr.f32.mxu0 %v5656_v3  ;;  %1696 = vmatprep.mubr.f32.mxu1 %v5656_v3 }
 0x545   :  { %4734 = vmatpush1.bf16.msra.mxu0 %v6267_v28  ;;  %4766 = vmatpush1.bf16.msra.mxu1 %v6276_v36 }
 0x546   :  { %4736 = vmatprep.subr.bf16.mxu0 %v6290_v26  ;;  %4768 = vmatprep.subr.bf16.mxu1 %v6301_v38 }
 0x549   :  { %4738 = vmatpush1.bf16.msra.mxu0 %v6303_v39  ;;  %4770 = vmatpush1.bf16.msra.mxu1 %v6312_v50 }
 0x54a   :  { %4740 = vmatprep.subr.bf16.mxu0 %v6326_v49  ;;  %4772 = vmatprep.subr.bf16.mxu1 %v6337_v55 }
 0x54d   :  { %4742 = vmatpush1.bf16.msra.mxu0 %v6112_v14  ;;  %4774 = vmatpush1.bf16.msra.mxu1 %v6339_v58  ;;  %v4177_v14 = vld [vmem:[%s7735_s0 + $0xa0] sm:$0xff] }
 0x54e   :  { %4744 = vmatprep.subr.bf16.mxu0 %v6121_v21  ;;  %4776 = vmatprep.subr.bf16.mxu1 %v6352_v61  ;;  %v4178_v21 = vld [vmem:[%s7735_s0 + $0xa8] sm:$0xff] }
 0x551   :  { %4746 = vmatpush1.bf16.msra.mxu0 %v6129_v62  ;;  %4778 = vmatpush1.bf16.msra.mxu1 %v6360_v10 }
 0x552   :  { %4748 = vmatprep.subr.bf16.mxu0 %v6139_v7  ;;  %4780 = vmatprep.subr.bf16.mxu1 %v6372_v8 }
 0x555   :  { %4750 = vmatpush1.bf16.msra.mxu0 %v6147_v24  ;;  %4782 = vmatpush1.bf16.msra.mxu1 %v6380_v57 }
 0x556   :  { %4752 = vmatprep.subr.bf16.mxu0 %v6159_v42  ;;  %4784 = vmatprep.subr.bf16.mxu1 %v6392_v25 }
 0x559   :  { %4754 = vmatpush1.bf16.msra.mxu0 %v6171_v22  ;;  %4786 = vmatpush1.bf16.msra.mxu1 %v6406_v29 }
 0x55a   :  { %4756 = vmatprep.subr.bf16.mxu0 %v6174_v23  ;;  %4788 = vmatprep.subr.bf16.mxu1 %v6409_v31 }
 0x55d   :  { %4758 = vmatpush1.bf16.msra.mxu0 %v6183_v30  ;;  %4790 = vmatpush1.bf16.msra.mxu1 %v6420_v41 }
 0x55e   :  { %4792 = vmatprep.subr.bf16.mxu0 %v6218_v13  ;;  %4824 = vmatprep.subr.bf16.mxu1 %v6229_v20  ;;  %v4179_v13 = vld [vmem:[%s7735_s0 + $0xb0] sm:$0xff] }
 0x613   :  { %v1382_v62 = vpop.f32.mrb[8].mxu0  ;;  %v1453_v7 = vpop.f32.mrb[12].mxu1 }
 0x614   :  { %v1458_v24 = vadd.f32 %v4177_v14, %v1382_v62  ;;  %v1384_v42 = vpop.f32.mrb[9].mxu0  ;;  %v1455_v22 = vpop.f32.mrb[13].mxu1  ;;  %v1460_v20 = vadd.f32 %v4179_v13, %v1453_v7  ;;  %v4185_v14 = vld [vmem:[%s7735_s0 + $0xc8] sm:$0xff] }
 0x615   :  { %v1459_v23 = vadd.f32 %v4178_v21, %v1384_v42  ;;  %v1461_v51 = vadd.f32 %v4180_v4, %v1455_v22 }
 0x616   :  { %v4181_v30 = vmul.f32 -1.442695, %v1458_v24  ;;  %v4183_v52 = vmul.f32 -1.442695, %v1460_v20  ;;  %v4187_v20 = vld [vmem:[%s7735_s0 + $0xd8] sm:$0xff] }
 0x617   :  { %v4182_v40 = vmul.f32 -1.442695, %v1459_v23 }
 0x618   :  { %5480 = vpow2.f32 %v4181_v30 }
 0x619   :  { %5482 = vpow2.f32 %v4182_v40  ;;  %v4186_v40 = vld [vmem:[%s7735_s0 + $0xd0] sm:$0xff] }
 0x61a   :  { %5484 = vtanh.f32 %v1461_v51 }
 0x61b   :  { %5486 = vpow2.f32 %v4183_v52 }
 0x622   :  { %v5481_v53 = vpop.eup %5480 }
 0x623   :  { %v1471_v54 = vadd.f32 1.0, %v5481_v53  ;;  %v5483_v59 = vpop.eup %5482 }
 0x624   :  { %v1472_v60 = vadd.f32 1.0, %v5483_v59  ;;  %v5485_v1 = vpop.eup %5484 }
 0x625   :  { %5488 = vrcp.f32 %v1471_v54  ;;  %v5487_v2 = vpop.eup %5486 }
 0x626   :  { %5490 = vrcp.f32 %v1472_v60  ;;  %v1473_v15 = vadd.f32 1.0, %v5487_v2 }
 0x628   :  { %5492 = vrcp.f32 %v1473_v15 }
 0x62f   :  { %v5489_v11 = vpop.eup %5488 }
 0x630   :  { %v1483_v12 = vmul.f32 %v5489_v11, %v5485_v1  ;;  %v5491_v9 = vpop.eup %5490 }
 0x631   :  { %v1482_v63 = vmul.f32 %v5491_v9, %v6494_v0  ;;  %v1802_v0 = vld [vmem:[%s7734_s1 + $0x1e0] sm:$0xff] }
 0x632   :  { %v5493_v17 = vpop.eup %5492  ;;  %v6655_v44 = vpack.c.bf16 %v1802_v0, %v1798_v32  ;;  %v2002_v32 = vld [vmem:[%s7734_s1 + $0x78] sm:$0xff]  ;;  %v1995_v0 = vld [vmem:[%s7734_s1 + $0x40] sm:$0xff] }
 0x633   :  { %v6548_v16 = vadd.f32 %v1483_v12, %v1482_v63 }
 0x635   :  { %5494 = vtanh.f32 %v6548_v16 }
 0x63f   :  { %v5495_v35 = vpop.eup %5494 }
 0x640   :  { %v6551_v43 = vmul.f32 %v5495_v35, %v5493_v17 }
 0x642   :  { %1626 = vmatmul.mubr.f32.vlgmr.msra.gmra.mrb[10].mxu0 %v6551_v43  ;;  %1697 = vmatmul.mubr.f32.vlgmr.msra.gmra.mrb[14].mxu1 %v6551_v43 }
 0x643   :  { %4794 = vmatpush1.bf16.msra.mxu0 %v6231_v56  ;;  %4826 = vmatpush1.bf16.msra.mxu1 %v6240_v6  ;;  %v1766_v56 = vld [vmem:[%s7734_s1 + $0xc0] sm:$0xff] }
 0x644   :  { %4796 = vmatprep.subr.bf16.mxu0 %v6254_v34  ;;  %4828 = vmatprep.subr.bf16.mxu1 %v6265_v19  ;;  %v1770_v6 = vld [vmem:[%s7734_s1 + $0xe0] sm:$0xff]  ;;  %v1775_v19 = vld [vmem:[%s7734_s1 + $0x108] sm:$0xff] }
 0x645   :  { %1870 = vmatprep.mubr.f32.mxu0 %v5656_v3  ;;  %1941 = vmatprep.mubr.f32.mxu1 %v5656_v3  ;;  %v6584_v34 = vpack.c.bf16 %v1770_v6, %v1766_v56  ;;  %v1992_v6 = vld [vmem:[%s7734_s1 + $0x28] sm:$0xff] }
 0x647   :  { %4798 = vmatpush1.bf16.msra.mxu0 %v6267_v28  ;;  %4830 = vmatpush1.bf16.msra.mxu1 %v6276_v36  ;;  %v1779_v28 = vld [vmem:[%s7734_s1 + $0x128] sm:$0xff] }
 0x648   :  { %4800 = vmatprep.subr.bf16.mxu0 %v6290_v26  ;;  %4832 = vmatprep.subr.bf16.mxu1 %v6301_v38  ;;  %v6593_v36 = vpack.c.bf16 %v1779_v28, %v1775_v19  ;;  %v1774_v26 = vld [vmem:[%s7734_s1 + $0x100] sm:$0xff]  ;;  %v1990_v19 = vld [vmem:[%s7734_s1 + $0x18] sm:$0xff] }
 0x649   :  { %v1778_v38 = vld [vmem:[%s7734_s1 + $0x120] sm:$0xff] }
 0x64b   :  { %4802 = vmatpush1.bf16.msra.mxu0 %v6303_v39  ;;  %4834 = vmatpush1.bf16.msra.mxu1 %v6312_v50  ;;  %v6601_v39 = vpack.c.bf16 %v1778_v38, %v1774_v26  ;;  %v1783_v50 = vld [vmem:[%s7734_s1 + $0x148] sm:$0xff]  ;;  %v1994_v26 = vld [vmem:[%s7734_s1 + $0x38] sm:$0xff]  ;;  %v1987_v38 = vld [vmem:[%s7734_s1] sm:$0xff] }
 0x64c   :  { %4804 = vmatprep.subr.bf16.mxu0 %v6326_v49  ;;  %4836 = vmatprep.subr.bf16.mxu1 %v6337_v55  ;;  %v1787_v49 = vld [vmem:[%s7734_s1 + $0x168] sm:$0xff] }
 0x64d   :  { %v6611_v55 = vpack.c.bf16 %v1787_v49, %v1783_v50  ;;  %v1991_v50 = vld [vmem:[%s7734_s1 + $0x20] sm:$0xff]  ;;  %v6701_v49 = vpack.c.bf16 %v1994_v26, %v1990_v19  ;;  %v2021_v19 = vld [vmem:[%s7734_s1 + $0x110] sm:$0xff] }
 0x64e   :  { %v2025_v26 = vld [vmem:[%s7734_s1 + $0x130] sm:$0xff] }
 0x64f   :  { %4838 = vmatpush1.bf16.msra.mxu1 %v6339_v58  ;;  %4806 = vmatpush1.bf16.msra.mxu0 %v6584_v34  ;;  %v1782_v58 = vld [vmem:[%s7734_s1 + $0x140] sm:$0xff] }
 0x650   :  { %4840 = vmatprep.subr.bf16.mxu1 %v6352_v61  ;;  %4808 = vmatprep.subr.bf16.mxu0 %v6593_v36  ;;  %v1786_v61 = vld [vmem:[%s7734_s1 + $0x160] sm:$0xff] }
 0x653   :  { %4842 = vmatpush1.bf16.msra.mxu1 %v6360_v10  ;;  %4810 = vmatpush1.bf16.msra.mxu0 %v6601_v39  ;;  %v6619_v10 = vpack.c.bf16 %v1786_v61, %v1782_v58  ;;  %v6703_v58 = vpack.c.bf16 %v1991_v50, %v1987_v38  ;;  %v1989_v61 = vld [vmem:[%s7734_s1 + $0x10] sm:$0xff]  ;;  %v6832_v38 = vpack.c.bf16 %v2025_v26, %v2021_v19  ;;  %v2030_v50 = vld [vmem:[%s7734_s1 + $0x158] sm:$0xff] }
 0x654   :  { %4844 = vmatprep.subr.bf16.mxu1 %v6372_v8  ;;  %v1791_v8 = vld [vmem:[%s7734_s1 + $0x188] sm:$0xff]  ;;  %4812 = vmatprep.subr.bf16.mxu0 %v6611_v55  ;;  %v4193_v26 = vld [vmem:[%s7735_s0 + $0xf0] sm:$0xff] }
 0x657   :  { %4846 = vmatpush1.bf16.msra.mxu1 %v6380_v57  ;;  %v1795_v57 = vld [vmem:[%s7734_s1 + $0x1a8] sm:$0xff]  ;;  %4814 = vmatpush1.bf16.msra.mxu0 %v6619_v10 }
 0x658   :  { %4848 = vmatprep.subr.bf16.mxu1 %v6392_v25  ;;  %v1790_v25 = vld [vmem:[%s7734_s1 + $0x180] sm:$0xff] }
 0x65b   :  { %4850 = vmatpush1.bf16.msra.mxu1 %v6406_v29  ;;  %v6631_v29 = vpack.c.bf16 %v1795_v57, %v1791_v8  ;;  %v1993_v8 = vld [vmem:[%s7734_s1 + $0x30] sm:$0xff] }
 0x65c   :  { %4852 = vmatprep.subr.bf16.mxu1 %v6409_v31  ;;  %v1794_v31 = vld [vmem:[%s7734_s1 + $0x1a0] sm:$0xff]  ;;  %v6712_v57 = vpack.c.bf16 %v1993_v8, %v1989_v61  ;;  %v2034_v61 = vld [vmem:[%s7734_s1 + $0x178] sm:$0xff] }
 0x65d   :  { %v6643_v37 = vpack.c.bf16 %v1794_v31, %v1790_v25  ;;  %4816 = vmatprep.subr.bf16.mxu0 %v6631_v29  ;;  %v1996_v25 = vld [vmem:[%s7734_s1 + $0x48] sm:$0xff]  ;;  %v6844_v8 = vpack.c.bf16 %v2034_v61, %v2030_v50  ;;  %v4194_v61 = vld [vmem:[%s7735_s0 + $0xf8] sm:$0xff] }
 0x65e   :  { %v2000_v31 = vld [vmem:[%s7734_s1 + $0x68] sm:$0xff] }
 0x65f   :  { %4854 = vmatpush1.bf16.msra.mxu1 %v6420_v41  ;;  %v1799_v41 = vld [vmem:[%s7734_s1 + $0x1c8] sm:$0xff]  ;;  %4818 = vmatpush1.bf16.msra.mxu0 %v6643_v37 }
 0x660   :  { %v6646_v27 = vpack.c.bf16 %v1803_v48, %v1799_v41  ;;  %4888 = vmatprep.subr.bf16.mxu1 %v6701_v49  ;;  %v1998_v41 = vld [vmem:[%s7734_s1 + $0x58] sm:$0xff]  ;;  %v6726_v48 = vpack.c.bf16 %v2000_v31, %v1996_v25  ;;  %v2029_v25 = vld [vmem:[%s7734_s1 + $0x150] sm:$0xff] }
 0x661   :  { %v2033_v31 = vld [vmem:[%s7734_s1 + $0x170] sm:$0xff] }
 0x662   :  { %4820 = vmatprep.subr.bf16.mxu0 %v6646_v27 }
 0x663   :  { %4822 = vmatpush1.bf16.msra.mxu0 %v6655_v44 }
 0x715   :  { %v1627_v21 = vpop.f32.mrb[10].mxu0  ;;  %v1698_v62 = vpop.f32.mrb[14].mxu1 }
 0x716   :  { %v1703_v7 = vadd.f32 %v4184_v45, %v1627_v21  ;;  %v1629_v24 = vpop.f32.mrb[11].mxu0  ;;  %v1700_v42 = vpop.f32.mrb[15].mxu1  ;;  %v1705_v13 = vadd.f32 %v4186_v40, %v1698_v62  ;;  %v1999_v45 = vld [vmem:[%s7734_s1 + $0x60] sm:$0xff]  ;;  %v1997_v62 = vld [vmem:[%s7734_s1 + $0x50] sm:$0xff]  ;;  %v2010_v40 = vld [vmem:[%s7734_s1 + $0xb8] sm:$0xff] }
 0x717   :  { %v1704_v22 = vadd.f32 %v4185_v14, %v1629_v24  ;;  %v1706_v4 = vadd.f32 %v4187_v20, %v1700_v42  ;;  %v6737_v14 = vpack.c.bf16 %v2002_v32, %v1998_v41  ;;  %v6739_v21 = vpack.c.bf16 %v1999_v45, %v1995_v0  ;;  %v2004_v42 = vld [vmem:[%s7734_s1 + $0x88] sm:$0xff]  ;;  %v2007_v20 = vld [vmem:[%s7734_s1 + $0xa0] sm:$0xff]  ;;  %v2038_v32 = vld [vmem:[%s7734_s1 + $0x198] sm:$0xff] }
 0x718   :  { %v4188_v23 = vmul.f32 -1.442695, %v1703_v7  ;;  %v4190_v51 = vmul.f32 -1.442695, %v1705_v13  ;;  %v2001_v7 = vld [vmem:[%s7734_s1 + $0x70] sm:$0xff]  ;;  %v2003_v13 = vld [vmem:[%s7734_s1 + $0x80] sm:$0xff]  ;;  %v6852_v41 = vpack.c.bf16 %v2033_v31, %v2029_v25 }
 0x719   :  { %v4189_v30 = vmul.f32 -1.442695, %v1704_v22  ;;  %v6748_v24 = vpack.c.bf16 %v2001_v7, %v1997_v62  ;;  %v2008_v22 = vld [vmem:[%s7734_s1 + $0xa8] sm:$0xff]  ;;  %v2042_v0 = vld [vmem:[%s7734_s1 + $0x1b8] sm:$0xff]  ;;  %v2037_v45 = vld [vmem:[%s7734_s1 + $0x190] sm:$0xff] }
 0x71a   :  { %5496 = vpow2.f32 %v4188_v23  ;;  %v2006_v23 = vld [vmem:[%s7734_s1 + $0x98] sm:$0xff]  ;;  %v6864_v62 = vpack.c.bf16 %v2042_v0, %v2038_v32  ;;  %v2041_v7 = vld [vmem:[%s7734_s1 + $0x1b0] sm:$0xff] }
 0x71b   :  { %5498 = vpow2.f32 %v4189_v30  ;;  %v6762_v30 = vpack.c.bf16 %v2008_v22, %v2004_v42  ;;  %v2046_v42 = vld [vmem:[%s7734_s1 + $0x1d8] sm:$0xff] }
 0x71c   :  { %5500 = vtanh.f32 %v1706_v4  ;;  %v6773_v4 = vpack.c.bf16 %v2010_v40, %v2006_v23  ;;  %v2050_v22 = vld [vmem:[%s7734_s1 + $0x1f8] sm:$0xff]  ;;  %v6878_v23 = vpack.c.bf16 %v2041_v7, %v2037_v45 }
 0x71d   :  { %5502 = vpow2.f32 %v4190_v51  ;;  %v6775_v51 = vpack.c.bf16 %v2007_v20, %v2003_v13  ;;  %v6881_v40 = vpack.c.bf16 %v2050_v22, %v2046_v42  ;;  %v2045_v13 = vld [vmem:[%s7734_s1 + $0x1d0] sm:$0xff] }
 0x71e   :  { %v2049_v20 = vld [vmem:[%s7734_s1 + $0x1f0] sm:$0xff] }
 0x724   :  { %v5497_v52 = vpop.eup %5496 }
 0x725   :  { %v1716_v53 = vadd.f32 1.0, %v5497_v52  ;;  %v5499_v54 = vpop.eup %5498  ;;  %v2005_v52 = vld [vmem:[%s7734_s1 + $0x90] sm:$0xff] }
 0x726   :  { %v1717_v59 = vadd.f32 1.0, %v5499_v54  ;;  %v5501_v60 = vpop.eup %5500 }
 0x727   :  { %5504 = vrcp.f32 %v1716_v53  ;;  %v5503_v1 = vpop.eup %5502  ;;  %v2009_v53 = vld [vmem:[%s7734_s1 + $0xb0] sm:$0xff] }
 0x728   :  { %5506 = vrcp.f32 %v1717_v59  ;;  %v1718_v9 = vadd.f32 1.0, %v5503_v1  ;;  %v6784_v54 = vpack.c.bf16 %v2009_v53, %v2005_v52  ;;  %v2012_v59 = vld [vmem:[%s7734_s1 + $0xc8] sm:$0xff]  ;;  %v2014_v1 = vld [vmem:[%s7734_s1 + $0xd8] sm:$0xff]  ;;  %v6892_v52 = vpack.c.bf16 %v2049_v20, %v2045_v13  ;;  %v4191_v53 = vld [vmem:[%s7735_s0 + $0xe0] sm:$0xff] }
 0x72a   :  { %5508 = vrcp.f32 %v1718_v9  ;;  %v2017_v9 = vld [vmem:[%s7734_s1 + $0xf0] sm:$0xff] }
 0x731   :  { %v5505_v2 = vpop.eup %5504 }
 0x732   :  { %v1728_v11 = vmul.f32 %v5505_v2, %v5501_v60  ;;  %v5507_v12 = vpop.eup %5506  ;;  %v2016_v60 = vld [vmem:[%s7734_s1 + $0xe8] sm:$0xff] }
 0x733   :  { %v1727_v15 = vmul.f32 %v5507_v12, %v6548_v16  ;;  %v1988_v16 = vld [vmem:[%s7734_s1 + $0x8] sm:$0xff]  ;;  %v6798_v2 = vpack.c.bf16 %v2016_v60, %v2012_v59  ;;  %v2013_v12 = vld [vmem:[%s7734_s1 + $0xd0] sm:$0xff] }
 0x734   :  { %v5509_v17 = vpop.eup %5508  ;;  %v6690_v28 = vpack.c.bf16 %v1992_v6, %v1988_v16  ;;  %v2026_v16 = vld [vmem:[%s7734_s1 + $0x138] sm:$0xff]  ;;  %v4192_v59 = vld [vmem:[%s7735_s0 + $0xe8] sm:$0xff] }
 0x735   :  { %v6672_v63 = vadd.f32 %v1728_v11, %v1727_v15  ;;  %v2018_v11 = vld [vmem:[%s7734_s1 + $0xf8] sm:$0xff] }
 0x736   :  { %4856 = vmatprep.subr.bf16.mxu0 %v6690_v28  ;;  %v6809_v15 = vpack.c.bf16 %v2018_v11, %v2014_v1 }
 0x737   :  { %5510 = vtanh.f32 %v6672_v63 }
 0x741   :  { %v5511_v35 = vpop.eup %5510 }
 0x742   :  { %v6675_v56 = vmul.f32 %v5511_v35, %v5509_v17  ;;  %v6811_v17 = vpack.c.bf16 %v2017_v9, %v2013_v12  ;;  %v2022_v35 = vld [vmem:[%s7734_s1 + $0x118] sm:$0xff] }
 0x743   :  { %v6824_v6 = vpack.c.bf16 %v2026_v16, %v2022_v35 }
 0x744   :  { %1871 = vmatmul.mubr.f32.vlgmr.msra.gmra.mrb[12].mxu0 %v6675_v56  ;;  %1942 = vmatmul.mubr.f32.vlgmr.msra.gmra.mrb[16].mxu1 %v6675_v56 }
 0x745   :  { %2115 = vmatprep.mubr.f32.mxu0 %v5656_v3  ;;  %2186 = vmatprep.mubr.f32.mxu1 %v5656_v3 }
 0x746   :  { %4858 = vmatpush1.bf16.msra.mxu0 %v6703_v58  ;;  %4890 = vmatpush1.bf16.msra.mxu1 %v6712_v57 }
 0x747   :  { %4860 = vmatprep.subr.bf16.mxu0 %v6726_v48  ;;  %4892 = vmatprep.subr.bf16.mxu1 %v6737_v14 }
 0x74a   :  { %4862 = vmatpush1.bf16.msra.mxu0 %v6739_v21  ;;  %4894 = vmatpush1.bf16.msra.mxu1 %v6748_v24 }
 0x74b   :  { %4864 = vmatprep.subr.bf16.mxu0 %v6762_v30  ;;  %4896 = vmatprep.subr.bf16.mxu1 %v6773_v4 }
 0x74e   :  { %4866 = vmatpush1.bf16.msra.mxu0 %v6775_v51  ;;  %4898 = vmatpush1.bf16.msra.mxu1 %v6784_v54 }
 0x74f   :  { %4868 = vmatprep.subr.bf16.mxu0 %v6798_v2  ;;  %4900 = vmatprep.subr.bf16.mxu1 %v6809_v15 }
 0x752   :  { %4870 = vmatpush1.bf16.msra.mxu0 %v6584_v34  ;;  %4902 = vmatpush1.bf16.msra.mxu1 %v6811_v17 }
 0x753   :  { %4872 = vmatprep.subr.bf16.mxu0 %v6593_v36  ;;  %4904 = vmatprep.subr.bf16.mxu1 %v6824_v6 }
 0x756   :  { %4874 = vmatpush1.bf16.msra.mxu0 %v6601_v39  ;;  %4906 = vmatpush1.bf16.msra.mxu1 %v6832_v38 }
 0x757   :  { %4876 = vmatprep.subr.bf16.mxu0 %v6611_v55  ;;  %4908 = vmatprep.subr.bf16.mxu1 %v6844_v8 }
 0x75a   :  { %4878 = vmatpush1.bf16.msra.mxu0 %v6619_v10  ;;  %4910 = vmatpush1.bf16.msra.mxu1 %v6852_v41 }
 0x75b   :  { %4880 = vmatprep.subr.bf16.mxu0 %v6631_v29  ;;  %4912 = vmatprep.subr.bf16.mxu1 %v6864_v62 }
 0x75e   :  { %4882 = vmatpush1.bf16.msra.mxu0 %v6643_v37  ;;  %4914 = vmatpush1.bf16.msra.mxu1 %v6878_v23 }
 0x75f   :  { %4884 = vmatprep.subr.bf16.mxu0 %v6646_v27  ;;  %4916 = vmatprep.subr.bf16.mxu1 %v6881_v40 }
 0x762   :  { %4886 = vmatpush1.bf16.msra.mxu0 %v6655_v44  ;;  %4918 = vmatpush1.bf16.msra.mxu1 %v6892_v52 }
 0x763   :  { %4920 = vmatprep.subr.bf16.mxu0 %v6690_v28  ;;  %4952 = vmatprep.subr.bf16.mxu1 %v6701_v49 }
 0x817   :  { %v1872_v60 = vpop.f32.mrb[12].mxu0  ;;  %v1943_v1 = vpop.f32.mrb[16].mxu1 }
 0x818   :  { %v1948_v11 = vadd.f32 %v4191_v53, %v1872_v60  ;;  %v1874_v12 = vpop.f32.mrb[13].mxu0  ;;  %v1945_v9 = vpop.f32.mrb[17].mxu1  ;;  %v1950_v50 = vadd.f32 %v4193_v26, %v1943_v1 }
 0x819   :  { %v1949_v35 = vadd.f32 %v4192_v59, %v1874_v12  ;;  %v1951_v25 = vadd.f32 %v4194_v61, %v1945_v9 }
 0x81a   :  { %v4195_v16 = vmul.f32 -1.442695, %v1948_v11  ;;  %v4197_v31 = vmul.f32 -1.442695, %v1950_v50 }
 0x81b   :  { %v4196_v19 = vmul.f32 -1.442695, %v1949_v35  ;;  %v4199_v35 = vld [vmem:[%s7735_s0 + $0x108] sm:$0xff] }
 0x81c   :  { %5512 = vpow2.f32 %v4195_v16 }
 0x81d   :  { %5514 = vpow2.f32 %v4196_v19 }
 0x81e   :  { %5516 = vtanh.f32 %v1951_v25 }
 0x81f   :  { %5518 = vpow2.f32 %v4197_v31 }
 0x826   :  { %v5513_v32 = vpop.eup %5512 }
 0x827   :  { %v1961_v0 = vadd.f32 1.0, %v5513_v32  ;;  %v5515_v45 = vpop.eup %5514 }
 0x828   :  { %v1962_v7 = vadd.f32 1.0, %v5515_v45  ;;  %v5517_v42 = vpop.eup %5516 }
 0x829   :  { %5520 = vrcp.f32 %v1961_v0  ;;  %v5519_v22 = vpop.eup %5518  ;;  %v4200_v0 = vld [vmem:[%s7735_s0 + $0x110] sm:$0xff] }
 0x82a   :  { %5522 = vrcp.f32 %v1962_v7  ;;  %v1963_v59 = vadd.f32 1.0, %v5519_v22  ;;  %v4201_v7 = vld [vmem:[%s7735_s0 + $0x118] sm:$0xff] }
 0x82c   :  { %5524 = vrcp.f32 %v1963_v59 }
 0x833   :  { %v5521_v13 = vpop.eup %5520 }
 0x834   :  { %v1973_v20 = vmul.f32 %v5521_v13, %v5517_v42  ;;  %v5523_v53 = vpop.eup %5522 }
 0x835   :  { %v1972_v60 = vmul.f32 %v5523_v53, %v6672_v63  ;;  %v4198_v63 = vld [vmem:[%s7735_s0 + $0x100] sm:$0xff] }
 0x836   :  { %v5525_v11 = vpop.eup %5524 }
 0x837   :  { %v6912_v1 = vadd.f32 %v1973_v20, %v1972_v60 }
 0x839   :  { %5526 = vtanh.f32 %v6912_v1 }
 0x843   :  { %v5527_v12 = vpop.eup %5526 }
 0x844   :  { %v6915_v9 = vmul.f32 %v5527_v12, %v5525_v11 }
 0x846   :  { %2116 = vmatmul.mubr.f32.vlgmr.msra.gmra.mrb[14].mxu0 %v6915_v9  ;;  %2187 = vmatmul.mubr.f32.vlgmr.msra.gmra.mrb[18].mxu1 %v6915_v9 }
 0x847   :  { %4922 = vmatpush1.bf16.msra.mxu0 %v6703_v58  ;;  %4954 = vmatpush1.bf16.msra.mxu1 %v6712_v57 }
 0x848   :  { %4924 = vmatprep.subr.bf16.mxu0 %v6726_v48  ;;  %4956 = vmatprep.subr.bf16.mxu1 %v6737_v14 }
 0x849   :  { %2360 = vmatprep.mubr.f32.mxu0 %v5656_v3  ;;  %2431 = vmatprep.mubr.f32.mxu1 %v5656_v3 }
 0x84b   :  { %4926 = vmatpush1.bf16.msra.mxu0 %v6739_v21  ;;  %4958 = vmatpush1.bf16.msra.mxu1 %v6748_v24 }
 0x84c   :  { %4928 = vmatprep.subr.bf16.mxu0 %v6762_v30  ;;  %4960 = vmatprep.subr.bf16.mxu1 %v6773_v4 }
 0x84f   :  { %4930 = vmatpush1.bf16.msra.mxu0 %v6775_v51  ;;  %4962 = vmatpush1.bf16.msra.mxu1 %v6784_v54 }
 0x850   :  { %4932 = vmatprep.subr.bf16.mxu0 %v6798_v2  ;;  %4964 = vmatprep.subr.bf16.mxu1 %v6809_v15 }
 0x853   :  { %4934 = vmatpush1.bf16.msra.mxu0 %v6584_v34  ;;  %4966 = vmatpush1.bf16.msra.mxu1 %v6811_v17 }
 0x854   :  { %4936 = vmatprep.subr.bf16.mxu0 %v6593_v36  ;;  %4968 = vmatprep.subr.bf16.mxu1 %v6824_v6 }
 0x857   :  { %4938 = vmatpush1.bf16.msra.mxu0 %v6601_v39  ;;  %4970 = vmatpush1.bf16.msra.mxu1 %v6832_v38 }
 0x858   :  { %4940 = vmatprep.subr.bf16.mxu0 %v6611_v55  ;;  %4972 = vmatprep.subr.bf16.mxu1 %v6844_v8 }
 0x85b   :  { %4942 = vmatpush1.bf16.msra.mxu0 %v6619_v10  ;;  %4974 = vmatpush1.bf16.msra.mxu1 %v6852_v41 }
 0x85c   :  { %4944 = vmatprep.subr.bf16.mxu0 %v6631_v29  ;;  %4976 = vmatprep.subr.bf16.mxu1 %v6864_v62 }
 0x85f   :  { %4946 = vmatpush1.bf16.msra.mxu0 %v6643_v37  ;;  %4978 = vmatpush1.bf16.msra.mxu1 %v6878_v23 }
 0x860   :  { %4948 = vmatprep.subr.bf16.mxu0 %v6646_v27  ;;  %4980 = vmatprep.subr.bf16.mxu1 %v6881_v40 }
 0x863   :  { %4950 = vmatpush1.bf16.msra.mxu0 %v6655_v44  ;;  %4982 = vmatpush1.bf16.msra.mxu1 %v6892_v52 }
 0x864   :  { %4984 = vmatprep.subr.bf16.mxu0 %v6690_v28  ;;  %5016 = vmatprep.subr.bf16.mxu1 %v6701_v49 }
 0x919   :  { %v2117_v16 = vpop.f32.mrb[14].mxu0  ;;  %v2188_v19 = vpop.f32.mrb[18].mxu1 }
 0x91a   :  { %v2193_v26 = vadd.f32 %v4198_v63, %v2117_v16  ;;  %v2119_v50 = vpop.f32.mrb[15].mxu0  ;;  %v2190_v61 = vpop.f32.mrb[19].mxu1  ;;  %v2195_v45 = vadd.f32 %v4200_v0, %v2188_v19 }
 0x91b   :  { %v2194_v25 = vadd.f32 %v4199_v35, %v2119_v50  ;;  %v2196_v42 = vadd.f32 %v4201_v7, %v2190_v61 }
 0x91c   :  { %v4202_v31 = vmul.f32 -1.442695, %v2193_v26  ;;  %v4204_v22 = vmul.f32 -1.442695, %v2195_v45 }
 0x91d   :  { %v4203_v32 = vmul.f32 -1.442695, %v2194_v25 }
 0x91e   :  { %5528 = vpow2.f32 %v4202_v31  ;;  %v4208_v31 = vld [vmem:[%s7735_s0 + $0x138] sm:$0xff] }
 0x91f   :  { %5530 = vpow2.f32 %v4203_v32 }
 0x920   :  { %5532 = vtanh.f32 %v2196_v42 }
 0x921   :  { %5534 = vpow2.f32 %v4204_v22 }
 0x928   :  { %v5529_v13 = vpop.eup %5528 }
 0x929   :  { %v2206_v20 = vadd.f32 1.0, %v5529_v13  ;;  %v5531_v53 = vpop.eup %5530 }
 0x92a   :  { %v2207_v59 = vadd.f32 1.0, %v5531_v53  ;;  %v5533_v60 = vpop.eup %5532 }
 0x92b   :  { %5536 = vrcp.f32 %v2206_v20  ;;  %v5535_v11 = vpop.eup %5534 }
 0x92c   :  { %5538 = vrcp.f32 %v2207_v59  ;;  %v2208_v16 = vadd.f32 1.0, %v5535_v11 }
 0x92e   :  { %5540 = vrcp.f32 %v2208_v16 }
 0x935   :  { %v5537_v12 = vpop.eup %5536 }
 0x936   :  { %v2218_v63 = vmul.f32 %v5537_v12, %v5533_v60  ;;  %v5539_v35 = vpop.eup %5538 }
 0x937   :  { %v2217_v19 = vmul.f32 %v5539_v35, %v6912_v1 }
 0x938   :  { %v5541_v50 = vpop.eup %5540 }
 0x939   :  { %v6966_v26 = vadd.f32 %v2218_v63, %v2217_v19 }
 0x93b   :  { %5542 = vtanh.f32 %v6966_v26 }
 0x945   :  { %v5543_v61 = vpop.eup %5542 }
 0x946   :  { %v6969_v25 = vmul.f32 %v5543_v61, %v5541_v50 }
 0x948   :  { %2361 = vmatmul.mubr.f32.vlgmr.msra.gmra.mrb[16].mxu0 %v6969_v25  ;;  %2432 = vmatmul.mubr.f32.vlgmr.msra.gmra.mrb[20].mxu1 %v6969_v25 }
 0x949   :  { %4986 = vmatpush1.bf16.msra.mxu0 %v6703_v58  ;;  %5018 = vmatpush1.bf16.msra.mxu1 %v6712_v57 }
 0x94a   :  { %4988 = vmatprep.subr.bf16.mxu0 %v6726_v48  ;;  %5020 = vmatprep.subr.bf16.mxu1 %v6737_v14 }
 0x94b   :  { %2605 = vmatprep.mubr.f32.mxu0 %v5656_v3  ;;  %2676 = vmatprep.mubr.f32.mxu1 %v5656_v3 }
 0x94d   :  { %4990 = vmatpush1.bf16.msra.mxu0 %v6739_v21  ;;  %5022 = vmatpush1.bf16.msra.mxu1 %v6748_v24 }
 0x94e   :  { %4992 = vmatprep.subr.bf16.mxu0 %v6762_v30  ;;  %5024 = vmatprep.subr.bf16.mxu1 %v6773_v4 }
 0x951   :  { %4994 = vmatpush1.bf16.msra.mxu0 %v6775_v51  ;;  %5026 = vmatpush1.bf16.msra.mxu1 %v6784_v54 }
 0x952   :  { %4996 = vmatprep.subr.bf16.mxu0 %v6798_v2  ;;  %5028 = vmatprep.subr.bf16.mxu1 %v6809_v15 }
 0x955   :  { %4998 = vmatpush1.bf16.msra.mxu0 %v6584_v34  ;;  %5030 = vmatpush1.bf16.msra.mxu1 %v6811_v17  ;;  %v4205_v34 = vld [vmem:[%s7735_s0 + $0x120] sm:$0xff] }
 0x956   :  { %5000 = vmatprep.subr.bf16.mxu0 %v6593_v36  ;;  %5032 = vmatprep.subr.bf16.mxu1 %v6824_v6  ;;  %v4206_v36 = vld [vmem:[%s7735_s0 + $0x128] sm:$0xff] }
 0x959   :  { %5002 = vmatpush1.bf16.msra.mxu0 %v6601_v39  ;;  %5034 = vmatpush1.bf16.msra.mxu1 %v6832_v38 }
 0x95a   :  { %5004 = vmatprep.subr.bf16.mxu0 %v6611_v55  ;;  %5036 = vmatprep.subr.bf16.mxu1 %v6844_v8 }
 0x95d   :  { %5006 = vmatpush1.bf16.msra.mxu0 %v6619_v10  ;;  %5038 = vmatpush1.bf16.msra.mxu1 %v6852_v41 }
 0x95e   :  { %5008 = vmatprep.subr.bf16.mxu0 %v6631_v29  ;;  %5040 = vmatprep.subr.bf16.mxu1 %v6864_v62 }
 0x961   :  { %5010 = vmatpush1.bf16.msra.mxu0 %v6643_v37  ;;  %5042 = vmatpush1.bf16.msra.mxu1 %v6878_v23 }
 0x962   :  { %5012 = vmatprep.subr.bf16.mxu0 %v6646_v27  ;;  %5044 = vmatprep.subr.bf16.mxu1 %v6881_v40 }
 0x965   :  { %5014 = vmatpush1.bf16.msra.mxu0 %v6655_v44  ;;  %5046 = vmatpush1.bf16.msra.mxu1 %v6892_v52 }
 0x966   :  { %5048 = vmatprep.subr.bf16.mxu0 %v6690_v28  ;;  %5080 = vmatprep.subr.bf16.mxu1 %v6701_v49  ;;  %v4207_v28 = vld [vmem:[%s7735_s0 + $0x130] sm:$0xff] }
 0xa1b   :  { %v2362_v39 = vpop.f32.mrb[16].mxu0  ;;  %v2433_v55 = vpop.f32.mrb[20].mxu1 }
 0xa1c   :  { %v2438_v10 = vadd.f32 %v4205_v34, %v2362_v39  ;;  %v2364_v29 = vpop.f32.mrb[17].mxu0  ;;  %v2435_v37 = vpop.f32.mrb[21].mxu1  ;;  %v2440_v49 = vadd.f32 %v4207_v28, %v2433_v55  ;;  %v2778_v34 = vld [vmem:[%s7734_s1 + $0x1c0] sm:$0xff] }
 0xa1d   :  { %v2439_v27 = vadd.f32 %v4206_v36, %v2364_v29  ;;  %v2441_v32 = vadd.f32 %v4208_v31, %v2435_v37  ;;  %v2782_v36 = vld [vmem:[%s7734_s1 + $0x1e0] sm:$0xff] }
 0xa1e   :  { %v4209_v44 = vmul.f32 -1.442695, %v2438_v10  ;;  %v4211_v0 = vmul.f32 -1.442695, %v2440_v49  ;;  %v7127_v39 = vpack.c.bf16 %v2782_v36, %v2778_v34  ;;  %v4212_v55 = vld [vmem:[%s7735_s0 + $0x140] sm:$0xff]  ;;  %v4213_v10 = vld [vmem:[%s7735_s0 + $0x148] sm:$0xff] }
 0xa1f   :  { %v4210_v1 = vmul.f32 -1.442695, %v2439_v27  ;;  %v2976_v34 = vld [vmem:[%s7734_s1 + $0x48] sm:$0xff] }
 0xa20   :  { %5544 = vpow2.f32 %v4209_v44  ;;  %v2980_v36 = vld [vmem:[%s7734_s1 + $0x68] sm:$0xff] }
 0xa21   :  { %5546 = vpow2.f32 %v4210_v1 }
 0xa22   :  { %5548 = vtanh.f32 %v2441_v32  ;;  %v4214_v32 = vld [vmem:[%s7735_s0 + $0x150] sm:$0xff] }
 0xa23   :  { %5550 = vpow2.f32 %v4211_v0 }
 0xa2a   :  { %v5545_v45 = vpop.eup %5544 }
 0xa2b   :  { %v2451_v7 = vadd.f32 1.0, %v5545_v45  ;;  %v5547_v42 = vpop.eup %5546  ;;  %v4215_v45 = vld [vmem:[%s7735_s0 + $0x158] sm:$0xff] }
 0xa2c   :  { %v2452_v22 = vadd.f32 1.0, %v5547_v42  ;;  %v5549_v13 = vpop.eup %5548 }
 0xa2d   :  { %5552 = vrcp.f32 %v2451_v7  ;;  %v5551_v20 = vpop.eup %5550 }
 0xa2e   :  { %5554 = vrcp.f32 %v2452_v22  ;;  %v2453_v11 = vadd.f32 1.0, %v5551_v20 }
 0xa30   :  { %5556 = vrcp.f32 %v2453_v11 }
 0xa37   :  { %v5553_v53 = vpop.eup %5552 }
 0xa38   :  { %v2463_v59 = vmul.f32 %v5553_v53, %v5549_v13  ;;  %v5555_v60 = vpop.eup %5554 }
 0xa39   :  { %v2462_v12 = vmul.f32 %v5555_v60, %v6966_v26  ;;  %v2783_v26 = vld [vmem:[%s7734_s1 + $0x1e8] sm:$0xff] }
 0xa3a   :  { %v5557_v35 = vpop.eup %5556 }
 0xa3b   :  { %v7020_v63 = vadd.f32 %v2463_v59, %v2462_v12 }
 0xa3d   :  { %5558 = vtanh.f32 %v7020_v63 }
 0xa47   :  { %v5559_v16 = vpop.eup %5558 }
 0xa48   :  { %v7023_v19 = vmul.f32 %v5559_v16, %v5557_v35 }
 0xa4a   :  { %2606 = vmatmul.mubr.f32.vlgmr.msra.gmra.mrb[18].mxu0 %v7023_v19  ;;  %2677 = vmatmul.mubr.f32.vlgmr.msra.gmra.mrb[22].mxu1 %v7023_v19 }
 0xa4b   :  { %5050 = vmatpush1.bf16.msra.mxu0 %v6703_v58  ;;  %5082 = vmatpush1.bf16.msra.mxu1 %v6712_v57  ;;  %v2746_v58 = vld [vmem:[%s7734_s1 + $0xc0] sm:$0xff] }
 0xa4c   :  { %5052 = vmatprep.subr.bf16.mxu0 %v6726_v48  ;;  %5084 = vmatprep.subr.bf16.mxu1 %v6737_v14  ;;  %v2750_v57 = vld [vmem:[%s7734_s1 + $0xe0] sm:$0xff]  ;;  %v2755_v14 = vld [vmem:[%s7734_s1 + $0x108] sm:$0xff] }
 0xa4d   :  { %2850 = vmatprep.mubr.f32.mxu0 %v5656_v3  ;;  %2921 = vmatprep.mubr.f32.mxu1 %v5656_v3  ;;  %v7056_v48 = vpack.c.bf16 %v2750_v57, %v2746_v58 }
 0xa4f   :  { %5054 = vmatpush1.bf16.msra.mxu0 %v6739_v21  ;;  %5086 = vmatpush1.bf16.msra.mxu1 %v6748_v24  ;;  %v2759_v21 = vld [vmem:[%s7734_s1 + $0x128] sm:$0xff] }
 0xa50   :  { %5056 = vmatprep.subr.bf16.mxu0 %v6762_v30  ;;  %5088 = vmatprep.subr.bf16.mxu1 %v6773_v4  ;;  %v7065_v24 = vpack.c.bf16 %v2759_v21, %v2755_v14  ;;  %v2754_v30 = vld [vmem:[%s7734_s1 + $0x100] sm:$0xff] }
 0xa51   :  { %v2758_v4 = vld [vmem:[%s7734_s1 + $0x120] sm:$0xff] }
 0xa53   :  { %5058 = vmatpush1.bf16.msra.mxu0 %v6775_v51  ;;  %5090 = vmatpush1.bf16.msra.mxu1 %v6784_v54  ;;  %v7073_v51 = vpack.c.bf16 %v2758_v4, %v2754_v30  ;;  %v2763_v54 = vld [vmem:[%s7734_s1 + $0x148] sm:$0xff] }
 0xa54   :  { %5060 = vmatprep.subr.bf16.mxu0 %v6798_v2  ;;  %5092 = vmatprep.subr.bf16.mxu1 %v6809_v15  ;;  %v2767_v2 = vld [vmem:[%s7734_s1 + $0x168] sm:$0xff] }
 0xa55   :  { %v7083_v15 = vpack.c.bf16 %v2767_v2, %v2763_v54  ;;  %v2972_v4 = vld [vmem:[%s7734_s1 + $0x28] sm:$0xff]  ;;  %v2970_v54 = vld [vmem:[%s7734_s1 + $0x18] sm:$0xff] }
 0xa57   :  { %5094 = vmatpush1.bf16.msra.mxu1 %v6811_v17  ;;  %5062 = vmatpush1.bf16.msra.mxu0 %v7056_v48  ;;  %v2762_v17 = vld [vmem:[%s7734_s1 + $0x140] sm:$0xff] }
 0xa58   :  { %5096 = vmatprep.subr.bf16.mxu1 %v6824_v6  ;;  %5064 = vmatprep.subr.bf16.mxu0 %v7065_v24  ;;  %v2766_v6 = vld [vmem:[%s7734_s1 + $0x160] sm:$0xff] }
 0xa5b   :  { %5098 = vmatpush1.bf16.msra.mxu1 %v6832_v38  ;;  %5066 = vmatpush1.bf16.msra.mxu0 %v7073_v51  ;;  %v7091_v38 = vpack.c.bf16 %v2766_v6, %v2762_v17  ;;  %v2974_v17 = vld [vmem:[%s7734_s1 + $0x38] sm:$0xff]  ;;  %v2967_v6 = vld [vmem:[%s7734_s1] sm:$0xff] }
 0xa5c   :  { %5100 = vmatprep.subr.bf16.mxu1 %v6844_v8  ;;  %v2771_v8 = vld [vmem:[%s7734_s1 + $0x188] sm:$0xff]  ;;  %5068 = vmatprep.subr.bf16.mxu0 %v7083_v15 }
 0xa5f   :  { %5102 = vmatpush1.bf16.msra.mxu1 %v6852_v41  ;;  %v2775_v41 = vld [vmem:[%s7734_s1 + $0x1a8] sm:$0xff]  ;;  %5070 = vmatpush1.bf16.msra.mxu0 %v7091_v38 }
 0xa60   :  { %5104 = vmatprep.subr.bf16.mxu1 %v6864_v62  ;;  %v2770_v62 = vld [vmem:[%s7734_s1 + $0x180] sm:$0xff] }
 0xa63   :  { %5106 = vmatpush1.bf16.msra.mxu1 %v6878_v23  ;;  %v7103_v23 = vpack.c.bf16 %v2775_v41, %v2771_v8  ;;  %v2971_v8 = vld [vmem:[%s7734_s1 + $0x20] sm:$0xff]  ;;  %v7173_v41 = vpack.c.bf16 %v2974_v17, %v2970_v54  ;;  %v3002_v17 = vld [vmem:[%s7734_s1 + $0x118] sm:$0xff] }
 0xa64   :  { %5108 = vmatprep.subr.bf16.mxu1 %v6881_v40  ;;  %v2774_v40 = vld [vmem:[%s7734_s1 + $0x1a0] sm:$0xff] }
 0xa65   :  { %v7115_v50 = vpack.c.bf16 %v2774_v40, %v2770_v62  ;;  %5072 = vmatprep.subr.bf16.mxu0 %v7103_v23  ;;  %v7175_v62 = vpack.c.bf16 %v2971_v8, %v2967_v6  ;;  %v2969_v40 = vld [vmem:[%s7734_s1 + $0x10] sm:$0xff]  ;;  %v3006_v6 = vld [vmem:[%s7734_s1 + $0x138] sm:$0xff] }
 0xa66   :  { %v7296_v8 = vpack.c.bf16 %v3006_v6, %v3002_v17 }
 0xa67   :  { %5110 = vmatpush1.bf16.msra.mxu1 %v6892_v52  ;;  %v2779_v52 = vld [vmem:[%s7734_s1 + $0x1c8] sm:$0xff]  ;;  %5074 = vmatpush1.bf16.msra.mxu0 %v7115_v50 }
 0xa68   :  { %v7118_v61 = vpack.c.bf16 %v2783_v26, %v2779_v52  ;;  %v2973_v52 = vld [vmem:[%s7734_s1 + $0x30] sm:$0xff]  ;;  %5144 = vmatprep.subr.bf16.mxu1 %v7173_v41 }
 0xa69   :  { %v7184_v26 = vpack.c.bf16 %v2973_v52, %v2969_v40  ;;  %v3001_v40 = vld [vmem:[%s7734_s1 + $0x110] sm:$0xff] }
 0xa6a   :  { %5076 = vmatprep.subr.bf16.mxu0 %v7118_v61  ;;  %v3005_v52 = vld [vmem:[%s7734_s1 + $0x130] sm:$0xff] }
 0xa6b   :  { %5078 = vmatpush1.bf16.msra.mxu0 %v7127_v39 }
 0xb1d   :  { %v2607_v29 = vpop.f32.mrb[18].mxu0  ;;  %v2678_v37 = vpop.f32.mrb[22].mxu1 }
 0xb1e   :  { %v2683_v27 = vadd.f32 %v4212_v55, %v2607_v29  ;;  %v2609_v44 = vpop.f32.mrb[19].mxu0  ;;  %v2680_v1 = vpop.f32.mrb[23].mxu1  ;;  %v2685_v0 = vadd.f32 %v4214_v32, %v2678_v37  ;;  %v2978_v55 = vld [vmem:[%s7734_s1 + $0x58] sm:$0xff]  ;;  %v2975_v37 = vld [vmem:[%s7734_s1 + $0x40] sm:$0xff]  ;;  %v2984_v32 = vld [vmem:[%s7734_s1 + $0x88] sm:$0xff] }
 0xb1f   :  { %v2684_v28 = vadd.f32 %v4213_v10, %v2609_v44  ;;  %v2686_v7 = vadd.f32 %v4215_v45, %v2680_v1  ;;  %v7198_v10 = vpack.c.bf16 %v2980_v36, %v2976_v34  ;;  %v2982_v29 = vld [vmem:[%s7734_s1 + $0x78] sm:$0xff]  ;;  %v7304_v34 = vpack.c.bf16 %v3005_v52, %v3001_v40 }
 0xb20   :  { %v4216_v49 = vmul.f32 -1.442695, %v2683_v27  ;;  %v4218_v42 = vmul.f32 -1.442695, %v2685_v0  ;;  %v2979_v27 = vld [vmem:[%s7734_s1 + $0x60] sm:$0xff]  ;;  %v7209_v44 = vpack.c.bf16 %v2982_v29, %v2978_v55  ;;  %v2988_v0 = vld [vmem:[%s7734_s1 + $0xa8] sm:$0xff] }
 0xb21   :  { %v4217_v31 = vmul.f32 -1.442695, %v2684_v28  ;;  %v7211_v1 = vpack.c.bf16 %v2979_v27, %v2975_v37  ;;  %v2977_v28 = vld [vmem:[%s7734_s1 + $0x50] sm:$0xff]  ;;  %v2986_v45 = vld [vmem:[%s7734_s1 + $0x98] sm:$0xff] }
 0xb22   :  { %5560 = vpow2.f32 %v4216_v49  ;;  %v2981_v49 = vld [vmem:[%s7734_s1 + $0x70] sm:$0xff]  ;;  %v3010_v36 = vld [vmem:[%s7734_s1 + $0x158] sm:$0xff] }
 0xb23   :  { %5562 = vpow2.f32 %v4217_v31  ;;  %v7220_v31 = vpack.c.bf16 %v2981_v49, %v2977_v28  ;;  %v3014_v55 = vld [vmem:[%s7734_s1 + $0x178] sm:$0xff]  ;;  %v3009_v37 = vld [vmem:[%s7734_s1 + $0x150] sm:$0xff] }
 0xb24   :  { %5564 = vtanh.f32 %v2686_v7  ;;  %v7234_v7 = vpack.c.bf16 %v2988_v0, %v2984_v32  ;;  %v7316_v29 = vpack.c.bf16 %v3014_v55, %v3010_v36  ;;  %v3013_v27 = vld [vmem:[%s7734_s1 + $0x170] sm:$0xff]  ;;  %v3018_v49 = vld [vmem:[%s7734_s1 + $0x198] sm:$0xff] }
 0xb25   :  { %5566 = vpow2.f32 %v4218_v42  ;;  %v2990_v42 = vld [vmem:[%s7734_s1 + $0xb8] sm:$0xff]  ;;  %v7324_v28 = vpack.c.bf16 %v3013_v27, %v3009_v37  ;;  %v3017_v0 = vld [vmem:[%s7734_s1 + $0x190] sm:$0xff] }
 0xb26   :  { %v3022_v32 = vld [vmem:[%s7734_s1 + $0x1b8] sm:$0xff]  ;;  %v4221_v27 = vld [vmem:[%s7735_s0 + $0x170] sm:$0xff] }
 0xb2c   :  { %v5561_v22 = vpop.eup %5560 }
 0xb2d   :  { %v2696_v13 = vadd.f32 1.0, %v5561_v22  ;;  %v5563_v20 = vpop.eup %5562  ;;  %v2983_v22 = vld [vmem:[%s7734_s1 + $0x80] sm:$0xff] }
 0xb2e   :  { %v2697_v53 = vadd.f32 1.0, %v5563_v20  ;;  %v5565_v59 = vpop.eup %5564  ;;  %v7245_v20 = vpack.c.bf16 %v2990_v42, %v2986_v45  ;;  %v7336_v45 = vpack.c.bf16 %v3022_v32, %v3018_v49  ;;  %v3021_v42 = vld [vmem:[%s7734_s1 + $0x1b0] sm:$0xff]  ;;  %v4222_v32 = vld [vmem:[%s7735_s0 + $0x178] sm:$0xff] }
 0xb2f   :  { %5568 = vrcp.f32 %v2696_v13  ;;  %v5567_v60 = vpop.eup %5566  ;;  %v2987_v13 = vld [vmem:[%s7734_s1 + $0xa0] sm:$0xff] }
 0xb30   :  { %5570 = vrcp.f32 %v2697_v53  ;;  %v2698_v16 = vadd.f32 1.0, %v5567_v60  ;;  %v7247_v53 = vpack.c.bf16 %v2987_v13, %v2983_v22  ;;  %v2989_v60 = vld [vmem:[%s7734_s1 + $0xb0] sm:$0xff]  ;;  %v3026_v22 = vld [vmem:[%s7734_s1 + $0x1d8] sm:$0xff] }
 0xb31   :  { %v3030_v13 = vld [vmem:[%s7734_s1 + $0x1f8] sm:$0xff] }
 0xb32   :  { %5572 = vrcp.f32 %v2698_v16  ;;  %v2994_v16 = vld [vmem:[%s7734_s1 + $0xd8] sm:$0xff] }
 0xb39   :  { %v5569_v11 = vpop.eup %5568 }
 0xb3a   :  { %v2708_v12 = vmul.f32 %v5569_v11, %v5565_v59  ;;  %v5571_v35 = vpop.eup %5570  ;;  %v2985_v59 = vld [vmem:[%s7734_s1 + $0x90] sm:$0xff] }
 0xb3b   :  { %v2707_v58 = vmul.f32 %v5571_v35, %v7020_v63  ;;  %v2968_v63 = vld [vmem:[%s7734_s1 + $0x8] sm:$0xff]  ;;  %v7256_v11 = vpack.c.bf16 %v2989_v60, %v2985_v59  ;;  %v7350_v59 = vpack.c.bf16 %v3021_v42, %v3017_v0  ;;  %v7353_v60 = vpack.c.bf16 %v3030_v13, %v3026_v22 }
 0xb3c   :  { %v5573_v14 = vpop.eup %5572  ;;  %v7162_v2 = vpack.c.bf16 %v2972_v4, %v2968_v63  ;;  %v2996_v35 = vld [vmem:[%s7734_s1 + $0xe8] sm:$0xff]  ;;  %v2997_v63 = vld [vmem:[%s7734_s1 + $0xf0] sm:$0xff] }
 0xb3d   :  { %v7144_v57 = vadd.f32 %v2708_v12, %v2707_v58  ;;  %v2992_v12 = vld [vmem:[%s7734_s1 + $0xc8] sm:$0xff] }
 0xb3e   :  { %5112 = vmatprep.subr.bf16.mxu0 %v7162_v2  ;;  %v7270_v58 = vpack.c.bf16 %v2996_v35, %v2992_v12  ;;  %v3025_v12 = vld [vmem:[%s7734_s1 + $0x1d0] sm:$0xff] }
 0xb3f   :  { %5574 = vtanh.f32 %v7144_v57  ;;  %v3029_v35 = vld [vmem:[%s7734_s1 + $0x1f0] sm:$0xff] }
 0xb49   :  { %v5575_v21 = vpop.eup %5574 }
 0xb4a   :  { %v7147_v30 = vmul.f32 %v5575_v21, %v5573_v14  ;;  %v2998_v14 = vld [vmem:[%s7734_s1 + $0xf8] sm:$0xff]  ;;  %v2993_v21 = vld [vmem:[%s7734_s1 + $0xd0] sm:$0xff] }
 0xb4b   :  { %v7281_v4 = vpack.c.bf16 %v2998_v14, %v2994_v16  ;;  %v7283_v54 = vpack.c.bf16 %v2997_v63, %v2993_v21  ;;  %v7364_v16 = vpack.c.bf16 %v3029_v35, %v3025_v12  ;;  %v4219_v14 = vld [vmem:[%s7735_s0 + $0x160] sm:$0xff]  ;;  %v4220_v21 = vld [vmem:[%s7735_s0 + $0x168] sm:$0xff] }
 0xb4c   :  { %2851 = vmatmul.mubr.f32.vlgmr.msra.gmra.mrb[20].mxu0 %v7147_v30  ;;  %2922 = vmatmul.mubr.f32.vlgmr.msra.gmra.mrb[24].mxu1 %v7147_v30 }
 0xb4d   :  { %3095 = vmatprep.mubr.f32.mxu0 %v5656_v3  ;;  %3166 = vmatprep.mubr.f32.mxu1 %v5656_v3 }
 0xb4e   :  { %5114 = vmatpush1.bf16.msra.mxu0 %v7175_v62  ;;  %5146 = vmatpush1.bf16.msra.mxu1 %v7184_v26 }
 0xb4f   :  { %5116 = vmatprep.subr.bf16.mxu0 %v7198_v10  ;;  %5148 = vmatprep.subr.bf16.mxu1 %v7209_v44 }
 0xb52   :  { %5118 = vmatpush1.bf16.msra.mxu0 %v7211_v1  ;;  %5150 = vmatpush1.bf16.msra.mxu1 %v7220_v31 }
 0xb53   :  { %5120 = vmatprep.subr.bf16.mxu0 %v7234_v7  ;;  %5152 = vmatprep.subr.bf16.mxu1 %v7245_v20 }
 0xb56   :  { %5122 = vmatpush1.bf16.msra.mxu0 %v7247_v53  ;;  %5154 = vmatpush1.bf16.msra.mxu1 %v7256_v11 }
 0xb57   :  { %5124 = vmatprep.subr.bf16.mxu0 %v7270_v58  ;;  %5156 = vmatprep.subr.bf16.mxu1 %v7281_v4 }
 0xb5a   :  { %5126 = vmatpush1.bf16.msra.mxu0 %v7056_v48  ;;  %5158 = vmatpush1.bf16.msra.mxu1 %v7283_v54 }
 0xb5b   :  { %5128 = vmatprep.subr.bf16.mxu0 %v7065_v24  ;;  %5160 = vmatprep.subr.bf16.mxu1 %v7296_v8 }
 0xb5e   :  { %5130 = vmatpush1.bf16.msra.mxu0 %v7073_v51  ;;  %5162 = vmatpush1.bf16.msra.mxu1 %v7304_v34 }
 0xb5f   :  { %5132 = vmatprep.subr.bf16.mxu0 %v7083_v15  ;;  %5164 = vmatprep.subr.bf16.mxu1 %v7316_v29 }
 0xb62   :  { %5134 = vmatpush1.bf16.msra.mxu0 %v7091_v38  ;;  %5166 = vmatpush1.bf16.msra.mxu1 %v7324_v28 }
 0xb63   :  { %5136 = vmatprep.subr.bf16.mxu0 %v7103_v23  ;;  %5168 = vmatprep.subr.bf16.mxu1 %v7336_v45 }
 0xb66   :  { %5138 = vmatpush1.bf16.msra.mxu0 %v7115_v50  ;;  %5170 = vmatpush1.bf16.msra.mxu1 %v7350_v59 }
 0xb67   :  { %5140 = vmatprep.subr.bf16.mxu0 %v7118_v61  ;;  %5172 = vmatprep.subr.bf16.mxu1 %v7353_v60 }
 0xb6a   :  { %5142 = vmatpush1.bf16.msra.mxu0 %v7127_v39  ;;  %5174 = vmatpush1.bf16.msra.mxu1 %v7364_v16 }
 0xb6b   :  { %5176 = vmatprep.subr.bf16.mxu0 %v7162_v2  ;;  %5208 = vmatprep.subr.bf16.mxu1 %v7173_v41 }
 0xc1f   :  { %v2852_v63 = vpop.f32.mrb[20].mxu0  ;;  %v2923_v17 = vpop.f32.mrb[24].mxu1 }
 0xc20   :  { %v2928_v6 = vadd.f32 %v4219_v14, %v2852_v63  ;;  %v2854_v40 = vpop.f32.mrb[21].mxu0  ;;  %v2925_v52 = vpop.f32.mrb[25].mxu1  ;;  %v2930_v49 = vadd.f32 %v4221_v27, %v2923_v17 }
 0xc21   :  { %v2929_v36 = vadd.f32 %v4220_v21, %v2854_v40  ;;  %v2931_v0 = vadd.f32 %v4222_v32, %v2925_v52 }
 0xc22   :  { %v4223_v55 = vmul.f32 -1.442695, %v2928_v6  ;;  %v4225_v42 = vmul.f32 -1.442695, %v2930_v49  ;;  %v4227_v49 = vld [vmem:[%s7735_s0 + $0x188] sm:$0xff] }
 0xc23   :  { %v4224_v37 = vmul.f32 -1.442695, %v2929_v36 }
 0xc24   :  { %5576 = vpow2.f32 %v4223_v55 }
 0xc25   :  { %5578 = vpow2.f32 %v4224_v37 }
 0xc26   :  { %5580 = vtanh.f32 %v2931_v0 }
 0xc27   :  { %5582 = vpow2.f32 %v4225_v42 }
 0xc2e   :  { %v5577_v22 = vpop.eup %5576 }
 0xc2f   :  { %v2941_v13 = vadd.f32 1.0, %v5577_v22  ;;  %v5579_v12 = vpop.eup %5578 }
 0xc30   :  { %v2942_v35 = vadd.f32 1.0, %v5579_v12  ;;  %v5581_v14 = vpop.eup %5580 }
 0xc31   :  { %5584 = vrcp.f32 %v2941_v13  ;;  %v5583_v21 = vpop.eup %5582 }
 0xc32   :  { %5586 = vrcp.f32 %v2942_v35  ;;  %v2943_v17 = vadd.f32 1.0, %v5583_v21  ;;  %v4228_v21 = vld [vmem:[%s7735_s0 + $0x190] sm:$0xff] }
 0xc34   :  { %5588 = vrcp.f32 %v2943_v17 }
 0xc3b   :  { %v5585_v63 = vpop.eup %5584 }
 0xc3c   :  { %v2953_v6 = vmul.f32 %v5585_v63, %v5581_v14  ;;  %v5587_v40 = vpop.eup %5586 }
 0xc3d   :  { %v2952_v36 = vmul.f32 %v5587_v40, %v7144_v57  ;;  %v4226_v57 = vld [vmem:[%s7735_s0 + $0x180] sm:$0xff] }
 0xc3e   :  { %v5589_v52 = vpop.eup %5588 }
 0xc3f   :  { %v7384_v55 = vadd.f32 %v2953_v6, %v2952_v36  ;;  %v4229_v6 = vld [vmem:[%s7735_s0 + $0x198] sm:$0xff] }
 0xc41   :  { %5590 = vtanh.f32 %v7384_v55 }
 0xc4b   :  { %v5591_v37 = vpop.eup %5590 }
 0xc4c   :  { %v7387_v27 = vmul.f32 %v5591_v37, %v5589_v52 }
 0xc4e   :  { %3096 = vmatmul.mubr.f32.vlgmr.msra.gmra.mrb[22].mxu0 %v7387_v27  ;;  %3167 = vmatmul.mubr.f32.vlgmr.msra.gmra.mrb[26].mxu1 %v7387_v27 }
 0xc4f   :  { %5178 = vmatpush1.bf16.msra.mxu0 %v7175_v62  ;;  %5210 = vmatpush1.bf16.msra.mxu1 %v7184_v26 }
 0xc50   :  { %5180 = vmatprep.subr.bf16.mxu0 %v7198_v10  ;;  %5212 = vmatprep.subr.bf16.mxu1 %v7209_v44 }
 0xc51   :  { %3340 = vmatprep.mubr.f32.mxu0 %v5656_v3  ;;  %3411 = vmatprep.mubr.f32.mxu1 %v5656_v3 }
 0xc53   :  { %5182 = vmatpush1.bf16.msra.mxu0 %v7211_v1  ;;  %5214 = vmatpush1.bf16.msra.mxu1 %v7220_v31 }
 0xc54   :  { %5184 = vmatprep.subr.bf16.mxu0 %v7234_v7  ;;  %5216 = vmatprep.subr.bf16.mxu1 %v7245_v20 }
 0xc57   :  { %5186 = vmatpush1.bf16.msra.mxu0 %v7247_v53  ;;  %5218 = vmatpush1.bf16.msra.mxu1 %v7256_v11 }
 0xc58   :  { %5188 = vmatprep.subr.bf16.mxu0 %v7270_v58  ;;  %5220 = vmatprep.subr.bf16.mxu1 %v7281_v4 }
 0xc5b   :  { %5190 = vmatpush1.bf16.msra.mxu0 %v7056_v48  ;;  %5222 = vmatpush1.bf16.msra.mxu1 %v7283_v54 }
 0xc5c   :  { %5192 = vmatprep.subr.bf16.mxu0 %v7065_v24  ;;  %5224 = vmatprep.subr.bf16.mxu1 %v7296_v8 }
 0xc5f   :  { %5194 = vmatpush1.bf16.msra.mxu0 %v7073_v51  ;;  %5226 = vmatpush1.bf16.msra.mxu1 %v7304_v34 }
 0xc60   :  { %5196 = vmatprep.subr.bf16.mxu0 %v7083_v15  ;;  %5228 = vmatprep.subr.bf16.mxu1 %v7316_v29 }
 0xc63   :  { %5198 = vmatpush1.bf16.msra.mxu0 %v7091_v38  ;;  %5230 = vmatpush1.bf16.msra.mxu1 %v7324_v28 }
 0xc64   :  { %5200 = vmatprep.subr.bf16.mxu0 %v7103_v23  ;;  %5232 = vmatprep.subr.bf16.mxu1 %v7336_v45 }
 0xc67   :  { %5202 = vmatpush1.bf16.msra.mxu0 %v7115_v50  ;;  %5234 = vmatpush1.bf16.msra.mxu1 %v7350_v59 }
 0xc68   :  { %5204 = vmatprep.subr.bf16.mxu0 %v7118_v61  ;;  %5236 = vmatprep.subr.bf16.mxu1 %v7353_v60 }
 0xc6b   :  { %5206 = vmatpush1.bf16.msra.mxu0 %v7127_v39  ;;  %5238 = vmatpush1.bf16.msra.mxu1 %v7364_v16 }
 0xc6c   :  { %5240 = vmatprep.subr.bf16.mxu0 %v7162_v2  ;;  %5272 = vmatprep.subr.bf16.mxu1 %v7173_v41 }
 0xd21   :  { %v3097_v32 = vpop.f32.mrb[22].mxu0  ;;  %v3168_v0 = vpop.f32.mrb[26].mxu1 }
 0xd22   :  { %v3173_v42 = vadd.f32 %v4226_v57, %v3097_v32  ;;  %v3099_v22 = vpop.f32.mrb[23].mxu0  ;;  %v3170_v13 = vpop.f32.mrb[27].mxu1  ;;  %v3175_v63 = vadd.f32 %v4228_v21, %v3168_v0 }
 0xd23   :  { %v3174_v12 = vadd.f32 %v4227_v49, %v3099_v22  ;;  %v3176_v40 = vadd.f32 %v4229_v6, %v3170_v13  ;;  %v4236_v6 = vld [vmem:[%s7735_s0 + $0x1b8] sm:$0xff] }
 0xd24   :  { %v4230_v35 = vmul.f32 -1.442695, %v3173_v42  ;;  %v4232_v17 = vmul.f32 -1.442695, %v3175_v63 }
 0xd25   :  { %v4231_v14 = vmul.f32 -1.442695, %v3174_v12 }
 0xd26   :  { %5592 = vpow2.f32 %v4230_v35 }
 0xd27   :  { %5594 = vpow2.f32 %v4231_v14 }
 0xd28   :  { %5596 = vtanh.f32 %v3176_v40 }
 0xd29   :  { %5598 = vpow2.f32 %v4232_v17 }
 0xd30   :  { %v5593_v36 = vpop.eup %5592 }
 0xd31   :  { %v3186_v52 = vadd.f32 1.0, %v5593_v36  ;;  %v5595_v37 = vpop.eup %5594 }
 0xd32   :  { %v3187_v57 = vadd.f32 1.0, %v5595_v37  ;;  %v5597_v49 = vpop.eup %5596 }
 0xd33   :  { %5600 = vrcp.f32 %v3186_v52  ;;  %v5599_v32 = vpop.eup %5598 }
 0xd34   :  { %5602 = vrcp.f32 %v3187_v57  ;;  %v3188_v0 = vadd.f32 1.0, %v5599_v32 }
 0xd36   :  { %5604 = vrcp.f32 %v3188_v0 }
 0xd3d   :  { %v5601_v42 = vpop.eup %5600 }
 0xd3e   :  { %v3198_v22 = vmul.f32 %v5601_v42, %v5597_v49  ;;  %v5603_v12 = vpop.eup %5602 }
 0xd3f   :  { %v3197_v35 = vmul.f32 %v5603_v12, %v7384_v55 }
 0xd40   :  { %v5605_v13 = vpop.eup %5604 }
 0xd41   :  { %v7438_v14 = vadd.f32 %v3198_v22, %v3197_v35 }
 0xd43   :  { %5606 = vtanh.f32 %v7438_v14 }
 0xd4d   :  { %v5607_v21 = vpop.eup %5606 }
 0xd4e   :  { %v7441_v63 = vmul.f32 %v5607_v21, %v5605_v13 }
 0xd50   :  { %3341 = vmatmul.mubr.f32.vlgmr.msra.gmra.mrb[24].mxu0 %v7441_v63  ;;  %3412 = vmatmul.mubr.f32.vlgmr.msra.gmra.mrb[28].mxu1 %v7441_v63 }
 0xd51   :  { %5242 = vmatpush1.bf16.msra.mxu0 %v7175_v62  ;;  %5274 = vmatpush1.bf16.msra.mxu1 %v7184_v26 }
 0xd52   :  { %5244 = vmatprep.subr.bf16.mxu0 %v7198_v10  ;;  %5276 = vmatprep.subr.bf16.mxu1 %v7209_v44 }
 0xd53   :  { %3585 = vmatprep.mubr.f32.mxu0 %v5656_v3  ;;  %3656 = vmatprep.mubr.f32.mxu1 %v5656_v3 }
 0xd55   :  { %5246 = vmatpush1.bf16.msra.mxu0 %v7211_v1  ;;  %5278 = vmatpush1.bf16.msra.mxu1 %v7220_v31 }
 0xd56   :  { %5248 = vmatprep.subr.bf16.mxu0 %v7234_v7  ;;  %5280 = vmatprep.subr.bf16.mxu1 %v7245_v20 }
 0xd59   :  { %5250 = vmatpush1.bf16.msra.mxu0 %v7247_v53  ;;  %5282 = vmatpush1.bf16.msra.mxu1 %v7256_v11 }
 0xd5a   :  { %5252 = vmatprep.subr.bf16.mxu0 %v7270_v58  ;;  %5284 = vmatprep.subr.bf16.mxu1 %v7281_v4 }
 0xd5d   :  { %5254 = vmatpush1.bf16.msra.mxu0 %v7056_v48  ;;  %5286 = vmatpush1.bf16.msra.mxu1 %v7283_v54  ;;  %v4233_v48 = vld [vmem:[%s7735_s0 + $0x1a0] sm:$0xff] }
 0xd5e   :  { %5256 = vmatprep.subr.bf16.mxu0 %v7065_v24  ;;  %5288 = vmatprep.subr.bf16.mxu1 %v7296_v8  ;;  %v4234_v24 = vld [vmem:[%s7735_s0 + $0x1a8] sm:$0xff] }
 0xd61   :  { %5258 = vmatpush1.bf16.msra.mxu0 %v7073_v51  ;;  %5290 = vmatpush1.bf16.msra.mxu1 %v7304_v34 }
 0xd62   :  { %5260 = vmatprep.subr.bf16.mxu0 %v7083_v15  ;;  %5292 = vmatprep.subr.bf16.mxu1 %v7316_v29 }
 0xd65   :  { %5262 = vmatpush1.bf16.msra.mxu0 %v7091_v38  ;;  %5294 = vmatpush1.bf16.msra.mxu1 %v7324_v28 }
 0xd66   :  { %5264 = vmatprep.subr.bf16.mxu0 %v7103_v23  ;;  %5296 = vmatprep.subr.bf16.mxu1 %v7336_v45 }
 0xd69   :  { %5266 = vmatpush1.bf16.msra.mxu0 %v7115_v50  ;;  %5298 = vmatpush1.bf16.msra.mxu1 %v7350_v59 }
 0xd6a   :  { %5268 = vmatprep.subr.bf16.mxu0 %v7118_v61  ;;  %5300 = vmatprep.subr.bf16.mxu1 %v7353_v60 }
 0xd6d   :  { %5270 = vmatpush1.bf16.msra.mxu0 %v7127_v39  ;;  %5302 = vmatpush1.bf16.msra.mxu1 %v7364_v16 }
 0xd6e   :  { %5304 = vmatprep.subr.bf16.mxu0 %v7162_v2  ;;  %5336 = vmatprep.subr.bf16.mxu1 %v7173_v41  ;;  %v4235_v2 = vld [vmem:[%s7735_s0 + $0x1b0] sm:$0xff] }
 0xe23   :  { %v3342_v51 = vpop.f32.mrb[24].mxu0  ;;  %v3413_v15 = vpop.f32.mrb[28].mxu1 }
 0xe24   :  { %v3418_v38 = vadd.f32 %v4233_v48, %v3342_v51  ;;  %v3344_v23 = vpop.f32.mrb[25].mxu0  ;;  %v3415_v50 = vpop.f32.mrb[29].mxu1  ;;  %v3420_v41 = vadd.f32 %v4235_v2, %v3413_v15  ;;  %v3758_v15 = vld [vmem:[%s7734_s1 + $0x1c0] sm:$0xff]  ;;  %v4241_v2 = vld [vmem:[%s7735_s0 + $0x1c8] sm:$0xff] }
 0xe25   :  { %v3419_v61 = vadd.f32 %v4234_v24, %v3344_v23  ;;  %v3421_v40 = vadd.f32 %v4236_v6, %v3415_v50  ;;  %v3957_v23 = vld [vmem:[%s7736_s2] sm:$0xff]  ;;  %v3958_v50 = vld [vmem:[%s7736_s2 + $0x8] sm:$0xff] }
 0xe26   :  { %v4237_v39 = vmul.f32 -1.442695, %v3418_v38  ;;  %v4239_v17 = vmul.f32 -1.442695, %v3420_v41  ;;  %v3762_v38 = vld [vmem:[%s7734_s1 + $0x1e0] sm:$0xff] }
 0xe27   :  { %v4238_v55 = vmul.f32 -1.442695, %v3419_v61  ;;  %v5333_v61 = vpack.c.bf16 %v3762_v38, %v3758_v15  ;;  %v3969_v15 = vld [vmem:[%s7736_s2 + $0x60] sm:$0xff]  ;;  %v3970_v38 = vld [vmem:[%s7736_s2 + $0x68] sm:$0xff] }
 0xe28   :  { %5608 = vpow2.f32 %v4237_v39  ;;  %v5367_v39 = vpack.c.bf16 %v3958_v50, %v3957_v23  ;;  %v5391_v23 = vpack.c.bf16 %v3970_v38, %v3969_v15  ;;  %v3971_v50 = vld [vmem:[%s7736_s2 + $0x70] sm:$0xff] }
 0xe29   :  { %5610 = vpow2.f32 %v4238_v55  ;;  %v4240_v55 = vld [vmem:[%s7735_s0 + $0x1c0] sm:$0xff] }
 0xe2a   :  { %5612 = vtanh.f32 %v3421_v40 }
 0xe2b   :  { %5614 = vpow2.f32 %v4239_v17 }
 0xe32   :  { %v5609_v36 = vpop.eup %5608 }
 0xe33   :  { %v3431_v52 = vadd.f32 1.0, %v5609_v36  ;;  %v5611_v37 = vpop.eup %5610 }
 0xe34   :  { %v3432_v57 = vadd.f32 1.0, %v5611_v37  ;;  %v5613_v49 = vpop.eup %5612 }
 0xe35   :  { %5616 = vrcp.f32 %v3431_v52  ;;  %v5615_v32 = vpop.eup %5614 }
 0xe36   :  { %5618 = vrcp.f32 %v3432_v57  ;;  %v3433_v0 = vadd.f32 1.0, %v5615_v32 }
 0xe38   :  { %5620 = vrcp.f32 %v3433_v0 }
 0xe3f   :  { %v5617_v42 = vpop.eup %5616 }
 0xe40   :  { %v3443_v22 = vmul.f32 %v5617_v42, %v5613_v49  ;;  %v5619_v12 = vpop.eup %5618  ;;  %v4242_v49 = vld [vmem:[%s7735_s0 + $0x1d0] sm:$0xff]  ;;  %v4243_v42 = vld [vmem:[%s7735_s0 + $0x1d8] sm:$0xff] }
 0xe41   :  { %v3442_v35 = vmul.f32 %v5619_v12, %v7438_v14 }
 0xe42   :  { %v5621_v21 = vpop.eup %5620 }
 0xe43   :  { %v7492_v13 = vadd.f32 %v3443_v22, %v3442_v35 }
 0xe45   :  { %5622 = vtanh.f32 %v7492_v13 }
 0xe4f   :  { %v5623_v48 = vpop.eup %5622 }
 0xe50   :  { %v7495_v24 = vmul.f32 %v5623_v48, %v5621_v21 }
 0xe52   :  { %3586 = vmatmul.mubr.f32.vlgmr.msra.gmra.mrb[26].mxu0 %v7495_v24  ;;  %3657 = vmatmul.mubr.f32.vlgmr.msra.gmra.mrb[30].mxu1 %v7495_v24 }
 0xe53   :  { %5306 = vmatpush1.bf16.msra.mxu0 %v7175_v62  ;;  %5338 = vmatpush1.bf16.msra.mxu1 %v7184_v26  ;;  %v3730_v62 = vld [vmem:[%s7734_s1 + $0xe0] sm:$0xff] }
 0xe54   :  { %5308 = vmatprep.subr.bf16.mxu0 %v7198_v10  ;;  %5340 = vmatprep.subr.bf16.mxu1 %v7209_v44  ;;  %v3735_v10 = vld [vmem:[%s7734_s1 + $0x108] sm:$0xff] }
 0xe55   :  { %3830 = vmatprep.mubr.f32.mxu0 %v5656_v3  ;;  %3901 = vmatprep.mubr.f32.mxu1 %v5656_v3  ;;  %v3726_v3 = vld [vmem:[%s7734_s1 + $0xc0] sm:$0xff]  ;;  %v3739_v44 = vld [vmem:[%s7734_s1 + $0x128] sm:$0xff] }
 0xe56   :  { %v5317_v26 = vpack.c.bf16 %v3730_v62, %v3726_v3 }
 0xe57   :  { %5310 = vmatpush1.bf16.msra.mxu0 %v7211_v1  ;;  %5342 = vmatpush1.bf16.msra.mxu1 %v7220_v31  ;;  %v5319_v1 = vpack.c.bf16 %v3739_v44, %v3735_v10  ;;  %v3734_v31 = vld [vmem:[%s7734_s1 + $0x100] sm:$0xff] }
 0xe58   :  { %5312 = vmatprep.subr.bf16.mxu0 %v7234_v7  ;;  %5344 = vmatprep.subr.bf16.mxu1 %v7245_v20  ;;  %v3738_v7 = vld [vmem:[%s7734_s1 + $0x120] sm:$0xff] }
 0xe59   :  { %v5321_v20 = vpack.c.bf16 %v3738_v7, %v3734_v31 }
 0xe5b   :  { %5314 = vmatpush1.bf16.msra.mxu0 %v7247_v53  ;;  %5346 = vmatpush1.bf16.msra.mxu1 %v7256_v11  ;;  %v3743_v53 = vld [vmem:[%s7734_s1 + $0x148] sm:$0xff] }
 0xe5c   :  { %5316 = vmatprep.subr.bf16.mxu0 %v7270_v58  ;;  %5348 = vmatprep.subr.bf16.mxu1 %v7281_v4  ;;  %v3747_v11 = vld [vmem:[%s7734_s1 + $0x168] sm:$0xff]  ;;  %v3742_v4 = vld [vmem:[%s7734_s1 + $0x140] sm:$0xff] }
 0xe5d   :  { %v5323_v58 = vpack.c.bf16 %v3747_v11, %v3743_v53  ;;  %v3960_v53 = vld [vmem:[%s7736_s2 + $0x18] sm:$0xff] }
 0xe5f   :  { %5350 = vmatpush1.bf16.msra.mxu1 %v7283_v54  ;;  %5318 = vmatpush1.bf16.msra.mxu0 %v5317_v26  ;;  %v3746_v54 = vld [vmem:[%s7734_s1 + $0x160] sm:$0xff] }
 0xe60   :  { %5352 = vmatprep.subr.bf16.mxu1 %v7296_v8  ;;  %5320 = vmatprep.subr.bf16.mxu0 %v5319_v1  ;;  %v5325_v8 = vpack.c.bf16 %v3746_v54, %v3742_v4 }
 0xe63   :  { %5354 = vmatpush1.bf16.msra.mxu1 %v7304_v34  ;;  %5322 = vmatpush1.bf16.msra.mxu0 %v5321_v20  ;;  %v3751_v34 = vld [vmem:[%s7734_s1 + $0x188] sm:$0xff]  ;;  %v3959_v20 = vld [vmem:[%s7736_s2 + $0x10] sm:$0xff] }
 0xe64   :  { %5356 = vmatprep.subr.bf16.mxu1 %v7316_v29  ;;  %5324 = vmatprep.subr.bf16.mxu0 %v5323_v58  ;;  %v3755_v29 = vld [vmem:[%s7734_s1 + $0x1a8] sm:$0xff]  ;;  %v5371_v54 = vpack.c.bf16 %v3960_v53, %v3959_v20 }
 0xe67   :  { %5358 = vmatpush1.bf16.msra.mxu1 %v7324_v28  ;;  %v3750_v28 = vld [vmem:[%s7734_s1 + $0x180] sm:$0xff]  ;;  %5326 = vmatpush1.bf16.msra.mxu0 %v5325_v8  ;;  %v3962_v8 = vld [vmem:[%s7736_s2 + $0x28] sm:$0xff] }
 0xe68   :  { %5360 = vmatprep.subr.bf16.mxu1 %v7336_v45  ;;  %v5327_v45 = vpack.c.bf16 %v3755_v29, %v3751_v34  ;;  %v3963_v29 = vld [vmem:[%s7736_s2 + $0x30] sm:$0xff] }
 0xe6a   :  { %5328 = vmatprep.subr.bf16.mxu0 %v5327_v45 }
 0xe6b   :  { %5362 = vmatpush1.bf16.msra.mxu1 %v7350_v59  ;;  %v3754_v59 = vld [vmem:[%s7734_s1 + $0x1a0] sm:$0xff] }
 0xe6c   :  { %5364 = vmatprep.subr.bf16.mxu1 %v7353_v60  ;;  %v3759_v60 = vld [vmem:[%s7734_s1 + $0x1c8] sm:$0xff]  ;;  %v5329_v14 = vpack.c.bf16 %v3754_v59, %v3750_v28  ;;  %v3964_v28 = vld [vmem:[%s7736_s2 + $0x38] sm:$0xff]  ;;  %v3965_v59 = vld [vmem:[%s7736_s2 + $0x40] sm:$0xff] }
 0xe6d   :  { %v5379_v45 = vpack.c.bf16 %v3964_v28, %v3963_v29 }
 0xe6e   :  { %5330 = vmatpush1.bf16.msra.mxu0 %v5329_v14  ;;  %v3968_v14 = vld [vmem:[%s7736_s2 + $0x58] sm:$0xff] }
 0xe6f   :  { %5366 = vmatpush1.bf16.msra.mxu1 %v7364_v16  ;;  %v3763_v16 = vld [vmem:[%s7734_s1 + $0x1e8] sm:$0xff] }
 0xe70   :  { %v5331_v51 = vpack.c.bf16 %v3763_v16, %v3759_v60  ;;  %v3967_v16 = vld [vmem:[%s7736_s2 + $0x50] sm:$0xff] }
 0xe72   :  { %5332 = vmatprep.subr.bf16.mxu0 %v5331_v51  ;;  %v5387_v51 = vpack.c.bf16 %v3968_v14, %v3967_v16 }
 0xe73   :  { %5334 = vmatpush1.bf16.msra.mxu0 %v5333_v61  ;;  %v3972_v61 = vld [vmem:[%s7736_s2 + $0x78] sm:$0xff] }
 0xe74   :  { %5368 = vmatprep.subr.bf16.mxu0 %v5367_v39 }
 0xf25   :  { %v3587_v41 = vpop.f32.mrb[26].mxu0  ;;  %v3658_v6 = vpop.f32.mrb[30].mxu1 }
 0xf26   :  { %v3663_v40 = vadd.f32 %v4240_v55, %v3587_v41  ;;  %v3589_v17 = vpop.f32.mrb[27].mxu0  ;;  %v3660_v36 = vpop.f32.mrb[31].mxu1  ;;  %v3665_v32 = vadd.f32 %v4242_v49, %v3658_v6 }
 0xf27   :  { %v3664_v52 = vadd.f32 %v4241_v2, %v3589_v17  ;;  %v3666_v22 = vadd.f32 %v4243_v42, %v3660_v36  ;;  %v4254_v42 = vld [vmem:[%s7737_s3] ss:$0 sm:$0xff] }
 0xf28   :  { %v4244_v37 = vmul.f32 -1.442695, %v3663_v40  ;;  %v4246_v12 = vmul.f32 -1.442695, %v3665_v32 }
 0xf29   :  { %v4245_v57 = vmul.f32 -1.442695, %v3664_v52 }
 0xf2a   :  { %5624 = vpow2.f32 %v4244_v37 }
 0xf2b   :  { %5626 = vpow2.f32 %v4245_v57 }
 0xf2c   :  { %5628 = vtanh.f32 %v3666_v22 }
 0xf2d   :  { %5630 = vpow2.f32 %v4246_v12 }
 0xf34   :  { %v5625_v0 = vpop.eup %5624 }
 0xf35   :  { %v3676_v35 = vadd.f32 1.0, %v5625_v0  ;;  %v5627_v21 = vpop.eup %5626 }
 0xf36   :  { %v3677_v48 = vadd.f32 1.0, %v5627_v21  ;;  %v5629_v3 = vpop.eup %5628 }
 0xf37   :  { %5632 = vrcp.f32 %v3676_v35  ;;  %v5631_v62 = vpop.eup %5630 }
 0xf38   :  { %5634 = vrcp.f32 %v3677_v48  ;;  %v3678_v1 = vadd.f32 1.0, %v5631_v62 }
 0xf3a   :  { %5636 = vrcp.f32 %v3678_v1 }
 0xf41   :  { %v5633_v26 = vpop.eup %5632 }
 0xf42   :  { %v3688_v10 = vmul.f32 %v5633_v26, %v5629_v3  ;;  %v5635_v44 = vpop.eup %5634 }
 0xf43   :  { %v3687_v31 = vmul.f32 %v5635_v44, %v7492_v13  ;;  %v3961_v13 = vld [vmem:[%s7736_s2 + $0x20] sm:$0xff] }
 0xf44   :  { %v5637_v11 = vpop.eup %5636  ;;  %v5375_v34 = vpack.c.bf16 %v3962_v8, %v3961_v13 }
 0xf45   :  { %v7595_v7 = vadd.f32 %v3688_v10, %v3687_v31 }
 0xf47   :  { %5638 = vtanh.f32 %v7595_v7 }
 0xf51   :  { %v5639_v58 = vpop.eup %5638 }
 0xf52   :  { %v3691_v4 = vmul.f32 %v5639_v58, %v5637_v11 }
 0xf54   :  { %3831 = vmatmul.mubr.f32.vlgmr.msra.gmra.mrb[28].mxu0 %v3691_v4  ;;  %3902 = vmatmul.mubr.f32.vlgmr.msra.gmra.mrb[32].mxu1 %v3691_v4 }
 0xf55   :  { %5370 = vmatpush3.bf16.msra.mxu0 %v5367_v39  ;;  %4319 = vmatprep.mubr.f32.mxu0 %v6025_v46  ;;  %v3966_v46 = vld [vmem:[%s7736_s2 + $0x48] sm:$0xff]  ;;  %v5395_v39 = vpack.c.bf16 %v3972_v61, %v3971_v50 }
 0xf56   :  { %5372 = vmatprep.subr.bf16.mxu0 %v5371_v54  ;;  %v5383_v60 = vpack.c.bf16 %v3966_v46, %v3965_v59 }
 0xf59   :  { %5374 = vmatpush3.bf16.msra.mxu0 %v5371_v54 }
 0xf5a   :  { %5376 = vmatprep.subr.bf16.mxu0 %v5375_v34 }
 0xf5d   :  { %5378 = vmatpush3.bf16.msra.mxu0 %v5375_v34 }
 0xf5e   :  { %5380 = vmatprep.subr.bf16.mxu0 %v5379_v45 }
 0xf61   :  { %5382 = vmatpush3.bf16.msra.mxu0 %v5379_v45 }
 0xf62   :  { %5384 = vmatprep.subr.bf16.mxu0 %v5383_v60 }
 0xf65   :  { %5386 = vmatpush3.bf16.msra.mxu0 %v5383_v60 }
 0xf66   :  { %5388 = vmatprep.subr.bf16.mxu0 %v5387_v51 }
 0xf69   :  { %5390 = vmatpush3.bf16.msra.mxu0 %v5387_v51 }
 0xf6a   :  { %5392 = vmatprep.subr.bf16.mxu0 %v5391_v23 }
 0xf6d   :  { %5394 = vmatpush3.bf16.msra.mxu0 %v5391_v23 }
 0xf6e   :  { %5396 = vmatprep.subr.bf16.mxu0 %v5395_v39 }
 0xf71   :  { %5398 = vmatpush3.bf16.msra.mxu0 %v5395_v39 }
 0xf74   :  { %4320 = vmatmul.mubr.f32.vlgmr.msra.gmra.mrb[30].mxu0 %v6079_v18  ;;  %v4247_v18 = vld [vmem:[%s7735_s0 + $0x1e0] sm:$0xff] }
 0xf75   :  { %4322 = vmatprep.mubr.f32.mxu0 %v6203_v5  ;;  %v4248_v5 = vld [vmem:[%s7735_s0 + $0x1e8] sm:$0xff] }
 0xf78   :  { %4323 = vmatmul.mubr.f32.gmra.mrb[32].mxu0 %v6443_v33 }
 0xf79   :  { %4325 = vmatprep.mubr.f32.mxu0 %v6497_v47 }
 0xf7c   :  { %4326 = vmatmul.mubr.f32.gmra.mrb[34].mxu0 %v6551_v43 }
 0xf7d   :  { %4328 = vmatprep.mubr.f32.mxu0 %v6675_v56 }
 0xf80   :  { %4329 = vmatmul.mubr.f32.gmra.mrb[36].mxu0 %v6915_v9 }
 0xf81   :  { %4331 = vmatprep.mubr.f32.mxu0 %v6969_v25 }
 0xf84   :  { %4332 = vmatmul.mubr.f32.gmra.mrb[38].mxu0 %v7023_v19 }
 0xf85   :  { %4334 = vmatprep.mubr.f32.mxu0 %v7147_v30 }
 0xf88   :  { %4335 = vmatmul.mubr.f32.gmra.mrb[40].mxu0 %v7387_v27  ;;  %v4249_v27 = vld [vmem:[%s7735_s0 + $0x1f0] sm:$0xff] }
 0xf89   :  { %4337 = vmatprep.mubr.f32.mxu0 %v7441_v63 }
 0xf8c   :  { %4338 = vmatmul.mubr.f32.gmra.mrb[42].mxu0 %v7495_v24  ;;  %v4250_v24 = vld [vmem:[%s7735_s0 + $0x1f8] sm:$0xff] }
 0xf8d   :  { %4340 = vmatprep.mubr.f32.mxu0 %v3691_v4 }
0x1027   :  { %v3832_v33 = vpop.f32.mrb[28].mxu0  ;;  %v3903_v47 = vpop.f32.mrb[32].mxu1 }
0x1028   :  { %v3908_v43 = vadd.f32 %v4247_v18, %v3832_v33  ;;  %v3834_v56 = vpop.f32.mrb[29].mxu0  ;;  %v3905_v9 = vpop.f32.mrb[33].mxu1  ;;  %v3910_v63 = vadd.f32 %v4249_v27, %v3903_v47 }
0x1029   :  { %v3909_v25 = vadd.f32 %v4248_v5, %v3834_v56  ;;  %v3911_v55 = vadd.f32 %v4250_v24, %v3905_v9 }
0x102a   :  { %v4251_v19 = vmul.f32 -1.442695, %v3908_v43  ;;  %v4253_v2 = vmul.f32 -1.442695, %v3910_v63 }
0x102b   :  { %v4252_v30 = vmul.f32 -1.442695, %v3909_v25 }
0x102c   :  { %5640 = vpow2.f32 %v4251_v19 }
0x102d   :  { %5642 = vpow2.f32 %v4252_v30 }
0x102e   :  { %5644 = vtanh.f32 %v3911_v55 }
0x102f   :  { %5646 = vpow2.f32 %v4253_v2 }
0x1036   :  { %v5641_v41 = vpop.eup %5640 }
0x1037   :  { %v3921_v6 = vadd.f32 1.0, %v5641_v41  ;;  %v5643_v40 = vpop.eup %5642 }
0x1038   :  { %v3922_v17 = vadd.f32 1.0, %v5643_v40  ;;  %v5645_v36 = vpop.eup %5644 }
0x1039   :  { %5648 = vrcp.f32 %v3921_v6  ;;  %v5647_v52 = vpop.eup %5646 }
0x103a   :  { %5650 = vrcp.f32 %v3922_v17  ;;  %v3923_v32 = vadd.f32 1.0, %v5647_v52 }
0x103c   :  { %5652 = vrcp.f32 %v3923_v32 }
0x1043   :  { %v5649_v37 = vpop.eup %5648 }
0x1044   :  { %v3933_v57 = vmul.f32 %v5649_v37, %v5645_v36  ;;  %v5651_v49 = vpop.eup %5650 }
0x1045   :  { %v3932_v22 = vmul.f32 %v5651_v49, %v7595_v7 }
0x1046   :  { %v5653_v20 = vpop.eup %5652 }
0x1047   :  { %v4321_v12 = vpop.f32.mrb[30].mxu0  ;;  %v3934_v0 = vadd.f32 %v3933_v57, %v3932_v22 }
0x1048   :  { %v4052_v35 = vadd.f32 %v4321_v12, %v4254_v42  ;;  %v4046_v21 = vpop.f32.mrb[31].mxu0 }
0x1049   :  { %v4047_v48 = vadd.f32 %v4254_v42, %v4046_v21  ;;  %5654 = vtanh.f32 %v3934_v0 }
0x104a   :  { %4127 = vst.msk [vmem:[%s7738_s4 + $0x8] sm:$0xff] %vm4125_vm0, %v4052_v35 }
0x104b   :  { %4126 = vst.msk [vmem:[%s7738_s4] sm:$0xff] %vm4125_vm0, %v4047_v48  ;;  %v4324_v3 = vpop.f32.mrb[32].mxu0 }
0x104c   :  { %v4062_v62 = vadd.f32 %v4324_v3, %v4254_v42  ;;  %v4056_v26 = vpop.f32.mrb[33].mxu0 }
0x104d   :  { %v4057_v10 = vadd.f32 %v4254_v42, %v4056_v26 }
0x104e   :  { %4129 = vst.msk [vmem:[%s7738_s4 + $0x18] sm:$0xff] %vm4125_vm0, %v4062_v62 }
0x104f   :  { %4128 = vst.msk [vmem:[%s7738_s4 + $0x10] sm:$0xff] %vm4125_vm0, %v4057_v10  ;;  %v4327_v44 = vpop.f32.mrb[34].mxu0 }
0x1050   :  { %v4072_v1 = vadd.f32 %v4327_v44, %v4254_v42  ;;  %v4066_v31 = vpop.f32.mrb[35].mxu0 }
0x1051   :  { %v4067_v7 = vadd.f32 %v4254_v42, %v4066_v31 }
0x1052   :  { %4131 = vst.msk [vmem:[%s7738_s4 + $0x28] sm:$0xff] %vm4125_vm0, %v4072_v1 }
0x1053   :  { %4130 = vst.msk [vmem:[%s7738_s4 + $0x20] sm:$0xff] %vm4125_vm0, %v4067_v7  ;;  %v4330_v53 = vpop.f32.mrb[36].mxu0  ;;  %v5655_v11 = vpop.eup %5654 }
0x1054   :  { %v4082_v58 = vadd.f32 %v4330_v53, %v4254_v42  ;;  %v4076_v4 = vpop.f32.mrb[37].mxu0  ;;  %v3936_v13 = vmul.f32 %v5655_v11, %v5653_v20 }
0x1055   :  { %v4077_v54 = vadd.f32 %v4254_v42, %v4076_v4 }
0x1056   :  { %4133 = vst.msk [vmem:[%s7738_s4 + $0x38] sm:$0xff] %vm4125_vm0, %v4082_v58  ;;  %4341 = vmatmul.mubr.f32.gmra.mrb[44].mxu0 %v3936_v13 }
0x1057   :  { %4132 = vst.msk [vmem:[%s7738_s4 + $0x30] sm:$0xff] %vm4125_vm0, %v4077_v54  ;;  %v4333_v8 = vpop.f32.mrb[38].mxu0 }
0x1058   :  { %v4092_v34 = vadd.f32 %v4333_v8, %v4254_v42  ;;  %v4086_v29 = vpop.f32.mrb[39].mxu0 }
0x1059   :  { %v4087_v28 = vadd.f32 %v4254_v42, %v4086_v29 }
0x105a   :  { %4135 = vst.msk [vmem:[%s7738_s4 + $0x48] sm:$0xff] %vm4125_vm0, %v4092_v34 }
0x105b   :  { %4134 = vst.msk [vmem:[%s7738_s4 + $0x40] sm:$0xff] %vm4125_vm0, %v4087_v28  ;;  %v4336_v45 = vpop.f32.mrb[40].mxu0 }
0x105c   :  { %v4102_v59 = vadd.f32 %v4336_v45, %v4254_v42  ;;  %v4096_v46 = vpop.f32.mrb[41].mxu0 }
0x105d   :  { %v4097_v60 = vadd.f32 %v4254_v42, %v4096_v46 }
0x105e   :  { %4137 = vst.msk [vmem:[%s7738_s4 + $0x58] sm:$0xff] %vm4125_vm0, %v4102_v59 }
0x105f   :  { %4136 = vst.msk [vmem:[%s7738_s4 + $0x50] sm:$0xff] %vm4125_vm0, %v4097_v60  ;;  %v4339_v16 = vpop.f32.mrb[42].mxu0 }
0x1060   :  { %v4112_v14 = vadd.f32 %v4339_v16, %v4254_v42  ;;  %v4106_v51 = vpop.f32.mrb[43].mxu0 }
0x1061   :  { %v4107_v15 = vadd.f32 %v4254_v42, %v4106_v51 }
0x1062   :  { %4139 = vst.msk [vmem:[%s7738_s4 + $0x68] sm:$0xff] %vm4125_vm0, %v4112_v14 }
0x1063   :  { %4138 = vst.msk [vmem:[%s7738_s4 + $0x60] sm:$0xff] %vm4125_vm0, %v4107_v15 }
0x1129   :  { %v4342_v38 = vpop.f32.mrb[44].mxu0 }
0x112a   :  { %v4122_v23 = vadd.f32 %v4342_v38, %v4254_v42  ;;  %v4116_v50 = vpop.f32.mrb[45].mxu0 }
0x112b   :  { %v4117_v61 = vadd.f32 %v4254_v42, %v4116_v50 }
0x112c   :  { %4141 = vst.msk [vmem:[%s7738_s4 + $0x78] sm:$0xff] %vm4125_vm0, %v4122_v23 }
0x112d   :  { %4140 = vst.msk [vmem:[%s7738_s4 + $0x70] sm:$0xff] %vm4125_vm0, %v4117_v61 }

</bundles_post_ra>
